<compile_context>
chip_gen: v6e
topology: v6e:2x2x1
jax: 0.10.0
libtpu: 0.0.40
codegen_flags: <defaults>
</compile_context>

<pallas_src>
import functools

import jax
import jax.numpy as jnp
import numpy as np
from jax.experimental import pallas as pl
from jax.experimental.pallas import tpu as pltpu


# ----------------------------------------------------------------------------
# Helpers
# ----------------------------------------------------------------------------
def _round_up(x, m):
    return ((x + m - 1) // m) * m


def _pick_m_tile(M):
    """TM from {512,256,128} minimizing M padding; 16-multiple for small M."""
    if M <= 128:
        return max(16, _round_up(M, 16))
    best_t, best_waste = 128, None
    for t in (512, 256, 128):
        waste = _round_up(M, t) - M
        if best_waste is None or waste < best_waste:
            best_t, best_waste = t, waste
    return best_t


# ----------------------------------------------------------------------------
# GEMM kernel: K-tiled, f32 accumulator, fused bias (+tanh) and BN statistics
# ----------------------------------------------------------------------------
def _mm_bias_kernel(a_ref, w_ref, b_ref, *rest, activation, compute_stats):
    if compute_stats:
        o_ref, stats_ref, acc_ref = rest
    else:
        o_ref, acc_ref = rest
        stats_ref = None

    @pl.when(pl.program_id(2) == 0)
    def _():
        acc_ref[...] = jnp.zeros_like(acc_ref)

    acc_ref[...] += jnp.dot(a_ref[...], w_ref[...],
                            preferred_element_type=jnp.float32)

    @pl.when(pl.program_id(2) == pl.num_programs(2) - 1)
    def _():
        acc = acc_ref[...]
        out = acc + b_ref[...]
        if activation == "tanh":
            out = jnp.tanh(out)
        o_ref[...] = out.astype(o_ref.dtype)
        if compute_stats:
            s_sum = jnp.sum(acc, axis=0, keepdims=True)        # (1, TN)
            s_sq = jnp.sum(acc * acc, axis=0, keepdims=True)   # (1, TN)
            stats_ref[...] = jnp.concatenate([s_sum, s_sq], axis=0)[None]


def pallas_matmul_bias(a, w, bias, activation=None,
                       out_dtype=jnp.bfloat16, compute_stats=False):
    """a: (M, K), w: (K, N), bias: (N,). Returns (M, N) [+ col sums/sumsq].

    Operands are cast to bf16 (MXU-native); accumulation/epilogue in f32.
    When compute_stats, per-column sum and sum-of-squares of the pre-bias
    accumulator (over the true M rows; padded rows contribute 0) are returned
    for fused BatchNorm statistics.
    """
    M, K = a.shape
    N = w.shape[1]

    TM = _pick_m_tile(M)
    Mp = _round_up(M, TM)
    Np = _round_up(N, 128)
    TN = 512 if Np % 512 == 0 else (256 if Np % 256 == 0 else 128)
    # v7x megacore: keep at least 2 parallel output tiles when possible.
    if (Mp // TM) * (Np // TN) < 2:
        if TM >= 128 and Mp % (TM // 2) == 0 and Mp // (TM // 2) >= 2:
            TM //= 2
        elif TN >= 256:
            TN //= 2
    Kp = _round_up(K, 128)
    TK = 512 if Kp % 512 == 0 else (256 if Kp % 256 == 0 else 128)

    a_p = jnp.pad(a.astype(jnp.bfloat16), ((0, Mp - M), (0, Kp - K)))
    w_p = jnp.pad(w.astype(jnp.bfloat16), ((0, Kp - K), (0, Np - N)))
    b_p = jnp.pad(bias.astype(jnp.float32), ((0, Np - N),)).reshape(1, Np)

    grid = (Mp // TM, Np // TN, Kp // TK)
    n_mt = Mp // TM

    in_specs = [
        pl.BlockSpec((TM, TK), lambda i, j, k: (i, k)),
        pl.BlockSpec((TK, TN), lambda i, j, k: (k, j)),
        pl.BlockSpec((1, TN), lambda i, j, k: (0, j)),
    ]
    if compute_stats:
        out_shape = (jax.ShapeDtypeStruct((Mp, Np), out_dtype),
                     jax.ShapeDtypeStruct((n_mt, 2, Np), jnp.float32))
        out_specs = (pl.BlockSpec((TM, TN), lambda i, j, k: (i, j)),
                     pl.BlockSpec((1, 2, TN), lambda i, j, k: (i, 0, j)))
    else:
        out_shape = jax.ShapeDtypeStruct((Mp, Np), out_dtype)
        out_specs = pl.BlockSpec((TM, TN), lambda i, j, k: (i, j))

    res = pl.pallas_call(
        functools.partial(_mm_bias_kernel, activation=activation,
                          compute_stats=compute_stats),
        out_shape=out_shape,
        grid=grid,
        in_specs=in_specs,
        out_specs=out_specs,
        scratch_shapes=[pltpu.VMEM((TM, TN), jnp.float32)],
        compiler_params=pltpu.CompilerParams(
            dimension_semantics=("parallel", "parallel", "arbitrary"),
            vmem_limit_bytes=48 * 1024 * 1024,   # safe on v7x's 64 MiB VMEM
        ),
    )(a_p, w_p, b_p)

    if compute_stats:
        out, stats = res
        col_sum = jnp.sum(stats[:, 0, :N], axis=0)
        col_sumsq = jnp.sum(stats[:, 1, :N], axis=0)
        return out[:M, :N], col_sum, col_sumsq
    return res[:M, :N]


# ----------------------------------------------------------------------------
# Lane-dense BN-apply + ReLU
# ----------------------------------------------------------------------------
def _bn_relu_kernel(x_ref, scale_ref, shift_ref, o_ref):
    x = x_ref[...].astype(jnp.float32)
    y = jnp.maximum(x * scale_ref[...] + shift_ref[...], 0.0)
    o_ref[...] = y.astype(o_ref.dtype)


def pallas_bn_relu(x, scale, shift):
    """x: (B, H, W, C); scale/shift: (C,). y = relu(x*scale + shift).

    Lane-dense layout: rows = B*H, lanes = W*C (scale/shift pre-tiled to W*C),
    so stores are full-width vst instead of masked sub-128 stores.
    """
    B, H, W, C = x.shape
    R, L = B * H, W * C
    x2 = x.reshape(R, L)

    if L <= 8192:
        TL = L
    else:
        TL = next((c for c in (8192, 4096, 2048, 1024, 512, 256, 128)
                   if L % c == 0), L)
    if R <= 256:
        TR, Rp = R, R
    else:
        TR = 256 if TL <= 2048 else 64
        Rp = _round_up(R, TR)
        if Rp > R:
            x2 = jnp.pad(x2, ((0, Rp - R), (0, 0)))

    scale_l = jnp.tile(scale.astype(jnp.float32), W).reshape(1, L)
    shift_l = jnp.tile(shift.astype(jnp.float32), W).reshape(1, L)

    out = pl.pallas_call(
        _bn_relu_kernel,
        out_shape=jax.ShapeDtypeStruct((Rp, L), x.dtype),
        grid=(Rp // TR, L // TL),
        in_specs=[
            pl.BlockSpec((TR, TL), lambda i, j: (i, j)),
            pl.BlockSpec((1, TL), lambda i, j: (0, j)),
            pl.BlockSpec((1, TL), lambda i, j: (0, j)),
        ],
        out_specs=pl.BlockSpec((TR, TL), lambda i, j: (i, j)),
        compiler_params=pltpu.CompilerParams(
            dimension_semantics=("parallel", "parallel")),
    )(x2, scale_l, shift_l)
    return out[:R].reshape(B, H, W, C)


def bn_scale_shift(col_sums, col_sumsq, bias, count, gamma, beta, eps=1e-5):
    """BatchNorm (train-mode batch stats, biased var) scale/shift from the
    GEMM-fused per-column sums of the pre-bias accumulator."""
    mean_acc = col_sums / count
    var = jnp.maximum(col_sumsq / count - mean_acc * mean_acc, 0.0)
    mean = mean_acc + bias
    scale = gamma * jax.lax.rsqrt(var + eps)
    shift = beta - mean * scale
    return scale, shift


# ----------------------------------------------------------------------------
# Instance-wise feature averaging (tiled two-pass one-hot matmuls)
# ----------------------------------------------------------------------------
def _inst_sums_kernel(inst_ref, x_ref, sums_ref, cnt_ref, *, ni_padded):
    @pl.when(pl.program_id(1) == 0)
    def _():
        sums_ref[...] = jnp.zeros_like(sums_ref)
        cnt_ref[...] = jnp.zeros_like(cnt_ref)

    inst = inst_ref[0]                                        # (1, THW) lane-major
    ids = jax.lax.broadcasted_iota(jnp.int32, (ni_padded, 1), 0)
    onehot_t = (ids == inst)                                  # (NIp, THW)
    cnt_ref[0] += jnp.sum(onehot_t.astype(jnp.float32), axis=1, keepdims=True)
    sums_ref[0] += jnp.dot(onehot_t.astype(jnp.bfloat16),
                           x_ref[0].astype(jnp.bfloat16),
                           preferred_element_type=jnp.float32)


def _inst_scatter_kernel(inst_ref, x_ref, means_ref, o_ref, *, ni_padded):
    inst = inst_ref[0]                                        # (THW, 1) sublane-major
    ids = jax.lax.broadcasted_iota(jnp.int32, (1, ni_padded), 1)
    onehot = (inst == ids)                                    # (THW, NIp)
    scattered = jnp.dot(onehot.astype(jnp.bfloat16),
                        means_ref[0].astype(jnp.bfloat16),
                        preferred_element_type=jnp.float32)   # (THW, Cp)
    covered = jnp.sum(onehot.astype(jnp.float32), axis=1, keepdims=True)
    o_ref[0] = covered * scattered + (1.0 - covered) * x_ref[0]


def pallas_instance_mean(feat_nhwc, inst_nchw, num_inst):
    """Per-sample, per-instance-id feature averaging (pixels with id outside
    [0, num_inst) pass through unchanged).

    # TODO(synk): raw pix2pixHD/Cityscapes instance ids (class*1000+k) must be
    # remapped to contiguous [0, num_inst) before this call.
    """
    B, H, W, C = feat_nhwc.shape
    HW = H * W
    Cp = _round_up(C, 128)
    NIp = _round_up(max(int(num_inst), 1), 128)
    THW = 512 if HW > 512 else _round_up(HW, 8)
    HWp = _round_up(HW, THW)
    n_hw = HWp // THW

    x = feat_nhwc.reshape(B, HW, C).astype(jnp.float32)
    x = jnp.pad(x, ((0, 0), (0, HWp - HW), (0, Cp - C)))
    inst_flat = inst_nchw.reshape(B, HW).astype(jnp.int32)
    inst_flat = jnp.pad(inst_flat, ((0, 0), (0, HWp - HW)), constant_values=-1)
    inst_lane = inst_flat.reshape(B, 1, HWp)     # lane-major for pass 1
    inst_sub = inst_flat.reshape(B, HWp, 1)      # sublane-major for pass 2

    sums, cnt = pl.pallas_call(
        functools.partial(_inst_sums_kernel, ni_padded=NIp),
        out_shape=(jax.ShapeDtypeStruct((B, NIp, Cp), jnp.float32),
                   jax.ShapeDtypeStruct((B, NIp, 1), jnp.float32)),
        grid=(B, n_hw),
        in_specs=[
            pl.BlockSpec((1, 1, THW), lambda b, t: (b, 0, t)),
            pl.BlockSpec((1, THW, Cp), lambda b, t: (b, t, 0)),
        ],
        out_specs=(
            pl.BlockSpec((1, NIp, Cp), lambda b, t: (b, 0, 0)),
            pl.BlockSpec((1, NIp, 1), lambda b, t: (b, 0, 0)),
        ),
        compiler_params=pltpu.CompilerParams(
            dimension_semantics=("parallel", "arbitrary")),
    )(inst_lane, x)

    means = sums / jnp.maximum(cnt, 1.0)         # (B, NIp, Cp) f32

    out = pl.pallas_call(
        functools.partial(_inst_scatter_kernel, ni_padded=NIp),
        out_shape=jax.ShapeDtypeStruct((B, HWp, Cp), jnp.float32),
        grid=(B, n_hw),
        in_specs=[
            pl.BlockSpec((1, THW, 1), lambda b, t: (b, t, 0)),
            pl.BlockSpec((1, THW, Cp), lambda b, t: (b, t, 0)),
            pl.BlockSpec((1, NIp, Cp), lambda b, t: (b, 0, 0)),
        ],
        out_specs=pl.BlockSpec((1, THW, Cp), lambda b, t: (b, t, 0)),
        compiler_params=pltpu.CompilerParams(
            dimension_semantics=("parallel", "parallel")),
    )(inst_sub, x, means)

    return out[:, :HW, :C].reshape(B, H, W, C)


# ----------------------------------------------------------------------------
# Conv / ConvTranspose glue (NHWC; padding & patch extraction in plain JAX)
# ----------------------------------------------------------------------------
def reflect_pad(x, p):
    return jnp.pad(x, ((0, 0), (p, p), (p, p), (0, 0)), mode="reflect")


def im2col_nhwc(x, kh, kw, stride):
    # TODO(synk): fuse im2col into the GEMM (kh*kw tap grid axis with
    # element-offset index_maps on the padded activation) to remove the kh*kw
    # HBM patch blowup; patches are at least built in bf16 here.
    B, H, W, C = x.shape
    Ho = (H - kh) // stride + 1
    Wo = (W - kw) // stride + 1
    cols = []
    for dy in range(kh):
        for dx in range(kw):
            cols.append(x[:, dy::stride, dx::stride, :][:, :Ho, :Wo, :])
    patches = jnp.concatenate(cols, axis=-1)
    return patches.reshape(B * Ho * Wo, kh * kw * C), Ho, Wo


def conv2d_pallas(x, w, b, stride=1, activation=None,
                  out_dtype=jnp.bfloat16, compute_stats=False):
    """x: (B,H,W,Cin) NHWC (already padded); w: (Cout,Cin,kh,kw); b: (Cout,)."""
    Cout, Cin, kh, kw = w.shape
    B = x.shape[0]
    patches, Ho, Wo = im2col_nhwc(x, kh, kw, stride)
    wmat = jnp.transpose(w, (2, 3, 1, 0)).reshape(kh * kw * Cin, Cout)
    res = pallas_matmul_bias(patches, wmat, b, activation=activation,
                             out_dtype=out_dtype, compute_stats=compute_stats)
    if compute_stats:
        out, s1, s2 = res
        return out.reshape(B, Ho, Wo, Cout), s1, s2
    return res.reshape(B, Ho, Wo, Cout)


def conv_transpose2d_pallas(x, w, b):
    """PyTorch ConvTranspose2d(k=3,s=2,p=1,output_padding=1), NHWC, one GEMM.

    The 4 output-parity phases are merged into a single GEMM with N = 4*Cout
    (block-structured weight with zero taps); the (2H, 2W) output is assembled
    with one reshape/transpose instead of zero-init + 4 strided scatters.
    Returns (out, col_sums, col_sumsq) over the 4*Cout GEMM columns.
    """
    B, H, W, Cin = x.shape
    Cout = w.shape[1]
    xp = jnp.pad(x, ((0, 0), (0, 1), (0, 1), (0, 0)))
    x00 = xp[:, :H, :W, :]
    x01 = xp[:, :H, 1:W + 1, :]
    x10 = xp[:, 1:H + 1, :W, :]
    x11 = xp[:, 1:H + 1, 1:W + 1, :]
    a = jnp.concatenate([x11, x10, x01, x00],
                        axis=-1).reshape(B * H * W, 4 * Cin)

    z = jnp.zeros((Cin, Cout), w.dtype)
    t = lambda i, j: w[:, :, i, j]
    # K row blocks: [x11, x10, x01, x00]; N col blocks: [ee, eo, oe, oo].
    wb = jnp.concatenate([
        jnp.concatenate([z,       z,       z,       t(0, 0)], axis=1),
        jnp.concatenate([z,       z,       t(0, 1), t(0, 2)], axis=1),
        jnp.concatenate([z,       t(1, 0), z,       t(2, 0)], axis=1),
        jnp.concatenate([t(1, 1), t(1, 2), t(2, 1), t(2, 2)], axis=1),
    ], axis=0)
    bias4 = jnp.tile(b, 4)

    out, s1, s2 = pallas_matmul_bias(a, wb, bias4, out_dtype=jnp.bfloat16,
                                     compute_stats=True)
    out = out.reshape(B, H, W, 2, 2, Cout)            # (b, a, c, r, s, C)
    out = jnp.transpose(out, (0, 1, 3, 2, 4, 5)).reshape(B, 2 * H, 2 * W, Cout)
    return out, s1, s2


# ----------------------------------------------------------------------------
# Encoder parameters & forward pass
# ----------------------------------------------------------------------------
def init_params(key, input_nc, output_nc, ngf, n_downsampling):
    def uniform(k, shape, bound):
        return jax.random.uniform(k, shape, jnp.float32, -bound, bound)

    def conv_pair(kw_, kb_, cout, cin, kh, kww):
        fan_in = cin * kh * kww
        bound = 1.0 / np.sqrt(fan_in)
        return (uniform(kw_, (cout, cin, kh, kww), bound),
                uniform(kb_, (cout,), bound))

    keys = iter(jax.random.split(key, 64))
    params = {}
    params["w0"], params["b0"] = conv_pair(next(keys), next(keys),
                                           ngf, input_nc, 7, 7)
    params["g0"] = jnp.ones((ngf,), jnp.float32)
    params["be0"] = jnp.zeros((ngf,), jnp.float32)

    params["down"] = []
    for i in range(n_downsampling):
        mult = 2 ** i
        cin, cout = ngf * mult, ngf * mult * 2
        w, b = conv_pair(next(keys), next(keys), cout, cin, 3, 3)
        params["down"].append({"w": w, "b": b,
                               "g": jnp.ones((cout,), jnp.float32),
                               "be": jnp.zeros((cout,), jnp.float32)})

    params["up"] = []
    for i in range(n_downsampling):
        mult = 2 ** (n_downsampling - i)
        cin, cout = ngf * mult, ngf * mult // 2
        fan_in = cin * 3 * 3
        bound = 1.0 / np.sqrt(fan_in)
        w = uniform(next(keys), (cin, cout, 3, 3), bound)   # ConvTranspose layout
        b = uniform(next(keys), (cout,), bound)
        params["up"].append({"w": w, "b": b,
                             "g": jnp.ones((cout,), jnp.float32),
                             "be": jnp.zeros((cout,), jnp.float32)})

    params["wf"], params["bf"] = conv_pair(next(keys), next(keys),
                                           output_nc, ngf, 7, 7)
    return params


def encoder_forward(params, x_nchw, inst_nchw, *, num_inst, n_downsampling):
    # NCHW -> NHWC once; bf16 activations between layers, f32 final output.
    x = jnp.transpose(x_nchw, (0, 2, 3, 1)).astype(jnp.bfloat16)

    # ReflectionPad2d(3) + Conv 7x7 + BN + ReLU (BN stats fused in the GEMM).
    h = reflect_pad(x, 3)
    h, s1, s2 = conv2d_pallas(h, params["w0"], params["b0"], stride=1,
                              compute_stats=True)
    cnt = h.shape[0] * h.shape[1] * h.shape[2]
    scale, shift = bn_scale_shift(s1, s2, params["b0"], cnt,
                                  params["g0"], params["be0"])
    h = pallas_bn_relu(h, scale, shift)

    # Downsampling: Conv 3x3 stride 2 + BN + ReLU.
    for i in range(n_downsampling):
        p = params["down"][i]
        h = jnp.pad(h, ((0, 0), (1, 1), (1, 1), (0, 0)))
        h, s1, s2 = conv2d_pallas(h, p["w"], p["b"], stride=2,
                                  compute_stats=True)
        cnt = h.shape[0] * h.shape[1] * h.shape[2]
        scale, shift = bn_scale_shift(s1, s2, p["b"], cnt, p["g"], p["be"])
        h = pallas_bn_relu(h, scale, shift)

    # Upsampling: merged-phase ConvTranspose + BN + ReLU.
    for i in range(n_downsampling):
        p = params["up"][i]
        cout = p["w"].shape[1]
        h, s1, s2 = conv_transpose2d_pallas(h, p["w"], p["b"])
        cnt = h.shape[0] * h.shape[1] * h.shape[2]      # = 4 * GEMM rows
        scale, shift = bn_scale_shift(s1.reshape(4, cout).sum(0),
                                      s2.reshape(4, cout).sum(0),
                                      p["b"], cnt, p["g"], p["be"])
        h = pallas_bn_relu(h, scale, shift)

    # ReflectionPad2d(3) + Conv 7x7 + Tanh (tanh fused in the GEMM epilogue).
    h = reflect_pad(h, 3)
    h = conv2d_pallas(h, params["wf"], params["bf"], stride=1,
                      activation="tanh", out_dtype=jnp.float32)

    # Instance-wise feature averaging (tiled two-pass one-hot matmuls).
    h = pallas_instance_mean(h, inst_nchw, num_inst)
    return jnp.transpose(h, (0, 3, 1, 2))               # back to NCHW


# ----------------------------------------------------------------------------
# Main
# ----------------------------------------------------------------------------
if __name__ == "__main__":
    B = 2
    INPUT_NC = 3
    OUTPUT_NC = 3
    NGF = 8
    N_DOWN = 2
    H = W = 16
    NUM_INST = 4   # instance map values live in [0, NUM_INST)

    key = jax.random.PRNGKey(0)
    k_par, k_x, k_inst = jax.random.split(key, 3)

    params = init_params(k_par, INPUT_NC, OUTPUT_NC, NGF, N_DOWN)
    x = jax.random.normal(k_x, (B, INPUT_NC, H, W), jnp.float32)
    inst = jax.random.randint(k_inst, (B, 1, H, W), 0, NUM_INST, dtype=jnp.int32)

    fwd = jax.jit(functools.partial(encoder_forward,
                                    num_inst=NUM_INST, n_downsampling=N_DOWN))
    out = fwd(params, x, inst)
    out = jax.block_until_ready(out)

    assert out.shape == (B, OUTPUT_NC, H, W)
    assert bool(jnp.all(jnp.isfinite(out)))
    print("KERNEL_OK")
</pallas_src>

<mosaic_0001>
module attributes {stable_mosaic.version = 11 : i64} {
  func.func @_mm_bias_kernel(%arg0: i32, %arg1: i32, %arg2: i32, %arg3: memref<256x256xbf16, #tpu.memory_space<vmem>>, %arg4: memref<256x128xbf16, #tpu.memory_space<vmem>>, %arg5: memref<1x128xf32, #tpu.memory_space<vmem>>, %arg6: memref<256x128xbf16, #tpu.memory_space<vmem>>, %arg7: memref<1x2x128xf32, #tpu.memory_space<vmem>>, %arg8: memref<256x128xf32, #tpu.memory_space<vmem>>) attributes {dimension_semantics = [#tpu.dimension_semantics<parallel>, #tpu.dimension_semantics<parallel>, #tpu.dimension_semantics<arbitrary>], iteration_bounds = array<i64: 2, 1, 1>, scalar_prefetch = 0 : i64, scratch_operands = 1 : i64, tpu.core_type = #tpu.core_type<tc>, window_params = [{transform_indices = @transform_0, window_bounds = array<i64: 256, 256>}, {transform_indices = @transform_1, window_bounds = array<i64: 256, 128>}, {transform_indices = @transform_2, window_bounds = array<i64: 1, 128>}, {transform_indices = @transform_3, window_bounds = array<i64: 256, 128>}, {transform_indices = @transform_4, window_bounds = array<i64: 1, 2, 128>}]} {
    %c0_i32 = arith.constant 0 : i32
    %0 = arith.cmpi eq, %arg2, %c0_i32 : i32
    %1 = arith.extui %0 : i1 to i32
    %c0_i32_0 = arith.constant 0 : i32
    %2 = arith.cmpi ne, %1, %c0_i32_0 : i32
    scf.if %2 {
      %cst_10 = arith.constant 0.000000e+00 : f32
      %12 = vector.broadcast %cst_10 : f32 to vector<256x128xf32>
      %c0_11 = arith.constant 0 : index
      %c0_12 = arith.constant 0 : index
      %13 = vector.load %arg8[%c0_11, %c0_12] : memref<256x128xf32, #tpu.memory_space<vmem>>, vector<256x128xf32>
      tpu.vector_store %arg8[%c0_11, %c0_12], %12 {strides = array<i32>} : memref<256x128xf32, #tpu.memory_space<vmem>>, vector<256x128xf32>,
    } else {
    }
    %c0 = arith.constant 0 : index
    %c0_1 = arith.constant 0 : index
    %3 = vector.load %arg8[%c0, %c0_1] : memref<256x128xf32, #tpu.memory_space<vmem>>, vector<256x128xf32>
    %c0_2 = arith.constant 0 : index
    %c0_3 = arith.constant 0 : index
    %4 = vector.load %arg3[%c0_2, %c0_3] : memref<256x256xbf16, #tpu.memory_space<vmem>>, vector<256x256xbf16>
    %c0_4 = arith.constant 0 : index
    %c0_5 = arith.constant 0 : index
    %5 = vector.load %arg4[%c0_4, %c0_5] : memref<256x128xbf16, #tpu.memory_space<vmem>>, vector<256x128xbf16>
    %cst = arith.constant dense<0.000000e+00> : vector<256x128xf32>
    %6 = tpu.matmul %4, %5, %cst {dimension_numbers = #tpu.dot_dimension_numbers<[1], [0], [0], [1], [0, 0, 1, 1], [], []>} : vector<256x256xbf16>, vector<256x128xbf16>, vector<256x128xf32> -> vector<256x128xf32>
    %7 = arith.addf %3, %6 : vector<256x128xf32>
    %c0_6 = arith.constant 0 : index
    %c0_7 = arith.constant 0 : index
    %8 = vector.load %arg8[%c0_6, %c0_7] : memref<256x128xf32, #tpu.memory_space<vmem>>, vector<256x128xf32>
    tpu.vector_store %arg8[%c0_6, %c0_7], %7 {strides = array<i32>} : memref<256x128xf32, #tpu.memory_space<vmem>>, vector<256x128xf32>,
    %c0_i32_8 = arith.constant 0 : i32
    %9 = arith.cmpi eq, %arg2, %c0_i32_8 : i32
    %10 = arith.extui %9 : i1 to i32
    %c0_i32_9 = arith.constant 0 : i32
    %11 = arith.cmpi ne, %10, %c0_i32_9 : i32
    scf.if %11 {
      %c0_10 = arith.constant 0 : index
      %c0_11 = arith.constant 0 : index
      %12 = vector.load %arg8[%c0_10, %c0_11] : memref<256x128xf32, #tpu.memory_space<vmem>>, vector<256x128xf32>
      %c0_12 = arith.constant 0 : index
      %c0_13 = arith.constant 0 : index
      %13 = vector.load %arg5[%c0_12, %c0_13] : memref<1x128xf32, #tpu.memory_space<vmem>>, vector<1x128xf32>
      %14 = vector.broadcast %13 : vector<1x128xf32> to vector<256x128xf32>
      %15 = arith.addf %12, %14 : vector<256x128xf32>
      %16 = arith.truncf %15 : vector<256x128xf32> to vector<256x128xbf16>
      %c0_14 = arith.constant 0 : index
      %c0_15 = arith.constant 0 : index
      %17 = vector.load %arg6[%c0_14, %c0_15] : memref<256x128xbf16, #tpu.memory_space<vmem>>, vector<256x128xbf16>
      tpu.vector_store %arg6[%c0_14, %c0_15], %16 {strides = array<i32>} : memref<256x128xbf16, #tpu.memory_space<vmem>>, vector<256x128xbf16>,
      %cst_16 = arith.constant dense<0.000000e+00> : vector<128xf32>
      %18 = vector.multi_reduction <add>, %12, %cst_16 [0] : vector<256x128xf32> to vector<128xf32>
      %19 = vector.shape_cast %18 : vector<128xf32> to vector<1x128xf32>
      %20 = arith.mulf %12, %12 : vector<256x128xf32>
      %cst_17 = arith.constant dense<0.000000e+00> : vector<128xf32>
      %21 = vector.multi_reduction <add>, %20, %cst_17 [0] : vector<256x128xf32> to vector<128xf32>
      %22 = vector.shape_cast %21 : vector<128xf32> to vector<1x128xf32>
      %23 = tpu.concatenate %19, %22 in 0 : vector<1x128xf32>, vector<1x128xf32> -> vector<2x128xf32>
      %24 = vector.shape_cast %23 : vector<2x128xf32> to vector<1x2x128xf32>
      %c0_18 = arith.constant 0 : index
      %c0_19 = arith.constant 0 : index
      %c0_20 = arith.constant 0 : index
      %25 = vector.load %arg7[%c0_18, %c0_19, %c0_20] : memref<1x2x128xf32, #tpu.memory_space<vmem>>, vector<1x2x128xf32>
      tpu.vector_store %arg7[%c0_18, %c0_19, %c0_20], %24 {strides = array<i32>} : memref<1x2x128xf32, #tpu.memory_space<vmem>>, vector<1x2x128xf32>,
    } else {
    }
    return
  }
  func.func @transform_0(%arg0: i32, %arg1: i32, %arg2: i32) -> (i32, i32) {
    %c0_i32 = arith.constant 0 : i32
    return %arg0, %arg2 : i32, i32
  }
  func.func @transform_1(%arg0: i32, %arg1: i32, %arg2: i32) -> (i32, i32) {
    %c0_i32 = arith.constant 0 : i32
    return %arg2, %arg1 : i32, i32
  }
  func.func @transform_2(%arg0: i32, %arg1: i32, %arg2: i32) -> (i32, i32) {
    %c0_i32 = arith.constant 0 : i32
    %c0_i32_0 = arith.constant 0 : i32
    return %c0_i32, %arg1 : i32, i32
  }
  func.func @transform_3(%arg0: i32, %arg1: i32, %arg2: i32) -> (i32, i32) {
    %c0_i32 = arith.constant 0 : i32
    return %arg0, %arg1 : i32, i32
  }
  func.func @transform_4(%arg0: i32, %arg1: i32, %arg2: i32) -> (i32, i32, i32) {
    %c0_i32 = arith.constant 0 : i32
    %c0_i32_0 = arith.constant 0 : i32
    return %arg0, %c0_i32, %arg1 : i32, i32, i32
  }
}

module attributes {stable_mosaic.version = 11 : i64} {
  func.func @_bn_relu_kernel(%arg0: i32, %arg1: i32, %arg2: memref<32x128xbf16, #tpu.memory_space<vmem>>, %arg3: memref<1x128xf32, #tpu.memory_space<vmem>>, %arg4: memref<1x128xf32, #tpu.memory_space<vmem>>, %arg5: memref<32x128xbf16, #tpu.memory_space<vmem>>) attributes {dimension_semantics = [#tpu.dimension_semantics<parallel>, #tpu.dimension_semantics<parallel>], iteration_bounds = array<i64: 1, 1>, scalar_prefetch = 0 : i64, scratch_operands = 0 : i64, tpu.core_type = #tpu.core_type<tc>, window_params = [{transform_indices = @transform_0, window_bounds = array<i64: 32, 128>}, {transform_indices = @transform_1, window_bounds = array<i64: 1, 128>}, {transform_indices = @transform_2, window_bounds = array<i64: 1, 128>}, {transform_indices = @transform_3, window_bounds = array<i64: 32, 128>}]} {
    %c0 = arith.constant 0 : index
    %c0_0 = arith.constant 0 : index
    %0 = vector.load %arg2[%c0, %c0_0] : memref<32x128xbf16, #tpu.memory_space<vmem>>, vector<32x128xbf16>
    %1 = arith.extf %0 : vector<32x128xbf16> to vector<32x128xf32>
    %c0_1 = arith.constant 0 : index
    %c0_2 = arith.constant 0 : index
    %2 = vector.load %arg3[%c0_1, %c0_2] : memref<1x128xf32, #tpu.memory_space<vmem>>, vector<1x128xf32>
    %3 = vector.broadcast %2 : vector<1x128xf32> to vector<32x128xf32>
    %4 = arith.mulf %1, %3 : vector<32x128xf32>
    %c0_3 = arith.constant 0 : index
    %c0_4 = arith.constant 0 : index
    %5 = vector.load %arg4[%c0_3, %c0_4] : memref<1x128xf32, #tpu.memory_space<vmem>>, vector<1x128xf32>
    %6 = vector.broadcast %5 : vector<1x128xf32> to vector<32x128xf32>
    %7 = arith.addf %4, %6 : vector<32x128xf32>
    %cst = arith.constant 0.000000e+00 : f32
    %8 = vector.broadcast %cst : f32 to vector<32x128xf32>
    %9 = arith.maximumf %7, %8 : vector<32x128xf32>
    %10 = arith.truncf %9 : vector<32x128xf32> to vector<32x128xbf16>
    %c0_5 = arith.constant 0 : index
    %c0_6 = arith.constant 0 : index
    %11 = vector.load %arg5[%c0_5, %c0_6] : memref<32x128xbf16, #tpu.memory_space<vmem>>, vector<32x128xbf16>
    tpu.vector_store %arg5[%c0_5, %c0_6], %10 {strides = array<i32>} : memref<32x128xbf16, #tpu.memory_space<vmem>>, vector<32x128xbf16>,
    return
  }
  func.func @transform_0(%arg0: i32, %arg1: i32) -> (i32, i32) {
    %c0_i32 = arith.constant 0 : i32
    return %arg0, %arg1 : i32, i32
  }
  func.func @transform_1(%arg0: i32, %arg1: i32) -> (i32, i32) {
    %c0_i32 = arith.constant 0 : i32
    %c0_i32_0 = arith.constant 0 : i32
    return %c0_i32, %arg1 : i32, i32
  }
  func.func @transform_2(%arg0: i32, %arg1: i32) -> (i32, i32) {
    %c0_i32 = arith.constant 0 : i32
    %c0_i32_0 = arith.constant 0 : i32
    return %c0_i32, %arg1 : i32, i32
  }
  func.func @transform_3(%arg0: i32, %arg1: i32) -> (i32, i32) {
    %c0_i32 = arith.constant 0 : i32
    return %arg0, %arg1 : i32, i32
  }
}

module attributes {stable_mosaic.version = 11 : i64} {
  func.func @_mm_bias_kernel(%arg0: i32, %arg1: i32, %arg2: i32, %arg3: memref<64x128xbf16, #tpu.memory_space<vmem>>, %arg4: memref<128x128xbf16, #tpu.memory_space<vmem>>, %arg5: memref<1x128xf32, #tpu.memory_space<vmem>>, %arg6: memref<64x128xbf16, #tpu.memory_space<vmem>>, %arg7: memref<1x2x128xf32, #tpu.memory_space<vmem>>, %arg8: memref<64x128xf32, #tpu.memory_space<vmem>>) attributes {dimension_semantics = [#tpu.dimension_semantics<parallel>, #tpu.dimension_semantics<parallel>, #tpu.dimension_semantics<arbitrary>], iteration_bounds = array<i64: 2, 1, 1>, scalar_prefetch = 0 : i64, scratch_operands = 1 : i64, tpu.core_type = #tpu.core_type<tc>, window_params = [{transform_indices = @transform_0, window_bounds = array<i64: 64, 128>}, {transform_indices = @transform_1, window_bounds = array<i64: 128, 128>}, {transform_indices = @transform_2, window_bounds = array<i64: 1, 128>}, {transform_indices = @transform_3, window_bounds = array<i64: 64, 128>}, {transform_indices = @transform_4, window_bounds = array<i64: 1, 2, 128>}]} {
    %c0_i32 = arith.constant 0 : i32
    %0 = arith.cmpi eq, %arg2, %c0_i32 : i32
    %1 = arith.extui %0 : i1 to i32
    %c0_i32_0 = arith.constant 0 : i32
    %2 = arith.cmpi ne, %1, %c0_i32_0 : i32
    scf.if %2 {
      %cst_10 = arith.constant 0.000000e+00 : f32
      %12 = vector.broadcast %cst_10 : f32 to vector<64x128xf32>
      %c0_11 = arith.constant 0 : index
      %c0_12 = arith.constant 0 : index
      %13 = vector.load %arg8[%c0_11, %c0_12] : memref<64x128xf32, #tpu.memory_space<vmem>>, vector<64x128xf32>
      tpu.vector_store %arg8[%c0_11, %c0_12], %12 {strides = array<i32>} : memref<64x128xf32, #tpu.memory_space<vmem>>, vector<64x128xf32>,
    } else {
    }
    %c0 = arith.constant 0 : index
    %c0_1 = arith.constant 0 : index
    %3 = vector.load %arg8[%c0, %c0_1] : memref<64x128xf32, #tpu.memory_space<vmem>>, vector<64x128xf32>
    %c0_2 = arith.constant 0 : index
    %c0_3 = arith.constant 0 : index
    %4 = vector.load %arg3[%c0_2, %c0_3] : memref<64x128xbf16, #tpu.memory_space<vmem>>, vector<64x128xbf16>
    %c0_4 = arith.constant 0 : index
    %c0_5 = arith.constant 0 : index
    %5 = vector.load %arg4[%c0_4, %c0_5] : memref<128x128xbf16, #tpu.memory_space<vmem>>, vector<128x128xbf16>
    %cst = arith.constant dense<0.000000e+00> : vector<64x128xf32>
    %6 = tpu.matmul %4, %5, %cst {dimension_numbers = #tpu.dot_dimension_numbers<[1], [0], [0], [1], [0, 0, 1, 1], [], []>} : vector<64x128xbf16>, vector<128x128xbf16>, vector<64x128xf32> -> vector<64x128xf32>
    %7 = arith.addf %3, %6 : vector<64x128xf32>
    %c0_6 = arith.constant 0 : index
    %c0_7 = arith.constant 0 : index
    %8 = vector.load %arg8[%c0_6, %c0_7] : memref<64x128xf32, #tpu.memory_space<vmem>>, vector<64x128xf32>
    tpu.vector_store %arg8[%c0_6, %c0_7], %7 {strides = array<i32>} : memref<64x128xf32, #tpu.memory_space<vmem>>, vector<64x128xf32>,
    %c0_i32_8 = arith.constant 0 : i32
    %9 = arith.cmpi eq, %arg2, %c0_i32_8 : i32
    %10 = arith.extui %9 : i1 to i32
    %c0_i32_9 = arith.constant 0 : i32
    %11 = arith.cmpi ne, %10, %c0_i32_9 : i32
    scf.if %11 {
      %c0_10 = arith.constant 0 : index
      %c0_11 = arith.constant 0 : index
      %12 = vector.load %arg8[%c0_10, %c0_11] : memref<64x128xf32, #tpu.memory_space<vmem>>, vector<64x128xf32>
      %c0_12 = arith.constant 0 : index
      %c0_13 = arith.constant 0 : index
      %13 = vector.load %arg5[%c0_12, %c0_13] : memref<1x128xf32, #tpu.memory_space<vmem>>, vector<1x128xf32>
      %14 = vector.broadcast %13 : vector<1x128xf32> to vector<64x128xf32>
      %15 = arith.addf %12, %14 : vector<64x128xf32>
      %16 = arith.truncf %15 : vector<64x128xf32> to vector<64x128xbf16>
      %c0_14 = arith.constant 0 : index
      %c0_15 = arith.constant 0 : index
      %17 = vector.load %arg6[%c0_14, %c0_15] : memref<64x128xbf16, #tpu.memory_space<vmem>>, vector<64x128xbf16>
      tpu.vector_store %arg6[%c0_14, %c0_15], %16 {strides = array<i32>} : memref<64x128xbf16, #tpu.memory_space<vmem>>, vector<64x128xbf16>,
      %cst_16 = arith.constant dense<0.000000e+00> : vector<128xf32>
      %18 = vector.multi_reduction <add>, %12, %cst_16 [0] : vector<64x128xf32> to vector<128xf32>
      %19 = vector.shape_cast %18 : vector<128xf32> to vector<1x128xf32>
      %20 = arith.mulf %12, %12 : vector<64x128xf32>
      %cst_17 = arith.constant dense<0.000000e+00> : vector<128xf32>
      %21 = vector.multi_reduction <add>, %20, %cst_17 [0] : vector<64x128xf32> to vector<128xf32>
      %22 = vector.shape_cast %21 : vector<128xf32> to vector<1x128xf32>
      %23 = tpu.concatenate %19, %22 in 0 : vector<1x128xf32>, vector<1x128xf32> -> vector<2x128xf32>
      %24 = vector.shape_cast %23 : vector<2x128xf32> to vector<1x2x128xf32>
      %c0_18 = arith.constant 0 : index
      %c0_19 = arith.constant 0 : index
      %c0_20 = arith.constant 0 : index
      %25 = vector.load %arg7[%c0_18, %c0_19, %c0_20] : memref<1x2x128xf32, #tpu.memory_space<vmem>>, vector<1x2x128xf32>
      tpu.vector_store %arg7[%c0_18, %c0_19, %c0_20], %24 {strides = array<i32>} : memref<1x2x128xf32, #tpu.memory_space<vmem>>, vector<1x2x128xf32>,
    } else {
    }
    return
  }
  func.func @transform_0(%arg0: i32, %arg1: i32, %arg2: i32) -> (i32, i32) {
    %c0_i32 = arith.constant 0 : i32
    return %arg0, %arg2 : i32, i32
  }
  func.func @transform_1(%arg0: i32, %arg1: i32, %arg2: i32) -> (i32, i32) {
    %c0_i32 = arith.constant 0 : i32
    return %arg2, %arg1 : i32, i32
  }
  func.func @transform_2(%arg0: i32, %arg1: i32, %arg2: i32) -> (i32, i32) {
    %c0_i32 = arith.constant 0 : i32
    %c0_i32_0 = arith.constant 0 : i32
    return %c0_i32, %arg1 : i32, i32
  }
  func.func @transform_3(%arg0: i32, %arg1: i32, %arg2: i32) -> (i32, i32) {
    %c0_i32 = arith.constant 0 : i32
    return %arg0, %arg1 : i32, i32
  }
  func.func @transform_4(%arg0: i32, %arg1: i32, %arg2: i32) -> (i32, i32, i32) {
    %c0_i32 = arith.constant 0 : i32
    %c0_i32_0 = arith.constant 0 : i32
    return %arg0, %c0_i32, %arg1 : i32, i32, i32
  }
}

module attributes {stable_mosaic.version = 11 : i64} {
  func.func @_bn_relu_kernel(%arg0: i32, %arg1: i32, %arg2: memref<16x128xbf16, #tpu.memory_space<vmem>>, %arg3: memref<1x128xf32, #tpu.memory_space<vmem>>, %arg4: memref<1x128xf32, #tpu.memory_space<vmem>>, %arg5: memref<16x128xbf16, #tpu.memory_space<vmem>>) attributes {dimension_semantics = [#tpu.dimension_semantics<parallel>, #tpu.dimension_semantics<parallel>], iteration_bounds = array<i64: 1, 1>, scalar_prefetch = 0 : i64, scratch_operands = 0 : i64, tpu.core_type = #tpu.core_type<tc>, window_params = [{transform_indices = @transform_0, window_bounds = array<i64: 16, 128>}, {transform_indices = @transform_1, window_bounds = array<i64: 1, 128>}, {transform_indices = @transform_2, window_bounds = array<i64: 1, 128>}, {transform_indices = @transform_3, window_bounds = array<i64: 16, 128>}]} {
    %c0 = arith.constant 0 : index
    %c0_0 = arith.constant 0 : index
    %0 = vector.load %arg2[%c0, %c0_0] : memref<16x128xbf16, #tpu.memory_space<vmem>>, vector<16x128xbf16>
    %1 = arith.extf %0 : vector<16x128xbf16> to vector<16x128xf32>
    %c0_1 = arith.constant 0 : index
    %c0_2 = arith.constant 0 : index
    %2 = vector.load %arg3[%c0_1, %c0_2] : memref<1x128xf32, #tpu.memory_space<vmem>>, vector<1x128xf32>
    %3 = vector.broadcast %2 : vector<1x128xf32> to vector<16x128xf32>
    %4 = arith.mulf %1, %3 : vector<16x128xf32>
    %c0_3 = arith.constant 0 : index
    %c0_4 = arith.constant 0 : index
    %5 = vector.load %arg4[%c0_3, %c0_4] : memref<1x128xf32, #tpu.memory_space<vmem>>, vector<1x128xf32>
    %6 = vector.broadcast %5 : vector<1x128xf32> to vector<16x128xf32>
    %7 = arith.addf %4, %6 : vector<16x128xf32>
    %cst = arith.constant 0.000000e+00 : f32
    %8 = vector.broadcast %cst : f32 to vector<16x128xf32>
    %9 = arith.maximumf %7, %8 : vector<16x128xf32>
    %10 = arith.truncf %9 : vector<16x128xf32> to vector<16x128xbf16>
    %c0_5 = arith.constant 0 : index
    %c0_6 = arith.constant 0 : index
    %11 = vector.load %arg5[%c0_5, %c0_6] : memref<16x128xbf16, #tpu.memory_space<vmem>>, vector<16x128xbf16>
    tpu.vector_store %arg5[%c0_5, %c0_6], %10 {strides = array<i32>} : memref<16x128xbf16, #tpu.memory_space<vmem>>, vector<16x128xbf16>,
    return
  }
  func.func @transform_0(%arg0: i32, %arg1: i32) -> (i32, i32) {
    %c0_i32 = arith.constant 0 : i32
    return %arg0, %arg1 : i32, i32
  }
  func.func @transform_1(%arg0: i32, %arg1: i32) -> (i32, i32) {
    %c0_i32 = arith.constant 0 : i32
    %c0_i32_0 = arith.constant 0 : i32
    return %c0_i32, %arg1 : i32, i32
  }
  func.func @transform_2(%arg0: i32, %arg1: i32) -> (i32, i32) {
    %c0_i32 = arith.constant 0 : i32
    %c0_i32_0 = arith.constant 0 : i32
    return %c0_i32, %arg1 : i32, i32
  }
  func.func @transform_3(%arg0: i32, %arg1: i32) -> (i32, i32) {
    %c0_i32 = arith.constant 0 : i32
    return %arg0, %arg1 : i32, i32
  }
}

module attributes {stable_mosaic.version = 11 : i64} {
  func.func @_bn_relu_kernel(%arg0: i32, %arg1: i32, %arg2: memref<8x128xbf16, #tpu.memory_space<vmem>>, %arg3: memref<1x128xf32, #tpu.memory_space<vmem>>, %arg4: memref<1x128xf32, #tpu.memory_space<vmem>>, %arg5: memref<8x128xbf16, #tpu.memory_space<vmem>>) attributes {dimension_semantics = [#tpu.dimension_semantics<parallel>, #tpu.dimension_semantics<parallel>], iteration_bounds = array<i64: 1, 1>, scalar_prefetch = 0 : i64, scratch_operands = 0 : i64, tpu.core_type = #tpu.core_type<tc>, window_params = [{transform_indices = @transform_0, window_bounds = array<i64: 8, 128>}, {transform_indices = @transform_1, window_bounds = array<i64: 1, 128>}, {transform_indices = @transform_2, window_bounds = array<i64: 1, 128>}, {transform_indices = @transform_3, window_bounds = array<i64: 8, 128>}]} {
    %c0 = arith.constant 0 : index
    %c0_0 = arith.constant 0 : index
    %0 = vector.load %arg2[%c0, %c0_0] : memref<8x128xbf16, #tpu.memory_space<vmem>>, vector<8x128xbf16>
    %1 = arith.extf %0 : vector<8x128xbf16> to vector<8x128xf32>
    %c0_1 = arith.constant 0 : index
    %c0_2 = arith.constant 0 : index
    %2 = vector.load %arg3[%c0_1, %c0_2] : memref<1x128xf32, #tpu.memory_space<vmem>>, vector<1x128xf32>
    %3 = vector.broadcast %2 : vector<1x128xf32> to vector<8x128xf32>
    %4 = arith.mulf %1, %3 : vector<8x128xf32>
    %c0_3 = arith.constant 0 : index
    %c0_4 = arith.constant 0 : index
    %5 = vector.load %arg4[%c0_3, %c0_4] : memref<1x128xf32, #tpu.memory_space<vmem>>, vector<1x128xf32>
    %6 = vector.broadcast %5 : vector<1x128xf32> to vector<8x128xf32>
    %7 = arith.addf %4, %6 : vector<8x128xf32>
    %cst = arith.constant 0.000000e+00 : f32
    %8 = vector.broadcast %cst : f32 to vector<8x128xf32>
    %9 = arith.maximumf %7, %8 : vector<8x128xf32>
    %10 = arith.truncf %9 : vector<8x128xf32> to vector<8x128xbf16>
    %c0_5 = arith.constant 0 : index
    %c0_6 = arith.constant 0 : index
    %11 = vector.load %arg5[%c0_5, %c0_6] : memref<8x128xbf16, #tpu.memory_space<vmem>>, vector<8x128xbf16>
    tpu.vector_store %arg5[%c0_5, %c0_6], %10 {strides = array<i32>} : memref<8x128xbf16, #tpu.memory_space<vmem>>, vector<8x128xbf16>,
    return
  }
  func.func @transform_0(%arg0: i32, %arg1: i32) -> (i32, i32) {
    %c0_i32 = arith.constant 0 : i32
    return %arg0, %arg1 : i32, i32
  }
  func.func @transform_1(%arg0: i32, %arg1: i32) -> (i32, i32) {
    %c0_i32 = arith.constant 0 : i32
    %c0_i32_0 = arith.constant 0 : i32
    return %c0_i32, %arg1 : i32, i32
  }
  func.func @transform_2(%arg0: i32, %arg1: i32) -> (i32, i32) {
    %c0_i32 = arith.constant 0 : i32
    %c0_i32_0 = arith.constant 0 : i32
    return %c0_i32, %arg1 : i32, i32
  }
  func.func @transform_3(%arg0: i32, %arg1: i32) -> (i32, i32) {
    %c0_i32 = arith.constant 0 : i32
    return %arg0, %arg1 : i32, i32
  }
}

module attributes {stable_mosaic.version = 11 : i64} {
  func.func @_mm_bias_kernel(%arg0: i32, %arg1: i32, %arg2: i32, %arg3: memref<32x256xbf16, #tpu.memory_space<vmem>>, %arg4: memref<256x128xbf16, #tpu.memory_space<vmem>>, %arg5: memref<1x128xf32, #tpu.memory_space<vmem>>, %arg6: memref<32x128xbf16, #tpu.memory_space<vmem>>, %arg7: memref<1x2x128xf32, #tpu.memory_space<vmem>>, %arg8: memref<32x128xf32, #tpu.memory_space<vmem>>) attributes {dimension_semantics = [#tpu.dimension_semantics<parallel>, #tpu.dimension_semantics<parallel>, #tpu.dimension_semantics<arbitrary>], iteration_bounds = array<i64: 1, 1, 1>, scalar_prefetch = 0 : i64, scratch_operands = 1 : i64, tpu.core_type = #tpu.core_type<tc>, window_params = [{transform_indices = @transform_0, window_bounds = array<i64: 32, 256>}, {transform_indices = @transform_1, window_bounds = array<i64: 256, 128>}, {transform_indices = @transform_2, window_bounds = array<i64: 1, 128>}, {transform_indices = @transform_3, window_bounds = array<i64: 32, 128>}, {transform_indices = @transform_4, window_bounds = array<i64: 1, 2, 128>}]} {
    %c0_i32 = arith.constant 0 : i32
    %0 = arith.cmpi eq, %arg2, %c0_i32 : i32
    %1 = arith.extui %0 : i1 to i32
    %c0_i32_0 = arith.constant 0 : i32
    %2 = arith.cmpi ne, %1, %c0_i32_0 : i32
    scf.if %2 {
      %cst_10 = arith.constant 0.000000e+00 : f32
      %12 = vector.broadcast %cst_10 : f32 to vector<32x128xf32>
      %c0_11 = arith.constant 0 : index
      %c0_12 = arith.constant 0 : index
      %13 = vector.load %arg8[%c0_11, %c0_12] : memref<32x128xf32, #tpu.memory_space<vmem>>, vector<32x128xf32>
      tpu.vector_store %arg8[%c0_11, %c0_12], %12 {strides = array<i32>} : memref<32x128xf32, #tpu.memory_space<vmem>>, vector<32x128xf32>,
    } else {
    }
    %c0 = arith.constant 0 : index
    %c0_1 = arith.constant 0 : index
    %3 = vector.load %arg8[%c0, %c0_1] : memref<32x128xf32, #tpu.memory_space<vmem>>, vector<32x128xf32>
    %c0_2 = arith.constant 0 : index
    %c0_3 = arith.constant 0 : index
    %4 = vector.load %arg3[%c0_2, %c0_3] : memref<32x256xbf16, #tpu.memory_space<vmem>>, vector<32x256xbf16>
    %c0_4 = arith.constant 0 : index
    %c0_5 = arith.constant 0 : index
    %5 = vector.load %arg4[%c0_4, %c0_5] : memref<256x128xbf16, #tpu.memory_space<vmem>>, vector<256x128xbf16>
    %cst = arith.constant dense<0.000000e+00> : vector<32x128xf32>
    %6 = tpu.matmul %4, %5, %cst {dimension_numbers = #tpu.dot_dimension_numbers<[1], [0], [0], [1], [0, 0, 1, 1], [], []>} : vector<32x256xbf16>, vector<256x128xbf16>, vector<32x128xf32> -> vector<32x128xf32>
    %7 = arith.addf %3, %6 : vector<32x128xf32>
    %c0_6 = arith.constant 0 : index
    %c0_7 = arith.constant 0 : index
    %8 = vector.load %arg8[%c0_6, %c0_7] : memref<32x128xf32, #tpu.memory_space<vmem>>, vector<32x128xf32>
    tpu.vector_store %arg8[%c0_6, %c0_7], %7 {strides = array<i32>} : memref<32x128xf32, #tpu.memory_space<vmem>>, vector<32x128xf32>,
    %c0_i32_8 = arith.constant 0 : i32
    %9 = arith.cmpi eq, %arg2, %c0_i32_8 : i32
    %10 = arith.extui %9 : i1 to i32
    %c0_i32_9 = arith.constant 0 : i32
    %11 = arith.cmpi ne, %10, %c0_i32_9 : i32
    scf.if %11 {
      %c0_10 = arith.constant 0 : index
      %c0_11 = arith.constant 0 : index
      %12 = vector.load %arg8[%c0_10, %c0_11] : memref<32x128xf32, #tpu.memory_space<vmem>>, vector<32x128xf32>
      %c0_12 = arith.constant 0 : index
      %c0_13 = arith.constant 0 : index
      %13 = vector.load %arg5[%c0_12, %c0_13] : memref<1x128xf32, #tpu.memory_space<vmem>>, vector<1x128xf32>
      %14 = vector.broadcast %13 : vector<1x128xf32> to vector<32x128xf32>
      %15 = arith.addf %12, %14 : vector<32x128xf32>
      %16 = arith.truncf %15 : vector<32x128xf32> to vector<32x128xbf16>
      %c0_14 = arith.constant 0 : index
      %c0_15 = arith.constant 0 : index
      %17 = vector.load %arg6[%c0_14, %c0_15] : memref<32x128xbf16, #tpu.memory_space<vmem>>, vector<32x128xbf16>
      tpu.vector_store %arg6[%c0_14, %c0_15], %16 {strides = array<i32>} : memref<32x128xbf16, #tpu.memory_space<vmem>>, vector<32x128xbf16>,
      %cst_16 = arith.constant dense<0.000000e+00> : vector<128xf32>
      %18 = vector.multi_reduction <add>, %12, %cst_16 [0] : vector<32x128xf32> to vector<128xf32>
      %19 = vector.shape_cast %18 : vector<128xf32> to vector<1x128xf32>
      %20 = arith.mulf %12, %12 : vector<32x128xf32>
      %cst_17 = arith.constant dense<0.000000e+00> : vector<128xf32>
      %21 = vector.multi_reduction <add>, %20, %cst_17 [0] : vector<32x128xf32> to vector<128xf32>
      %22 = vector.shape_cast %21 : vector<128xf32> to vector<1x128xf32>
      %23 = tpu.concatenate %19, %22 in 0 : vector<1x128xf32>, vector<1x128xf32> -> vector<2x128xf32>
      %24 = vector.shape_cast %23 : vector<2x128xf32> to vector<1x2x128xf32>
      %c0_18 = arith.constant 0 : index
      %c0_19 = arith.constant 0 : index
      %c0_20 = arith.constant 0 : index
      %25 = vector.load %arg7[%c0_18, %c0_19, %c0_20] : memref<1x2x128xf32, #tpu.memory_space<vmem>>, vector<1x2x128xf32>
      tpu.vector_store %arg7[%c0_18, %c0_19, %c0_20], %24 {strides = array<i32>} : memref<1x2x128xf32, #tpu.memory_space<vmem>>, vector<1x2x128xf32>,
    } else {
    }
    return
  }
  func.func @transform_0(%arg0: i32, %arg1: i32, %arg2: i32) -> (i32, i32) {
    %c0_i32 = arith.constant 0 : i32
    return %arg0, %arg2 : i32, i32
  }
  func.func @transform_1(%arg0: i32, %arg1: i32, %arg2: i32) -> (i32, i32) {
    %c0_i32 = arith.constant 0 : i32
    return %arg2, %arg1 : i32, i32
  }
  func.func @transform_2(%arg0: i32, %arg1: i32, %arg2: i32) -> (i32, i32) {
    %c0_i32 = arith.constant 0 : i32
    %c0_i32_0 = arith.constant 0 : i32
    return %c0_i32, %arg1 : i32, i32
  }
  func.func @transform_3(%arg0: i32, %arg1: i32, %arg2: i32) -> (i32, i32) {
    %c0_i32 = arith.constant 0 : i32
    return %arg0, %arg1 : i32, i32
  }
  func.func @transform_4(%arg0: i32, %arg1: i32, %arg2: i32) -> (i32, i32, i32) {
    %c0_i32 = arith.constant 0 : i32
    %c0_i32_0 = arith.constant 0 : i32
    return %arg0, %c0_i32, %arg1 : i32, i32, i32
  }
}

module attributes {stable_mosaic.version = 11 : i64} {
  func.func @_mm_bias_kernel(%arg0: i32, %arg1: i32, %arg2: i32, %arg3: memref<32x128xbf16, #tpu.memory_space<vmem>>, %arg4: memref<128x128xbf16, #tpu.memory_space<vmem>>, %arg5: memref<1x128xf32, #tpu.memory_space<vmem>>, %arg6: memref<32x128xbf16, #tpu.memory_space<vmem>>, %arg7: memref<1x2x128xf32, #tpu.memory_space<vmem>>, %arg8: memref<32x128xf32, #tpu.memory_space<vmem>>) attributes {dimension_semantics = [#tpu.dimension_semantics<parallel>, #tpu.dimension_semantics<parallel>, #tpu.dimension_semantics<arbitrary>], iteration_bounds = array<i64: 1, 1, 1>, scalar_prefetch = 0 : i64, scratch_operands = 1 : i64, tpu.core_type = #tpu.core_type<tc>, window_params = [{transform_indices = @transform_0, window_bounds = array<i64: 32, 128>}, {transform_indices = @transform_1, window_bounds = array<i64: 128, 128>}, {transform_indices = @transform_2, window_bounds = array<i64: 1, 128>}, {transform_indices = @transform_3, window_bounds = array<i64: 32, 128>}, {transform_indices = @transform_4, window_bounds = array<i64: 1, 2, 128>}]} {
    %c0_i32 = arith.constant 0 : i32
    %0 = arith.cmpi eq, %arg2, %c0_i32 : i32
    %1 = arith.extui %0 : i1 to i32
    %c0_i32_0 = arith.constant 0 : i32
    %2 = arith.cmpi ne, %1, %c0_i32_0 : i32
    scf.if %2 {
      %cst_10 = arith.constant 0.000000e+00 : f32
      %12 = vector.broadcast %cst_10 : f32 to vector<32x128xf32>
      %c0_11 = arith.constant 0 : index
      %c0_12 = arith.constant 0 : index
      %13 = vector.load %arg8[%c0_11, %c0_12] : memref<32x128xf32, #tpu.memory_space<vmem>>, vector<32x128xf32>
      tpu.vector_store %arg8[%c0_11, %c0_12], %12 {strides = array<i32>} : memref<32x128xf32, #tpu.memory_space<vmem>>, vector<32x128xf32>,
    } else {
    }
    %c0 = arith.constant 0 : index
    %c0_1 = arith.constant 0 : index
    %3 = vector.load %arg8[%c0, %c0_1] : memref<32x128xf32, #tpu.memory_space<vmem>>, vector<32x128xf32>
    %c0_2 = arith.constant 0 : index
    %c0_3 = arith.constant 0 : index
    %4 = vector.load %arg3[%c0_2, %c0_3] : memref<32x128xbf16, #tpu.memory_space<vmem>>, vector<32x128xbf16>
    %c0_4 = arith.constant 0 : index
    %c0_5 = arith.constant 0 : index
    %5 = vector.load %arg4[%c0_4, %c0_5] : memref<128x128xbf16, #tpu.memory_space<vmem>>, vector<128x128xbf16>
    %cst = arith.constant dense<0.000000e+00> : vector<32x128xf32>
    %6 = tpu.matmul %4, %5, %cst {dimension_numbers = #tpu.dot_dimension_numbers<[1], [0], [0], [1], [0, 0, 1, 1], [], []>} : vector<32x128xbf16>, vector<128x128xbf16>, vector<32x128xf32> -> vector<32x128xf32>
    %7 = arith.addf %3, %6 : vector<32x128xf32>
    %c0_6 = arith.constant 0 : index
    %c0_7 = arith.constant 0 : index
    %8 = vector.load %arg8[%c0_6, %c0_7] : memref<32x128xf32, #tpu.memory_space<vmem>>, vector<32x128xf32>
    tpu.vector_store %arg8[%c0_6, %c0_7], %7 {strides = array<i32>} : memref<32x128xf32, #tpu.memory_space<vmem>>, vector<32x128xf32>,
    %c0_i32_8 = arith.constant 0 : i32
    %9 = arith.cmpi eq, %arg2, %c0_i32_8 : i32
    %10 = arith.extui %9 : i1 to i32
    %c0_i32_9 = arith.constant 0 : i32
    %11 = arith.cmpi ne, %10, %c0_i32_9 : i32
    scf.if %11 {
      %c0_10 = arith.constant 0 : index
      %c0_11 = arith.constant 0 : index
      %12 = vector.load %arg8[%c0_10, %c0_11] : memref<32x128xf32, #tpu.memory_space<vmem>>, vector<32x128xf32>
      %c0_12 = arith.constant 0 : index
      %c0_13 = arith.constant 0 : index
      %13 = vector.load %arg5[%c0_12, %c0_13] : memref<1x128xf32, #tpu.memory_space<vmem>>, vector<1x128xf32>
      %14 = vector.broadcast %13 : vector<1x128xf32> to vector<32x128xf32>
      %15 = arith.addf %12, %14 : vector<32x128xf32>
      %16 = arith.truncf %15 : vector<32x128xf32> to vector<32x128xbf16>
      %c0_14 = arith.constant 0 : index
      %c0_15 = arith.constant 0 : index
      %17 = vector.load %arg6[%c0_14, %c0_15] : memref<32x128xbf16, #tpu.memory_space<vmem>>, vector<32x128xbf16>
      tpu.vector_store %arg6[%c0_14, %c0_15], %16 {strides = array<i32>} : memref<32x128xbf16, #tpu.memory_space<vmem>>, vector<32x128xbf16>,
      %cst_16 = arith.constant dense<0.000000e+00> : vector<128xf32>
      %18 = vector.multi_reduction <add>, %12, %cst_16 [0] : vector<32x128xf32> to vector<128xf32>
      %19 = vector.shape_cast %18 : vector<128xf32> to vector<1x128xf32>
      %20 = arith.mulf %12, %12 : vector<32x128xf32>
      %cst_17 = arith.constant dense<0.000000e+00> : vector<128xf32>
      %21 = vector.multi_reduction <add>, %20, %cst_17 [0] : vector<32x128xf32> to vector<128xf32>
      %22 = vector.shape_cast %21 : vector<128xf32> to vector<1x128xf32>
      %23 = tpu.concatenate %19, %22 in 0 : vector<1x128xf32>, vector<1x128xf32> -> vector<2x128xf32>
      %24 = vector.shape_cast %23 : vector<2x128xf32> to vector<1x2x128xf32>
      %c0_18 = arith.constant 0 : index
      %c0_19 = arith.constant 0 : index
      %c0_20 = arith.constant 0 : index
      %25 = vector.load %arg7[%c0_18, %c0_19, %c0_20] : memref<1x2x128xf32, #tpu.memory_space<vmem>>, vector<1x2x128xf32>
      tpu.vector_store %arg7[%c0_18, %c0_19, %c0_20], %24 {strides = array<i32>} : memref<1x2x128xf32, #tpu.memory_space<vmem>>, vector<1x2x128xf32>,
    } else {
    }
    return
  }
  func.func @transform_0(%arg0: i32, %arg1: i32, %arg2: i32) -> (i32, i32) {
    %c0_i32 = arith.constant 0 : i32
    return %arg0, %arg2 : i32, i32
  }
  func.func @transform_1(%arg0: i32, %arg1: i32, %arg2: i32) -> (i32, i32) {
    %c0_i32 = arith.constant 0 : i32
    return %arg2, %arg1 : i32, i32
  }
  func.func @transform_2(%arg0: i32, %arg1: i32, %arg2: i32) -> (i32, i32) {
    %c0_i32 = arith.constant 0 : i32
    %c0_i32_0 = arith.constant 0 : i32
    return %c0_i32, %arg1 : i32, i32
  }
  func.func @transform_3(%arg0: i32, %arg1: i32, %arg2: i32) -> (i32, i32) {
    %c0_i32 = arith.constant 0 : i32
    return %arg0, %arg1 : i32, i32
  }
  func.func @transform_4(%arg0: i32, %arg1: i32, %arg2: i32) -> (i32, i32, i32) {
    %c0_i32 = arith.constant 0 : i32
    %c0_i32_0 = arith.constant 0 : i32
    return %arg0, %c0_i32, %arg1 : i32, i32, i32
  }
}

module attributes {stable_mosaic.version = 11 : i64} {
  func.func @_mm_bias_kernel(%arg0: i32, %arg1: i32, %arg2: i32, %arg3: memref<256x512xbf16, #tpu.memory_space<vmem>>, %arg4: memref<512x128xbf16, #tpu.memory_space<vmem>>, %arg5: memref<1x128xf32, #tpu.memory_space<vmem>>, %arg6: memref<256x128xf32, #tpu.memory_space<vmem>>, %arg7: memref<256x128xf32, #tpu.memory_space<vmem>>) attributes {dimension_semantics = [#tpu.dimension_semantics<parallel>, #tpu.dimension_semantics<parallel>, #tpu.dimension_semantics<arbitrary>], iteration_bounds = array<i64: 2, 1, 1>, scalar_prefetch = 0 : i64, scratch_operands = 1 : i64, tpu.core_type = #tpu.core_type<tc>, window_params = [{transform_indices = @transform_0, window_bounds = array<i64: 256, 512>}, {transform_indices = @transform_1, window_bounds = array<i64: 512, 128>}, {transform_indices = @transform_2, window_bounds = array<i64: 1, 128>}, {transform_indices = @transform_3, window_bounds = array<i64: 256, 128>}]} {
    %c0_i32 = arith.constant 0 : i32
    %0 = arith.cmpi eq, %arg2, %c0_i32 : i32
    %1 = arith.extui %0 : i1 to i32
    %c0_i32_0 = arith.constant 0 : i32
    %2 = arith.cmpi ne, %1, %c0_i32_0 : i32
    scf.if %2 {
      %cst_10 = arith.constant 0.000000e+00 : f32
      %12 = vector.broadcast %cst_10 : f32 to vector<256x128xf32>
      %c0_11 = arith.constant 0 : index
      %c0_12 = arith.constant 0 : index
      %13 = vector.load %arg7[%c0_11, %c0_12] : memref<256x128xf32, #tpu.memory_space<vmem>>, vector<256x128xf32>
      tpu.vector_store %arg7[%c0_11, %c0_12], %12 {strides = array<i32>} : memref<256x128xf32, #tpu.memory_space<vmem>>, vector<256x128xf32>,
    } else {
    }
    %c0 = arith.constant 0 : index
    %c0_1 = arith.constant 0 : index
    %3 = vector.load %arg7[%c0, %c0_1] : memref<256x128xf32, #tpu.memory_space<vmem>>, vector<256x128xf32>
    %c0_2 = arith.constant 0 : index
    %c0_3 = arith.constant 0 : index
    %4 = vector.load %arg3[%c0_2, %c0_3] : memref<256x512xbf16, #tpu.memory_space<vmem>>, vector<256x512xbf16>
    %c0_4 = arith.constant 0 : index
    %c0_5 = arith.constant 0 : index
    %5 = vector.load %arg4[%c0_4, %c0_5] : memref<512x128xbf16, #tpu.memory_space<vmem>>, vector<512x128xbf16>
    %cst = arith.constant dense<0.000000e+00> : vector<256x128xf32>
    %6 = tpu.matmul %4, %5, %cst {dimension_numbers = #tpu.dot_dimension_numbers<[1], [0], [0], [1], [0, 0, 1, 1], [], []>} : vector<256x512xbf16>, vector<512x128xbf16>, vector<256x128xf32> -> vector<256x128xf32>
    %7 = arith.addf %3, %6 : vector<256x128xf32>
    %c0_6 = arith.constant 0 : index
    %c0_7 = arith.constant 0 : index
    %8 = vector.load %arg7[%c0_6, %c0_7] : memref<256x128xf32, #tpu.memory_space<vmem>>, vector<256x128xf32>
    tpu.vector_store %arg7[%c0_6, %c0_7], %7 {strides = array<i32>} : memref<256x128xf32, #tpu.memory_space<vmem>>, vector<256x128xf32>,
    %c0_i32_8 = arith.constant 0 : i32
    %9 = arith.cmpi eq, %arg2, %c0_i32_8 : i32
    %10 = arith.extui %9 : i1 to i32
    %c0_i32_9 = arith.constant 0 : i32
    %11 = arith.cmpi ne, %10, %c0_i32_9 : i32
    scf.if %11 {
      %c0_10 = arith.constant 0 : index
      %c0_11 = arith.constant 0 : index
      %12 = vector.load %arg7[%c0_10, %c0_11] : memref<256x128xf32, #tpu.memory_space<vmem>>, vector<256x128xf32>
      %c0_12 = arith.constant 0 : index
      %c0_13 = arith.constant 0 : index
      %13 = vector.load %arg5[%c0_12, %c0_13] : memref<1x128xf32, #tpu.memory_space<vmem>>, vector<1x128xf32>
      %14 = vector.broadcast %13 : vector<1x128xf32> to vector<256x128xf32>
      %15 = arith.addf %12, %14 : vector<256x128xf32>
      %16 = math.tanh %15 : vector<256x128xf32>
      %c0_14 = arith.constant 0 : index
      %c0_15 = arith.constant 0 : index
      %17 = vector.load %arg6[%c0_14, %c0_15] : memref<256x128xf32, #tpu.memory_space<vmem>>, vector<256x128xf32>
      tpu.vector_store %arg6[%c0_14, %c0_15], %16 {strides = array<i32>} : memref<256x128xf32, #tpu.memory_space<vmem>>, vector<256x128xf32>,
    } else {
    }
    return
  }
  func.func @transform_0(%arg0: i32, %arg1: i32, %arg2: i32) -> (i32, i32) {
    %c0_i32 = arith.constant 0 : i32
    return %arg0, %arg2 : i32, i32
  }
  func.func @transform_1(%arg0: i32, %arg1: i32, %arg2: i32) -> (i32, i32) {
    %c0_i32 = arith.constant 0 : i32
    return %arg2, %arg1 : i32, i32
  }
  func.func @transform_2(%arg0: i32, %arg1: i32, %arg2: i32) -> (i32, i32) {
    %c0_i32 = arith.constant 0 : i32
    %c0_i32_0 = arith.constant 0 : i32
    return %c0_i32, %arg1 : i32, i32
  }
  func.func @transform_3(%arg0: i32, %arg1: i32, %arg2: i32) -> (i32, i32) {
    %c0_i32 = arith.constant 0 : i32
    return %arg0, %arg1 : i32, i32
  }
}

module attributes {stable_mosaic.version = 11 : i64} {
  func.func @_inst_sums_kernel(%arg0: i32, %arg1: i32, %arg2: memref<1x1x256xi32, #tpu.memory_space<vmem>>, %arg3: memref<1x256x128xf32, #tpu.memory_space<vmem>>, %arg4: memref<1x128x128xf32, #tpu.memory_space<vmem>>, %arg5: memref<1x128x1xf32, #tpu.memory_space<vmem>>) attributes {dimension_semantics = [#tpu.dimension_semantics<parallel>, #tpu.dimension_semantics<arbitrary>], iteration_bounds = array<i64: 2, 1>, scalar_prefetch = 0 : i64, scratch_operands = 0 : i64, tpu.core_type = #tpu.core_type<tc>, window_params = [{transform_indices = @transform_0, window_bounds = array<i64: 1, 1, 256>}, {transform_indices = @transform_1, window_bounds = array<i64: 1, 256, 128>}, {transform_indices = @transform_2, window_bounds = array<i64: 1, 128, 128>}, {transform_indices = @transform_3, window_bounds = array<i64: 1, 128, 1>}]} {
    %c0_i32 = arith.constant 0 : i32
    %0 = arith.cmpi eq, %arg1, %c0_i32 : i32
    %1 = arith.extui %0 : i1 to i32
    %c0_i32_0 = arith.constant 0 : i32
    %2 = arith.cmpi ne, %1, %c0_i32_0 : i32
    scf.if %2 {
      %cst_19 = arith.constant 0.000000e+00 : f32
      %32 = vector.broadcast %cst_19 : f32 to vector<1x128x128xf32>
      %c0_20 = arith.constant 0 : index
      %c0_21 = arith.constant 0 : index
      %c0_22 = arith.constant 0 : index
      %33 = vector.load %arg4[%c0_20, %c0_21, %c0_22] : memref<1x128x128xf32, #tpu.memory_space<vmem>>, vector<1x128x128xf32>
      tpu.vector_store %arg4[%c0_20, %c0_21, %c0_22], %32 {strides = array<i32>} : memref<1x128x128xf32, #tpu.memory_space<vmem>>, vector<1x128x128xf32>,
      %cst_23 = arith.constant 0.000000e+00 : f32
      %34 = vector.broadcast %cst_23 : f32 to vector<1x128x1xf32>
      %c0_24 = arith.constant 0 : index
      %c0_25 = arith.constant 0 : index
      %c0_26 = arith.constant 0 : index
      %35 = vector.load %arg5[%c0_24, %c0_25, %c0_26] : memref<1x128x1xf32, #tpu.memory_space<vmem>>, vector<1x128x1xf32>
      tpu.vector_store %arg5[%c0_24, %c0_25, %c0_26], %34 {strides = array<i32>} : memref<1x128x1xf32, #tpu.memory_space<vmem>>, vector<1x128x1xf32>,
    } else {
    }
    %c0 = arith.constant 0 : index
    %c0_1 = arith.constant 0 : index
    %c0_2 = arith.constant 0 : index
    %3 = vector.load %arg2[%c0, %c0_1, %c0_2] : memref<1x1x256xi32, #tpu.memory_space<vmem>>, vector<1x1x256xi32>
    %4 = vector.shape_cast %3 : vector<1x1x256xi32> to vector<1x256xi32>
    %5 = tpu.iota {dimensions = array<i32: 0>} : vector<128x1xi32>
    %6 = vector.broadcast %5 : vector<128x1xi32> to vector<128x256xi32>
    %7 = vector.broadcast %4 : vector<1x256xi32> to vector<128x256xi32>
    %8 = arith.cmpi eq, %6, %7 : vector<128x256xi32>
    %c0_3 = arith.constant 0 : index
    %c0_4 = arith.constant 0 : index
    %c0_5 = arith.constant 0 : index
    %9 = vector.load %arg5[%c0_3, %c0_4, %c0_5] : memref<1x128x1xf32, #tpu.memory_space<vmem>>, vector<1x128x1xf32>
    %10 = vector.shape_cast %9 : vector<1x128x1xf32> to vector<128x1xf32>
    %11 = arith.extui %8 : vector<128x256xi1> to vector<128x256xi32>
    %12 = arith.sitofp %11 : vector<128x256xi32> to vector<128x256xf32>
    %cst = arith.constant dense<0.000000e+00> : vector<128xf32>
    %13 = vector.multi_reduction <add>, %12, %cst [1] : vector<128x256xf32> to vector<128xf32>
    %14 = vector.shape_cast %13 : vector<128xf32> to vector<128x1xf32>
    %15 = arith.addf %10, %14 : vector<128x1xf32>
    %c0_6 = arith.constant 0 : index
    %c0_7 = arith.constant 0 : index
    %c0_8 = arith.constant 0 : index
    %16 = vector.load %arg5[%c0_6, %c0_7, %c0_8] : memref<1x128x1xf32, #tpu.memory_space<vmem>>, vector<1x128x1xf32>
    %17 = vector.shape_cast %16 : vector<1x128x1xf32> to vector<128x1xf32>
    %18 = vector.shape_cast %15 : vector<128x1xf32> to vector<1x128x1xf32>
    tpu.vector_store %arg5[%c0_6, %c0_7, %c0_8], %18 {strides = array<i32>} : memref<1x128x1xf32, #tpu.memory_space<vmem>>, vector<1x128x1xf32>,
    %c0_9 = arith.constant 0 : index
    %c0_10 = arith.constant 0 : index
    %c0_11 = arith.constant 0 : index
    %19 = vector.load %arg4[%c0_9, %c0_10, %c0_11] : memref<1x128x128xf32, #tpu.memory_space<vmem>>, vector<1x128x128xf32>
    %20 = vector.shape_cast %19 : vector<1x128x128xf32> to vector<128x128xf32>
    %21 = arith.extui %8 : vector<128x256xi1> to vector<128x256xi32>
    %22 = arith.sitofp %21 : vector<128x256xi32> to vector<128x256xf32>
    %23 = arith.truncf %22 : vector<128x256xf32> to vector<128x256xbf16>
    %c0_12 = arith.constant 0 : index
    %c0_13 = arith.constant 0 : index
    %c0_14 = arith.constant 0 : index
    %24 = vector.load %arg3[%c0_12, %c0_13, %c0_14] : memref<1x256x128xf32, #tpu.memory_space<vmem>>, vector<1x256x128xf32>
    %25 = vector.shape_cast %24 : vector<1x256x128xf32> to vector<256x128xf32>
    %26 = arith.truncf %25 : vector<256x128xf32> to vector<256x128xbf16>
    %cst_15 = arith.constant dense<0.000000e+00> : vector<128x128xf32>
    %27 = tpu.matmul %23, %26, %cst_15 {dimension_numbers = #tpu.dot_dimension_numbers<[1], [0], [0], [1], [0, 0, 1, 1], [], []>} : vector<128x256xbf16>, vector<256x128xbf16>, vector<128x128xf32> -> vector<128x128xf32>
    %28 = arith.addf %20, %27 : vector<128x128xf32>
    %c0_16 = arith.constant 0 : index
    %c0_17 = arith.constant 0 : index
    %c0_18 = arith.constant 0 : index
    %29 = vector.load %arg4[%c0_16, %c0_17, %c0_18] : memref<1x128x128xf32, #tpu.memory_space<vmem>>, vector<1x128x128xf32>
    %30 = vector.shape_cast %29 : vector<1x128x128xf32> to vector<128x128xf32>
    %31 = vector.shape_cast %28 : vector<128x128xf32> to vector<1x128x128xf32>
    tpu.vector_store %arg4[%c0_16, %c0_17, %c0_18], %31 {strides = array<i32>} : memref<1x128x128xf32, #tpu.memory_space<vmem>>, vector<1x128x128xf32>,
    return
  }
  func.func @transform_0(%arg0: i32, %arg1: i32) -> (i32, i32, i32) {
    %c0_i32 = arith.constant 0 : i32
    %c0_i32_0 = arith.constant 0 : i32
    return %arg0, %c0_i32, %arg1 : i32, i32, i32
  }
  func.func @transform_1(%arg0: i32, %arg1: i32) -> (i32, i32, i32) {
    %c0_i32 = arith.constant 0 : i32
    %c0_i32_0 = arith.constant 0 : i32
    return %arg0, %arg1, %c0_i32 : i32, i32, i32
  }
  func.func @transform_2(%arg0: i32, %arg1: i32) -> (i32, i32, i32) {
    %c0_i32 = arith.constant 0 : i32
    %c0_i32_0 = arith.constant 0 : i32
    %c0_i32_1 = arith.constant 0 : i32
    return %arg0, %c0_i32, %c0_i32_0 : i32, i32, i32
  }
  func.func @transform_3(%arg0: i32, %arg1: i32) -> (i32, i32, i32) {
    %c0_i32 = arith.constant 0 : i32
    %c0_i32_0 = arith.constant 0 : i32
    %c0_i32_1 = arith.constant 0 : i32
    return %arg0, %c0_i32, %c0_i32_0 : i32, i32, i32
  }
}

module attributes {stable_mosaic.version = 11 : i64} {
  func.func @_inst_scatter_kernel(%arg0: i32, %arg1: i32, %arg2: memref<1x256x1xi32, #tpu.memory_space<vmem>>, %arg3: memref<1x256x128xf32, #tpu.memory_space<vmem>>, %arg4: memref<1x128x128xf32, #tpu.memory_space<vmem>>, %arg5: memref<1x256x128xf32, #tpu.memory_space<vmem>>) attributes {dimension_semantics = [#tpu.dimension_semantics<parallel>, #tpu.dimension_semantics<parallel>], iteration_bounds = array<i64: 2, 1>, scalar_prefetch = 0 : i64, scratch_operands = 0 : i64, tpu.core_type = #tpu.core_type<tc>, window_params = [{transform_indices = @transform_0, window_bounds = array<i64: 1, 256, 1>}, {transform_indices = @transform_1, window_bounds = array<i64: 1, 256, 128>}, {transform_indices = @transform_2, window_bounds = array<i64: 1, 128, 128>}, {transform_indices = @transform_3, window_bounds = array<i64: 1, 256, 128>}]} {
    %c0 = arith.constant 0 : index
    %c0_0 = arith.constant 0 : index
    %c0_1 = arith.constant 0 : index
    %0 = vector.load %arg2[%c0, %c0_0, %c0_1] : memref<1x256x1xi32, #tpu.memory_space<vmem>>, vector<1x256x1xi32>
    %1 = vector.shape_cast %0 : vector<1x256x1xi32> to vector<256x1xi32>
    %2 = tpu.iota {dimensions = array<i32: 1>} : vector<1x128xi32>
    %3 = vector.broadcast %1 : vector<256x1xi32> to vector<256x128xi32>
    %4 = vector.broadcast %2 : vector<1x128xi32> to vector<256x128xi32>
    %5 = arith.cmpi eq, %3, %4 : vector<256x128xi32>
    %6 = arith.extui %5 : vector<256x128xi1> to vector<256x128xi32>
    %7 = arith.sitofp %6 : vector<256x128xi32> to vector<256x128xf32>
    %8 = arith.truncf %7 : vector<256x128xf32> to vector<256x128xbf16>
    %c0_2 = arith.constant 0 : index
    %c0_3 = arith.constant 0 : index
    %c0_4 = arith.constant 0 : index
    %9 = vector.load %arg4[%c0_2, %c0_3, %c0_4] : memref<1x128x128xf32, #tpu.memory_space<vmem>>, vector<1x128x128xf32>
    %10 = vector.shape_cast %9 : vector<1x128x128xf32> to vector<128x128xf32>
    %11 = arith.truncf %10 : vector<128x128xf32> to vector<128x128xbf16>
    %cst = arith.constant dense<0.000000e+00> : vector<256x128xf32>
    %12 = tpu.matmul %8, %11, %cst {dimension_numbers = #tpu.dot_dimension_numbers<[1], [0], [0], [1], [0, 0, 1, 1], [], []>} : vector<256x128xbf16>, vector<128x128xbf16>, vector<256x128xf32> -> vector<256x128xf32>
    %13 = arith.extui %5 : vector<256x128xi1> to vector<256x128xi32>
    %14 = arith.sitofp %13 : vector<256x128xi32> to vector<256x128xf32>
    %cst_5 = arith.constant dense<0.000000e+00> : vector<256xf32>
    %15 = vector.multi_reduction <add>, %14, %cst_5 [1] : vector<256x128xf32> to vector<256xf32>
    %16 = vector.shape_cast %15 : vector<256xf32> to vector<256x1xf32>
    %17 = vector.broadcast %16 : vector<256x1xf32> to vector<256x128xf32>
    %18 = arith.mulf %17, %12 : vector<256x128xf32>
    %cst_6 = arith.constant 1.000000e+00 : f32
    %19 = vector.broadcast %cst_6 : f32 to vector<256x1xf32>
    %20 = arith.subf %19, %16 : vector<256x1xf32>
    %c0_7 = arith.constant 0 : index
    %c0_8 = arith.constant 0 : index
    %c0_9 = arith.constant 0 : index
    %21 = vector.load %arg3[%c0_7, %c0_8, %c0_9] : memref<1x256x128xf32, #tpu.memory_space<vmem>>, vector<1x256x128xf32>
    %22 = vector.shape_cast %21 : vector<1x256x128xf32> to vector<256x128xf32>
    %23 = vector.broadcast %20 : vector<256x1xf32> to vector<256x128xf32>
    %24 = arith.mulf %23, %22 : vector<256x128xf32>
    %25 = arith.addf %18, %24 : vector<256x128xf32>
    %c0_10 = arith.constant 0 : index
    %c0_11 = arith.constant 0 : index
    %c0_12 = arith.constant 0 : index
    %26 = vector.load %arg5[%c0_10, %c0_11, %c0_12] : memref<1x256x128xf32, #tpu.memory_space<vmem>>, vector<1x256x128xf32>
    %27 = vector.shape_cast %26 : vector<1x256x128xf32> to vector<256x128xf32>
    %28 = vector.shape_cast %25 : vector<256x128xf32> to vector<1x256x128xf32>
    tpu.vector_store %arg5[%c0_10, %c0_11, %c0_12], %28 {strides = array<i32>} : memref<1x256x128xf32, #tpu.memory_space<vmem>>, vector<1x256x128xf32>,
    return
  }
  func.func @transform_0(%arg0: i32, %arg1: i32) -> (i32, i32, i32) {
    %c0_i32 = arith.constant 0 : i32
    %c0_i32_0 = arith.constant 0 : i32
    return %arg0, %arg1, %c0_i32 : i32, i32, i32
  }
  func.func @transform_1(%arg0: i32, %arg1: i32) -> (i32, i32, i32) {
    %c0_i32 = arith.constant 0 : i32
    %c0_i32_0 = arith.constant 0 : i32
    return %arg0, %arg1, %c0_i32 : i32, i32, i32
  }
  func.func @transform_2(%arg0: i32, %arg1: i32) -> (i32, i32, i32) {
    %c0_i32 = arith.constant 0 : i32
    %c0_i32_0 = arith.constant 0 : i32
    %c0_i32_1 = arith.constant 0 : i32
    return %arg0, %c0_i32, %c0_i32_0 : i32, i32, i32
  }
  func.func @transform_3(%arg0: i32, %arg1: i32) -> (i32, i32, i32) {
    %c0_i32 = arith.constant 0 : i32
    %c0_i32_0 = arith.constant 0 : i32
    return %arg0, %arg1, %c0_i32 : i32, i32, i32
  }
}

</mosaic_0001>

<bundles_post_ra>
// kernel: tile.63
= control target key start
LH: loop header
LB: loop body
LE: loop exit
PB: predicated region body
PF: predicated region fallthrough
CT: control target
= control target key end

     0   :  { %s28_s0 = inlined_call_operand.vmem [shape: f32[8], index: 0, kind: input, shape index: {}]   ;;  %s29_s1 = inlined_call_operand.vmem [shape: f32[16,8], index: 1, kind: output, shape index: {}]  }
   0x1   :  { %v4_v0 = vld [vmem:[%s28_s0] ss:$0 sm:$0xff] }
   0x2   :  { %5 = vst [vmem:[%s29_s1] sm:$0xff] %v4_v0  ;;  %8 = vst [vmem:[%s29_s1 + $0x8] sm:$0xff] %v4_v0 }

// kernel: tile.64
= control target key start
LH: loop header
LB: loop body
LE: loop exit
PB: predicated region body
PF: predicated region fallthrough
CT: control target
= control target key end

     0   :  { %s133_s10 = smov 120   ;;  %s134_s11 = smov 104   ;;  %vm3_vm0 = vcmask 64512   ;;  %vm9_vm1 = vcmask 1048512   ;;  %vm15_vm2 = vcmask 982912   ;;  %vm21_vm3 = vcmask 917312   ;;  %s209_s0 = inlined_call_operand.vmem [shape: f32[16,8], index: 0, kind: input, shape index: {}]   ;;  %s210_s1 = inlined_call_operand.vmem [shape: f32[1,128], index: 1, kind: output, shape index: {}]  }
   0x1   :  { %v103_v0 = vld [vmem:[%s209_s0 + $0xf] sm:$0x1]   ;;  %v105_v1 = vld [vmem:[%s209_s0 + $0xd] sm:$0x1]   ;;  %v104_v2 = vld [vmem:[%s209_s0 + $0xe] sm:$0x1]  }
   0x2   :  { %7 = vrot.lane.b32.xlu0 %v103_v0, %s133_s10  ;;  %19 = vrot.lane.b32.xlu1 %v105_v1, %s134_s11  ;;  %v106_v3 = vld [vmem:[%s209_s0 + $0xc] sm:$0x1]   ;;  %s135_s16 = smov 112   ;;  %s136_s17 = smov 96   ;;  %v107_v4 = vld [vmem:[%s209_s0 + $0xb] sm:$0x1]  }
   0x3   :  { %v108_v5 = vld [vmem:[%s209_s0 + $0xa] sm:$0x1]   ;;  %v2_v6 = vld [vmem:[%s209_s0] sm:$0x1]   ;;  %s137_s24 = smov 88   ;;  %s138_s25 = smov 80  }
   0x4   :  { %4 = vst.msk [vmem:[#allocation0] sm:$0x1] %vm3_vm0, %v2_v6   ;;  %v109_v7 = vld [vmem:[%s209_s0 + $0x9] sm:$0x1]   ;;  %v110_v8 = vld [vmem:[%s209_s0 + $0x8] sm:$0x1]  }
   0x5   :  { %s139_s30 = smov 72   ;;  %s140_s2 = smov 64   ;;  %v111_v9 = vld [vmem:[%s209_s0 + $0x7] sm:$0x1]   ;;  %v112_v10 = vld [vmem:[%s209_s0 + $0x6] sm:$0x1]  }
   0x6   :  { %13 = vrot.lane.b32.xlu0 %v104_v2, %s135_s16  ;;  %25 = vrot.lane.b32.xlu1 %v106_v3, %s136_s17  ;;  %s141_s7 = smov 56   ;;  %s142_s8 = smov 48   ;;  %v113_v11 = vld [vmem:[%s209_s0 + $0x5] sm:$0x1]   ;;  %v114_v12 = vld [vmem:[%s209_s0 + $0x4] sm:$0x1]  }
   0x7   :  { %s143_s13 = smov 40   ;;  %s144_s14 = smov 32   ;;  %v115_v13 = vld [vmem:[%s209_s0 + $0x3] sm:$0x1]   ;;  %v116_v14 = vld [vmem:[%s209_s0 + $0x2] sm:$0x1]  }
   0x8   :  { %s145_s19 = smov 24   ;;  %s146_s20 = smov 16   ;;  %v117_v15 = vld [vmem:[%s209_s0 + $0x1] sm:$0x1]   ;;  %vm27_vm4 = vcmask 851712   ;;  %vm33_vm5 = vcmask 786112  }
   0x9   :  { %s147_s0 = smov 8   ;;  %vm39_vm6 = vcmask 720512   ;;  %vm45_vm7 = vcmask 654912   ;;  %vm51_vm8 = vcmask 589312   ;;  %vm57_vm9 = vcmask 523712  }
   0xa   :  { %31 = vrot.lane.b32.xlu0 %v107_v4, %s137_s24  ;;  %37 = vrot.lane.b32.xlu1 %v108_v5, %s138_s25  ;;  %vm63_vm10 = vcmask 458112   ;;  %vm69_vm11 = vcmask 392512   ;;  %vm75_vm12 = vcmask 326912   ;;  %vm81_vm13 = vcmask 261312  }
   0xb   :  { %vm87_vm14 = vcmask 195712   ;;  %vm93_vm15 = vcmask 130112  }
   0xe   :  { %43 = vrot.lane.b32.xlu0 %v109_v7, %s139_s30  ;;  %49 = vrot.lane.b32.xlu1 %v110_v8, %s140_s2 }
  0x12   :  { %55 = vrot.lane.b32.xlu0 %v111_v9, %s141_s7  ;;  %61 = vrot.lane.b32.xlu1 %v112_v10, %s142_s8 }
  0x16   :  { %67 = vrot.lane.b32.xlu0 %v113_v11, %s143_s13  ;;  %73 = vrot.lane.b32.xlu1 %v114_v12, %s144_s14 }
  0x1a   :  { %79 = vrot.lane.b32.xlu0 %v115_v13, %s145_s19  ;;  %85 = vrot.lane.b32.xlu1 %v116_v14, %s146_s20 }
  0x1e   :  { %91 = vrot.lane.b32.xlu0 %v117_v15, %s147_s0 }
  0x74   :  { %v8_v16 = vpop.permute.xlu0 %7   ;;  %v20_v17 = vpop.permute.xlu1 %19  }
  0x75   :  { %10 = vst.msk [vmem:[#allocation0] sm:$0x1] %vm9_vm1, %v8_v16  }
  0x78   :  { %v14_v18 = vpop.permute.xlu0 %13   ;;  %v26_v19 = vpop.permute.xlu1 %25  }
  0x79   :  { %16 = vst.msk [vmem:[#allocation0] sm:$0x1] %vm15_vm2, %v14_v18  }
  0x7a   :  { %22 = vst.msk [vmem:[#allocation0] sm:$0x1] %vm21_vm3, %v20_v17  }
  0x7b   :  { %28 = vst.msk [vmem:[#allocation0] sm:$0x1] %vm27_vm4, %v26_v19  }
  0x7c   :  { %v32_v20 = vpop.permute.xlu0 %31   ;;  %v38_v21 = vpop.permute.xlu1 %37  }
  0x7d   :  { %34 = vst.msk [vmem:[#allocation0] sm:$0x1] %vm33_vm5, %v32_v20  }
  0x7e   :  { %40 = vst.msk [vmem:[#allocation0] sm:$0x1] %vm39_vm6, %v38_v21  }
  0x80   :  { %v44_v22 = vpop.permute.xlu0 %43   ;;  %v50_v23 = vpop.permute.xlu1 %49  }
  0x81   :  { %46 = vst.msk [vmem:[#allocation0] sm:$0x1] %vm45_vm7, %v44_v22  }
  0x82   :  { %52 = vst.msk [vmem:[#allocation0] sm:$0x1] %vm51_vm8, %v50_v23  }
  0x84   :  { %v56_v24 = vpop.permute.xlu0 %55   ;;  %v62_v25 = vpop.permute.xlu1 %61  }
  0x85   :  { %58 = vst.msk [vmem:[#allocation0] sm:$0x1] %vm57_vm9, %v56_v24  }
  0x86   :  { %64 = vst.msk [vmem:[#allocation0] sm:$0x1] %vm63_vm10, %v62_v25  }
  0x88   :  { %v68_v26 = vpop.permute.xlu0 %67   ;;  %v74_v27 = vpop.permute.xlu1 %73  }
  0x89   :  { %70 = vst.msk [vmem:[#allocation0] sm:$0x1] %vm69_vm11, %v68_v26  }
  0x8a   :  { %76 = vst.msk [vmem:[#allocation0] sm:$0x1] %vm75_vm12, %v74_v27  }
  0x8c   :  { %v80_v28 = vpop.permute.xlu0 %79   ;;  %v86_v29 = vpop.permute.xlu1 %85  }
  0x8d   :  { %82 = vst.msk [vmem:[#allocation0] sm:$0x1] %vm81_vm13, %v80_v28  }
  0x8e   :  { %88 = vst.msk [vmem:[#allocation0] sm:$0x1] %vm87_vm14, %v86_v29  }
  0x90   :  { %v92_v30 = vpop.permute.xlu0 %91  }
  0x91   :  { %94 = vst.msk [vmem:[#allocation0] sm:$0x1] %vm93_vm15, %v92_v30  }
  0x98   :  { %v99_v31 = vld [vmem:[#allocation0] sm:$0x1] }
  0x99   :  { %102 = vst [vmem:[%s210_s1] sm:$0x1] %v99_v31 }

// kernel: encoder_forward.13
= control target key start
LH: loop header
LB: loop body
LE: loop exit
PB: predicated region body
PF: predicated region fallthrough
CT: control target
= control target key end

     0   :  { %s1914_s15 = smov 0   ;;  %s1916_s16 = smov 0   ;;  %s2228_s0 = inlined_call_operand.vmem [shape: bf16[512,256], index: 0, kind: input, shape index: {}]   ;;  %s2229_s1 = inlined_call_operand.vmem [shape: bf16[256,128], index: 1, kind: input, shape index: {}]   ;;  %s2230_s2 = inlined_call_operand.vmem [shape: f32[1,128], index: 2, kind: input, shape index: {}]   ;;  %s2231_s3 = inlined_call_operand.vmem [shape: bf16[512,128], index: 3, kind: output, shape index: {0}]   ;;  %s2232_s4 = inlined_call_operand.vmem [shape: f32[2,2,128], index: 4, kind: output, shape index: {1}]  }
   0x1   :  { %s1918_s17 = smov 0  }
   0x2 LB: > { %s34_s18 = sadd.s32 1, %s1883_s16  ;;  %p1431_p0 = scmp.ge.s32.totalorder %s1887_s17, 1  ;;  %s1887_s17 = sphi %s1918_s17, %s15_s17   ;;  %s1883_s16 = sphi %s1916_s16, %s2234_s16   ;;  %s1879_s15 = sphi %s1914_s15, %s2233_s15  }
   0x3   : > { %p36_p1 = scmp.ge.s32.totalorder %s34_s18, 2  ;;  %p221_p2 = scmp.lt.s32.totalorder %s1887_s17, 3 }
   0x5   : > { %s2236_s18 = smov (%p36_p1, %s34_s18), 0  ;;  %p222_p3 = pnand %p1431_p0, %p221_p2 }
   0x6   : > { %s1432_s21 = sshll.u32 (!%p222_p3), %s1879_s15, 5  ;;  %p306_p5 = scmp.lt.s32.totalorder (!%p222_p3), %s1879_s15, 1 }
   0x7   : > { %225 = sbr.rel (%p222_p3) target bundleno = 352 (0x160), region = 32  ;;  %p275_p4 = scmp.lt.s32.totalorder (!%p222_p3), %s1432_s21, 63 }
   0xc   : > { %v1801_v0 = vld [vmem:[%s2229_s1 + $0x78] sm:$0xff]   ;;  %v1803_v2 = vld [vmem:[%s2229_s1 + $0x70] sm:$0xff]   ;;  %v1805_v4 = vld [vmem:[%s2229_s1 + $0x68] sm:$0xff]   ;;  %s2238_s21 = smov (!%p275_p4, %s1432_s21), 63  ;;  %s2240_s15 = smov (!%p306_p5, %s1879_s15), 1  ;;  %vm1267_vm0 = vcmask 1040384  }
   0xd   : > { %v1802_v1 = vld [vmem:[%s2229_s1 + $0x38] sm:$0xff]   ;;  %1649 = vmatprep.subr.bf16.mxu0 %v1801_v0  ;;  %1761 = vmatprep.subr.bf16.mxu1 %v1801_v0  ;;  %v1804_v3 = vld [vmem:[%s2229_s1 + $0x30] sm:$0xff]   ;;  %v1806_v5 = vld [vmem:[%s2229_s1 + $0x28] sm:$0xff]   ;;  %s1521_s10 = sshll.u32 %s2238_s21, 3  ;;  %s1436_s11 = sshll.u32 %s2238_s21, 2 }
   0xe   : > { %1650 = vmatpush3.bf16.msra.mxu0 %v1802_v1  ;;  %1769 = vmatpush3.bf16.msra.mxu1 %v1802_v1  ;;  %v1807_v6 = vld [vmem:[%s2229_s1 + $0x60] sm:$0xff]   ;;  %v1809_v8 = vld [vmem:[%s2229_s1 + $0x58] sm:$0xff]   ;;  %s1968_s19 = scalar_lea.vmem %s2228_s0, %s1521_s10  ;;  %v1811_v10 = vld [vmem:[%s2229_s1 + $0x50] sm:$0xff]   ;;  %s2046_s21 = scalar_lea.vmem %s2231_s3, %s1436_s11 }
   0xf   : > { %1651 = vmatprep.subr.bf16.mxu0 %v1803_v2  ;;  %1762 = vmatprep.subr.bf16.mxu1 %v1803_v2  ;;  %v1808_v7 = vld [vmem:[%s2229_s1 + $0x20] sm:$0xff]   ;;  %v1810_v9 = vld [vmem:[%s2229_s1 + $0x18] sm:$0xff]   ;;  %v1812_v12 = vld [vmem:[%s2229_s1 + $0x10] sm:$0xff]   ;;  %s1437_s14 = sshll.u32 %s2240_s15, 1 }
  0x10   : > { %v1819_v11 = vld [vmem:[%s1968_s19 + $0x4] ss:$8 sps:$4 sm:$0xff]   ;;  %v1817_v18 = vld [vmem:[%s1968_s19] ss:$8 sps:$4 sm:$0xff]   ;;  %v1820_v19 = vld [vmem:[%s1968_s19 + $0x14] ss:$8 sps:$4 sm:$0xff]   ;;  %s312_s22 = scalar_lea.vmem %s2232_s4, %s1437_s14 }
  0x11   : > { %734 = vmatprep.mubr.bf16.mxu0 %v1819_v11  ;;  %v1813_v13 = vld [vmem:[%s2229_s1 + $0x48] sm:$0xff]   ;;  %v1815_v16 = vld [vmem:[%s2229_s1 + $0x40] sm:$0xff]   ;;  %v1835_v21 = vld [vmem:[%s1968_s19 + $0x94] ss:$8 sps:$4 sm:$0xff]  }
  0x12   : > { %1652 = vmatpush3.bf16.msra.mxu0 %v1804_v3  ;;  %1770 = vmatpush3.bf16.msra.mxu1 %v1804_v3  ;;  %v1831_v14 = vld [vmem:[%s1968_s19 + $0x84] ss:$8 sps:$4 sm:$0xff]   ;;  %v1829_v20 = vld [vmem:[%s1968_s19 + $0x80] ss:$8 sps:$4 sm:$0xff]   ;;  %v1822_v22 = vld [vmem:[%s1968_s19 + $0x10] ss:$8 sps:$4 sm:$0xff]  }
  0x13   : > { %1653 = vmatprep.subr.bf16.mxu0 %v1805_v4  ;;  %1763 = vmatprep.subr.bf16.mxu1 %v1805_v4  ;;  %v1814_v15 = vld [vmem:[%s2229_s1 + $0x8] sm:$0xff]   ;;  %v1816_v17 = vld [vmem:[%s2229_s1] sm:$0xff]   ;;  %v1837_v24 = vld [vmem:[%s1968_s19 + $0x90] ss:$8 sps:$4 sm:$0xff]  }
  0x14   : > { %798 = vmatprep.mubr.bf16.mxu1 %v1831_v14  ;;  %v1823_v23 = vld [vmem:[%s1968_s19 + $0x24] ss:$8 sps:$4 sm:$0xff]   ;;  %v1825_v26 = vld [vmem:[%s1968_s19 + $0x20] ss:$8 sps:$4 sm:$0xff]   ;;  %v1826_v27 = vld [vmem:[%s1968_s19 + $0x34] ss:$8 sps:$4 sm:$0xff]  }
  0x15   : > { %v1841_v25 = vld [vmem:[%s1968_s19 + $0xa4] ss:$8 sps:$4 sm:$0xff]   ;;  %v1843_v28 = vld [vmem:[%s1968_s19 + $0xa0] ss:$8 sps:$4 sm:$0xff]   ;;  %v1847_v29 = vld [vmem:[%s1968_s19 + $0xb4] ss:$8 sps:$4 sm:$0xff]  }
  0x16   : > { %1654 = vmatpush3.bf16.msra.mxu0 %v1806_v5  ;;  %1771 = vmatpush3.bf16.msra.mxu1 %v1806_v5  ;;  %v1828_v30 = vld [vmem:[%s1968_s19 + $0x30] ss:$8 sps:$4 sm:$0xff]   ;;  %v1832_v31 = vld [vmem:[%s1968_s19 + $0x44] ss:$8 sps:$4 sm:$0xff]   ;;  %v1834_v34 = vld [vmem:[%s1968_s19 + $0x40] ss:$8 sps:$4 sm:$0xff]  }
  0x17   : > { %1655 = vmatprep.subr.bf16.mxu0 %v1807_v6  ;;  %1764 = vmatprep.subr.bf16.mxu1 %v1807_v6  ;;  %v1849_v32 = vld [vmem:[%s1968_s19 + $0xb0] ss:$8 sps:$4 sm:$0xff]   ;;  %v1853_v33 = vld [vmem:[%s1968_s19 + $0xc4] ss:$8 sps:$4 sm:$0xff]   ;;  %v1838_v35 = vld [vmem:[%s1968_s19 + $0x54] ss:$8 sps:$4 sm:$0xff]  }
  0x18   : > { %v1855_v36 = vld [vmem:[%s1968_s19 + $0xc0] ss:$8 sps:$4 sm:$0xff]   ;;  %v1856_v37 = vld [vmem:[%s1968_s19 + $0xd4] ss:$8 sps:$4 sm:$0xff]   ;;  %v1840_v38 = vld [vmem:[%s1968_s19 + $0x50] ss:$8 sps:$4 sm:$0xff]  }
  0x19   : > { %v1844_v39 = vld [vmem:[%s1968_s19 + $0x64] ss:$8 sps:$4 sm:$0xff]   ;;  %v1858_v40 = vld [vmem:[%s1968_s19 + $0xd0] ss:$8 sps:$4 sm:$0xff]   ;;  %v1846_v42 = vld [vmem:[%s1968_s19 + $0x60] ss:$8 sps:$4 sm:$0xff]  }
  0x1a   : > { %1656 = vmatpush3.bf16.msra.mxu0 %v1808_v7  ;;  %1772 = vmatpush3.bf16.msra.mxu1 %v1808_v7  ;;  %v1859_v41 = vld [vmem:[%s1968_s19 + $0xe4] ss:$8 sps:$4 sm:$0xff]   ;;  %v1850_v43 = vld [vmem:[%s1968_s19 + $0x74] ss:$8 sps:$4 sm:$0xff]   ;;  %v1861_v44 = vld [vmem:[%s1968_s19 + $0xe0] ss:$8 sps:$4 sm:$0xff]  }
  0x1b   : > { %1657 = vmatprep.subr.bf16.mxu0 %v1809_v8  ;;  %1765 = vmatprep.subr.bf16.mxu1 %v1809_v8  ;;  %v1862_v45 = vld [vmem:[%s1968_s19 + $0xf4] ss:$8 sps:$4 sm:$0xff]   ;;  %v1852_v46 = vld [vmem:[%s1968_s19 + $0x70] ss:$8 sps:$4 sm:$0xff]   ;;  %v2030_v56 = vld [vmem:[%s2230_s2] ss:$0 sm:$0xff] }
  0x1c   : > { %v1864_v47 = vld [vmem:[%s1968_s19 + $0xf0] ss:$8 sps:$4 sm:$0xff]  }
  0x1e   : > { %1658 = vmatpush3.bf16.msra.mxu0 %v1810_v9  ;;  %1773 = vmatpush3.bf16.msra.mxu1 %v1810_v9 }
  0x1f   : > { %1659 = vmatprep.subr.bf16.mxu0 %v1811_v10  ;;  %1766 = vmatprep.subr.bf16.mxu1 %v1811_v10 }
  0x22   : > { %1660 = vmatpush3.bf16.msra.mxu0 %v1812_v12  ;;  %1774 = vmatpush3.bf16.msra.mxu1 %v1812_v12 }
  0x23   : > { %1661 = vmatprep.subr.bf16.mxu0 %v1813_v13  ;;  %1767 = vmatprep.subr.bf16.mxu1 %v1813_v13 }
  0x26   : > { %1662 = vmatpush3.bf16.msra.mxu0 %v1814_v15  ;;  %1775 = vmatpush3.bf16.msra.mxu1 %v1814_v15 }
  0x27   : > { %1663 = vmatprep.subr.bf16.mxu0 %v1815_v16  ;;  %1768 = vmatprep.subr.bf16.mxu1 %v1815_v16 }
  0x2a   : > { %1664 = vmatpush3.bf16.msra.mxu0 %v1816_v17  ;;  %1776 = vmatpush3.bf16.msra.mxu1 %v1816_v17 }
  0x2d   : > { %735 = vmatmul.mubr.bf16.vlgmr.msra.gmra.mxu0 %v1817_v18  ;;  %799 = vmatmul.mubr.bf16.vlgmr.msra.gmra.mxu1 %v1829_v20 }
  0x2e   : > { %742 = vmatprep.mubr.bf16.mxu0 %v1820_v19  ;;  %806 = vmatprep.mubr.bf16.mxu1 %v1835_v21 }
  0x35   : > { %743 = vmatmul.mubr.bf16.gmra.mxu0 %v1822_v22  ;;  %807 = vmatmul.mubr.bf16.gmra.mxu1 %v1837_v24 }
  0x36   : > { %750 = vmatprep.mubr.bf16.mxu0 %v1823_v23  ;;  %814 = vmatprep.mubr.bf16.mxu1 %v1841_v25 }
  0x3d   : > { %751 = vmatmul.mubr.bf16.gmra.mxu0 %v1825_v26  ;;  %815 = vmatmul.mubr.bf16.gmra.mxu1 %v1843_v28 }
  0x3e   : > { %758 = vmatprep.mubr.bf16.mxu0 %v1826_v27  ;;  %822 = vmatprep.mubr.bf16.mxu1 %v1847_v29 }
  0x45   : > { %759 = vmatmul.mubr.bf16.gmra.mxu0 %v1828_v30  ;;  %823 = vmatmul.mubr.bf16.gmra.mxu1 %v1849_v32 }
  0x46   : > { %766 = vmatprep.mubr.bf16.mxu0 %v1832_v31  ;;  %830 = vmatprep.mubr.bf16.mxu1 %v1853_v33 }
  0x4d   : > { %767 = vmatmul.mubr.bf16.gmra.mxu0 %v1834_v34  ;;  %831 = vmatmul.mubr.bf16.gmra.mxu1 %v1855_v36 }
  0x4e   : > { %774 = vmatprep.mubr.bf16.mxu0 %v1838_v35  ;;  %838 = vmatprep.mubr.bf16.mxu1 %v1856_v37 }
  0x55   : > { %775 = vmatmul.mubr.bf16.gmra.mxu0 %v1840_v38  ;;  %839 = vmatmul.mubr.bf16.gmra.mxu1 %v1858_v40 }
  0x56   : > { %782 = vmatprep.mubr.bf16.mxu0 %v1844_v39  ;;  %846 = vmatprep.mubr.bf16.mxu1 %v1859_v41 }
  0x5d   : > { %783 = vmatmul.mubr.bf16.gmra.mxu0 %v1846_v42  ;;  %847 = vmatmul.mubr.bf16.gmra.mxu1 %v1861_v44 }
  0x5e   : > { %790 = vmatprep.mubr.bf16.mxu0 %v1850_v43  ;;  %854 = vmatprep.mubr.bf16.mxu1 %v1862_v45 }
  0x65   : > { %791 = vmatmul.mubr.bf16.gmra.mxu0 %v1852_v46  ;;  %855 = vmatmul.mubr.bf16.gmra.mxu1 %v1864_v47 }
  0xed   : > { %v1665_v48 = vpop.f32.mrf.mxu0  ;;  %v1713_v49 = vpop.f32.mrf.mxu1 }
  0xef   : > { %v1666_v50 = vpop.f32.mrf.mxu0  ;;  %v1714_v51 = vpop.f32.mrf.mxu1 }
  0xf0   : > { %v2023_v53 = vadd.f32 %v1714_v51, %v1713_v49  ;;  %v2025_v54 = vadd.f32 %v1666_v50, %v1665_v48 }
  0xf1   : > { %v1668_v52 = vpop.f32.mrf.mxu0  ;;  %v1716_v55 = vpop.f32.mrf.mxu1 }
  0xf2   : > { %v985_v61 = vadd.f32 %v2023_v53, %v2030_v56  ;;  %v969_v63 = vadd.f32 %v2025_v54, %v2030_v56 }
  0xf3   : > { %v1669_v57 = vpop.f32.mrf.mxu0  ;;  %v1717_v59 = vpop.f32.mrf.mxu1 }
  0xf4   : > { %v2033_v58 = vadd.f32 %v1669_v57, %v1668_v52  ;;  %v2037_v62 = vadd.f32 %v1717_v59, %v1716_v55 }
  0xf5   : > { %v1671_v60 = vpop.f32.mrf.mxu0  ;;  %v1719_v1 = vpop.f32.mrf.mxu1 }
  0xf6   : > { %v970_v0 = vadd.f32 %v2033_v58, %v2030_v56  ;;  %v986_v3 = vadd.f32 %v2037_v62, %v2030_v56 }
  0xf7   : > { %v1672_v2 = vpop.f32.mrf.mxu0  ;;  %v1720_v5 = vpop.f32.mrf.mxu1 }
  0xf8   : > { %v1557_v4 = vpack.c.bf16 %v970_v0, %v969_v63  ;;  %v1597_v7 = vpack.c.bf16 %v986_v3, %v985_v61  ;;  %v2050_v8 = vadd.f32 %v1720_v5, %v1719_v1  ;;  %v2053_v9 = vadd.f32 %v1672_v2, %v1671_v60 }
  0xf9   : > { %v1674_v6 = vpop.f32.mrf.mxu0  ;;  %v1722_v10 = vpop.f32.mrf.mxu1  ;;  %v1199_v60 = vmul.f32 %v2033_v58, %v2033_v58  ;;  %v1198_v2 = vmul.f32 %v2025_v54, %v2025_v54 }
  0xfa   : > { %1558 = vst [vmem:[%s2046_s21] sm:$0xff] %v1557_v4   ;;  %1641 = vst [vmem:[%s2046_s21 + $0x40] sm:$0xff] %v1597_v7   ;;  %v987_v15 = vadd.f32 %v2050_v8, %v2030_v56  ;;  %v971_v17 = vadd.f32 %v2053_v9, %v2030_v56  ;;  %v1200_v3 = vmul.f32 %v2053_v9, %v2053_v9 }
  0xfb   : > { %v1675_v11 = vpop.f32.mrf.mxu0  ;;  %v1723_v13 = vpop.f32.mrf.mxu1  ;;  %v1161_v7 = vadd.f32 %v2033_v58, %v2025_v54 }
  0xfc   : > { %v2056_v12 = vadd.f32 %v1675_v11, %v1674_v6  ;;  %v2060_v16 = vadd.f32 %v1723_v13, %v1722_v10  ;;  %v1230_v13 = vadd.f32 %v1199_v60, %v1198_v2 }
  0xfd   : > { %v1677_v14 = vpop.f32.mrf.mxu0  ;;  %v1725_v19 = vpop.f32.mrf.mxu1 }
  0xfe   : > { %v972_v18 = vadd.f32 %v2056_v12, %v2030_v56  ;;  %v988_v21 = vadd.f32 %v2060_v16, %v2030_v56 }
  0xff   : > { %v1678_v20 = vpop.f32.mrf.mxu0  ;;  %v1726_v23 = vpop.f32.mrf.mxu1 }
 0x100   : > { %v1562_v22 = vpack.c.bf16 %v972_v18, %v971_v17  ;;  %v1602_v25 = vpack.c.bf16 %v988_v21, %v987_v15  ;;  %v2068_v26 = vadd.f32 %v1726_v23, %v1725_v19  ;;  %v2071_v27 = vadd.f32 %v1678_v20, %v1677_v14 }
 0x101   : > { %v1680_v24 = vpop.f32.mrf.mxu0  ;;  %v1728_v28 = vpop.f32.mrf.mxu1  ;;  %v1201_v14 = vmul.f32 %v2056_v12, %v2056_v12  ;;  %v1162_v17 = vadd.f32 %v2053_v9, %v1161_v7  ;;  %v1231_v20 = vadd.f32 %v1230_v13, %v1200_v3 }
 0x102   : > { %1634 = vst [vmem:[%s2046_s21 + $0x8] sm:$0xff] %v1562_v22   ;;  %1642 = vst [vmem:[%s2046_s21 + $0x48] sm:$0xff] %v1602_v25   ;;  %v989_v33 = vadd.f32 %v2068_v26, %v2030_v56  ;;  %v973_v35 = vadd.f32 %v2071_v27, %v2030_v56  ;;  %v1202_v21 = vmul.f32 %v2071_v27, %v2071_v27 }
 0x103   : > { %v1681_v29 = vpop.f32.mrf.mxu0  ;;  %v1729_v31 = vpop.f32.mrf.mxu1  ;;  %v1163_v23 = vadd.f32 %v2056_v12, %v1162_v17 }
 0x104   : > { %v2074_v30 = vadd.f32 %v1681_v29, %v1680_v24  ;;  %v2078_v34 = vadd.f32 %v1729_v31, %v1728_v28  ;;  %v1232_v28 = vadd.f32 %v1231_v20, %v1201_v14 }
 0x105   : > { %v1683_v32 = vpop.f32.mrf.mxu0  ;;  %v1731_v37 = vpop.f32.mrf.mxu1 }
 0x106   : > { %v974_v36 = vadd.f32 %v2074_v30, %v2030_v56  ;;  %v990_v39 = vadd.f32 %v2078_v34, %v2030_v56  ;;  %v1203_v29 = vmul.f32 %v2074_v30, %v2074_v30  ;;  %v1233_v12 = vadd.f32 %v1232_v28, %v1202_v21 }
 0x107   : > { %v1684_v38 = vpop.f32.mrf.mxu0  ;;  %v1732_v41 = vpop.f32.mrf.mxu1 }
 0x108   : > { %v1567_v40 = vpack.c.bf16 %v974_v36, %v973_v35  ;;  %v1607_v43 = vpack.c.bf16 %v990_v39, %v989_v33  ;;  %v2086_v44 = vadd.f32 %v1732_v41, %v1731_v37  ;;  %v1685_v45 = vadd.f32 %v1684_v38, %v1683_v32 }
 0x109   : > { %v1686_v42 = vpop.f32.mrf.mxu0  ;;  %v1734_v46 = vpop.f32.mrf.mxu1  ;;  %v1164_v33 = vadd.f32 %v2071_v27, %v1163_v23 }
 0x10a   : > { %1635 = vst [vmem:[%s2046_s21 + $0x10] sm:$0xff] %v1567_v40   ;;  %1643 = vst [vmem:[%s2046_s21 + $0x50] sm:$0xff] %v1607_v43   ;;  %v991_v51 = vadd.f32 %v2086_v44, %v2030_v56  ;;  %v975_v55 = vadd.f32 %v1685_v45, %v2030_v56  ;;  %v1204_v37 = vmul.f32 %v1685_v45, %v1685_v45 }
 0x10b   : > { %v1687_v47 = vpop.f32.mrf.mxu0  ;;  %v1735_v49 = vpop.f32.mrf.mxu1  ;;  %v1165_v41 = vadd.f32 %v2074_v30, %v1164_v33 }
 0x10c   : > { %v2090_v48 = vadd.f32 %v1687_v47, %v1686_v42  ;;  %v2094_v52 = vadd.f32 %v1735_v49, %v1734_v46  ;;  %v1234_v46 = vadd.f32 %v1233_v12, %v1203_v29 }
 0x10d   : > { %v1689_v50 = vpop.f32.mrf.mxu0  ;;  %v1737_v59 = vpop.f32.mrf.mxu1  ;;  %v1166_v27 = vadd.f32 %v1685_v45, %v1165_v41 }
 0x10e   : > { %v976_v57 = vadd.f32 %v2090_v48, %v2030_v56  ;;  %v992_v63 = vadd.f32 %v2094_v52, %v2030_v56  ;;  %v1205_v47 = vmul.f32 %v2090_v48, %v2090_v48 }
 0x10f   : > { %v1690_v61 = vpop.f32.mrf.mxu0  ;;  %v1738_v1 = vpop.f32.mrf.mxu1  ;;  %v1167_v30 = vadd.f32 %v2090_v48, %v1166_v27 }
 0x110   : > { %v1572_v0 = vpack.c.bf16 %v976_v57, %v975_v55  ;;  %v1612_v5 = vpack.c.bf16 %v992_v63, %v991_v51  ;;  %v2107_v6 = vadd.f32 %v1738_v1, %v1737_v59  ;;  %v1691_v10 = vadd.f32 %v1690_v61, %v1689_v50 }
 0x111   : > { %v1692_v4 = vpop.f32.mrf.mxu0  ;;  %v1740_v11 = vpop.f32.mrf.mxu1  ;;  %v1235_v55 = vadd.f32 %v1234_v46, %v1204_v37 }
 0x112   : > { %1636 = vst [vmem:[%s2046_s21 + $0x18] sm:$0xff] %v1572_v0   ;;  %1644 = vst [vmem:[%s2046_s21 + $0x58] sm:$0xff] %v1612_v5   ;;  %v993_v54 = vadd.f32 %v2107_v6, %v2030_v56  ;;  %v977_v24 = vadd.f32 %v1691_v10, %v2030_v56  ;;  %v1206_v57 = vmul.f32 %v1691_v10, %v1691_v10 }
 0x113   : > { %v1693_v15 = vpop.f32.mrf.mxu0  ;;  %v1741_v19 = vpop.f32.mrf.mxu1  ;;  %v1236_v2 = vadd.f32 %v1235_v55, %v1205_v47  ;;  %v1168_v5 = vadd.f32 %v1691_v10, %v1167_v30 }
 0x114   : > { %v1694_v18 = vadd.f32 %v1693_v15, %v1692_v4  ;;  %v2120_v58 = vadd.f32 %v1741_v19, %v1740_v11 }
 0x115   : > { %v1695_v22 = vpop.f32.mrf.mxu0  ;;  %v1743_v9 = vpop.f32.mrf.mxu1  ;;  %v1237_v13 = vadd.f32 %v1236_v2, %v1206_v57 }
 0x116   : > { %v978_v25 = vadd.f32 %v1694_v18, %v2030_v56  ;;  %v994_v32 = vadd.f32 %v2120_v58, %v2030_v56  ;;  %v1207_v45 = vmul.f32 %v1694_v18, %v1694_v18  ;;  %v1169_v19 = vadd.f32 %v1694_v18, %v1168_v5 }
 0x117   : > { %v1696_v31 = vpop.f32.mrf.mxu0  ;;  %v1744_v36 = vpop.f32.mrf.mxu1 }
 0x118   : > { %v1577_v35 = vpack.c.bf16 %v978_v25, %v977_v24  ;;  %v1617_v39 = vpack.c.bf16 %v994_v32, %v993_v54  ;;  %v2130_v40 = vadd.f32 %v1744_v36, %v1743_v9  ;;  %v1697_v42 = vadd.f32 %v1696_v31, %v1695_v22 }
 0x119   : > { %v1698_v38 = vpop.f32.mrf.mxu0  ;;  %v1746_v43 = vpop.f32.mrf.mxu1  ;;  %v1238_v22 = vadd.f32 %v1237_v13, %v1207_v45  ;;  %v1214_v13 = vmul.f32 %v2023_v53, %v2023_v53 }
 0x11a   : > { %1637 = vst [vmem:[%s2046_s21 + $0x20] sm:$0xff] %v1577_v35   ;;  %1645 = vst [vmem:[%s2046_s21 + $0x60] sm:$0xff] %v1617_v39   ;;  %v995_v60 = vadd.f32 %v2130_v40, %v2030_v56  ;;  %v979_v63 = vadd.f32 %v1697_v42, %v2030_v56  ;;  %v1208_v14 = vmul.f32 %v1697_v42, %v1697_v42 }
 0x11b   : > { %v1699_v49 = vpop.f32.mrf.mxu0  ;;  %v1747_v51 = vpop.f32.mrf.mxu1  ;;  %v1170_v24 = vadd.f32 %v1697_v42, %v1169_v19 }
 0x11c   : > { %v1700_v50 = vadd.f32 %v1699_v49, %v1698_v38  ;;  %v2139_v61 = vadd.f32 %v1747_v51, %v1746_v43  ;;  %v1239_v10 = vadd.f32 %v1238_v22, %v1208_v14 }
 0x11d   : > { %v1701_v59 = vpop.f32.mrf.mxu0  ;;  %v1749_v1 = vpop.f32.mrf.mxu1 }
 0x11e   : > { %v980_v0 = vadd.f32 %v1700_v50, %v2030_v56  ;;  %v996_v4 = vadd.f32 %v2139_v61, %v2030_v56  ;;  %v1209_v54 = vmul.f32 %v1700_v50, %v1700_v50  ;;  %v1171_v32 = vadd.f32 %v1700_v50, %v1170_v24 }
 0x11f   : > { %v1702_v3 = vpop.f32.mrf.mxu0  ;;  %v1750_v11 = vpop.f32.mrf.mxu1  ;;  %v1217_v24 = vmul.f32 %v2060_v16, %v2060_v16 }
 0x120   : > { %v1582_v7 = vpack.c.bf16 %v980_v0, %v979_v63  ;;  %v1622_v48 = vpack.c.bf16 %v996_v4, %v995_v60  ;;  %v2146_v17 = vadd.f32 %v1750_v11, %v1749_v1  ;;  %v1703_v20 = vadd.f32 %v1702_v3, %v1701_v59 }
 0x121   : > { %v1704_v15 = vpop.f32.mrf.mxu0  ;;  %v1752_v21 = vpop.f32.mrf.mxu1  ;;  %v1240_v12 = vadd.f32 %v1239_v10, %v1209_v54  ;;  %v1216_v54 = vmul.f32 %v2050_v8, %v2050_v8 }
 0x122   : > { %1638 = vst [vmem:[%s2046_s21 + $0x28] sm:$0xff] %v1582_v7   ;;  %1646 = vst [vmem:[%s2046_s21 + $0x68] sm:$0xff] %v1622_v48   ;;  %v997_v29 = vadd.f32 %v2146_v17, %v2030_v56  ;;  %v981_v18 = vadd.f32 %v1703_v20, %v2030_v56  ;;  %v1210_v33 = vmul.f32 %v1703_v20, %v1703_v20 }
 0x123   : > { %v1705_v23 = vpop.f32.mrf.mxu0  ;;  %v1753_v9 = vpop.f32.mrf.mxu1  ;;  %v1172_v39 = vadd.f32 %v1703_v20, %v1171_v32  ;;  %v1215_v20 = vmul.f32 %v2037_v62, %v2037_v62 }
 0x124   : > { %v1706_v25 = vadd.f32 %v1705_v23, %v1704_v15  ;;  %v2152_v31 = vadd.f32 %v1753_v9, %v1752_v21  ;;  %v1241_v50 = vadd.f32 %v1240_v12, %v1210_v33  ;;  %v1218_v9 = vmul.f32 %v2068_v26, %v2068_v26 }
 0x125   : > { %v1707_v28 = vpop.f32.mrf.mxu0  ;;  %v1755_v36 = vpop.f32.mrf.mxu1 }
 0x126   : > { %v982_v35 = vadd.f32 %v1706_v25, %v2030_v56  ;;  %v998_v38 = vadd.f32 %v2152_v31, %v2030_v56  ;;  %v1211_v42 = vmul.f32 %v1706_v25, %v1706_v25  ;;  %v1173_v51 = vadd.f32 %v1706_v25, %v1172_v39 }
 0x127   : > { %v1708_v37 = vpop.f32.mrf.mxu0  ;;  %v1756_v46 = vpop.f32.mrf.mxu1 }
 0x128   : > { %v1587_v41 = vpack.c.bf16 %v982_v35, %v981_v18  ;;  %v1709_v43 = vadd.f32 %v1708_v37, %v1707_v28  ;;  %v1627_v49 = vpack.c.bf16 %v998_v38, %v997_v29  ;;  %v2158_v27 = vadd.f32 %v1756_v46, %v1755_v36 }
 0x129   : > { %v1710_v47 = vpop.f32.mrf.mxu0  ;;  %v1758_v57 = vpop.f32.mrf.mxu1  ;;  %v1242_v60 = vadd.f32 %v1241_v50, %v1211_v42  ;;  %v1219_v28 = vmul.f32 %v2078_v34, %v2078_v34  ;;  %v1223_v38 = vmul.f32 %v2120_v58, %v2120_v58  ;;  %v1224_v42 = vmul.f32 %v2130_v40, %v2130_v40 }
 0x12a   : > { %1639 = vst [vmem:[%s2046_s21 + $0x30] sm:$0xff] %v1587_v41   ;;  %v1212_v55 = vmul.f32 %v1709_v43, %v1709_v43  ;;  %1647 = vst [vmem:[%s2046_s21 + $0x70] sm:$0xff] %v1627_v49   ;;  %v1174_v30 = vadd.f32 %v1709_v43, %v1173_v51  ;;  %v983_v1 = vadd.f32 %v1709_v43, %v2030_v56 }
 0x12b   : > { %v1711_v59 = vpop.f32.mrf.mxu0  ;;  %v1759_v0 = vpop.f32.mrf.mxu1  ;;  %v999_v2 = vadd.f32 %v2158_v27, %v2030_v56 }
 0x12c   : > { %v1712_v63 = vadd.f32 %v1711_v59, %v1710_v47  ;;  %v1760_v45 = vadd.f32 %v1759_v0, %v1758_v57  ;;  %v1243_v3 = vadd.f32 %v1242_v60, %v1212_v55  ;;  %v1228_v57 = vmul.f32 %v2158_v27, %v2158_v27 }
 0x12e   : > { %v984_v4 = vadd.f32 %v1712_v63, %v2030_v56  ;;  %v1175_v5 = vadd.f32 %v1712_v63, %v1174_v30  ;;  %v1213_v7 = vmul.f32 %v1712_v63, %v1712_v63  ;;  %v1000_v11 = vadd.f32 %v1760_v45, %v2030_v56 }
 0x12f   : > { %v1229_v60 = vmul.f32 %v1760_v45, %v1760_v45 }
 0x130   : > { %v1592_v14 = vpack.c.bf16 %v984_v4, %v983_v1  ;;  %v1176_v15 = vadd.f32 %v2023_v53, %v1175_v5  ;;  %v1244_v48 = vadd.f32 %v1243_v3, %v1213_v7  ;;  %v1632_v19 = vpack.c.bf16 %v1000_v11, %v999_v2 }
 0x132   : > { %1640 = vst [vmem:[%s2046_s21 + $0x38] sm:$0xff] %v1592_v14   ;;  %v1177_v21 = vadd.f32 %v2037_v62, %v1176_v15  ;;  %v1245_v22 = vadd.f32 %v1244_v48, %v1214_v13  ;;  %1648 = vst [vmem:[%s2046_s21 + $0x78] sm:$0xff] %v1632_v19  }
 0x134   : > { %v1178_v56 = vadd.f32 %v2050_v8, %v1177_v21  ;;  %v1246_v23 = vadd.f32 %v1245_v22, %v1215_v20  ;;  %v1220_v8 = vmul.f32 %v2086_v44, %v2086_v44 }
 0x136   : > { %v1179_v53 = vadd.f32 %v2060_v16, %v1178_v56  ;;  %v1247_v25 = vadd.f32 %v1246_v23, %v1216_v54  ;;  %v1221_v16 = vmul.f32 %v2094_v52, %v2094_v52 }
 0x138   : > { %v1248_v10 = vadd.f32 %v1247_v25, %v1217_v24  ;;  %v1180_v62 = vadd.f32 %v2068_v26, %v1179_v53  ;;  %v1222_v26 = vmul.f32 %v2107_v6, %v2107_v6 }
 0x13a   : > { %v1181_v29 = vadd.f32 %v2078_v34, %v1180_v62  ;;  %v1249_v32 = vadd.f32 %v1248_v10, %v1218_v9 }
 0x13c   : > { %v1182_v18 = vadd.f32 %v2086_v44, %v1181_v29  ;;  %v1250_v33 = vadd.f32 %v1249_v32, %v1219_v28 }
 0x13e   : > { %v1183_v35 = vadd.f32 %v2094_v52, %v1182_v18  ;;  %v1251_v36 = vadd.f32 %v1250_v33, %v1220_v8 }
 0x140   : > { %v1184_v12 = vadd.f32 %v2107_v6, %v1183_v35  ;;  %v1252_v37 = vadd.f32 %v1251_v36, %v1221_v16  ;;  %v1225_v6 = vmul.f32 %v2139_v61, %v2139_v61 }
 0x142   : > { %v1185_v34 = vadd.f32 %v2120_v58, %v1184_v12  ;;  %v1253_v39 = vadd.f32 %v1252_v37, %v1222_v26  ;;  %v1226_v58 = vmul.f32 %v2146_v17, %v2146_v17 }
 0x144   : > { %v1254_v44 = vadd.f32 %v1253_v39, %v1223_v38  ;;  %v1186_v41 = vadd.f32 %v2130_v40, %v1185_v34  ;;  %v1227_v40 = vmul.f32 %v2152_v31, %v2152_v31 }
 0x146   : > { %v1255_v52 = vadd.f32 %v1254_v44, %v1224_v42  ;;  %v1187_v43 = vadd.f32 %v2139_v61, %v1186_v41 }
 0x148   : > { %v1256_v46 = vadd.f32 %v1255_v52, %v1225_v6  ;;  %v1188_v47 = vadd.f32 %v2146_v17, %v1187_v43 }
 0x14a   : > { %v1257_v49 = vadd.f32 %v1256_v46, %v1226_v58  ;;  %v1189_v50 = vadd.f32 %v2152_v31, %v1188_v47 }
 0x14c   : > { %v1258_v51 = vadd.f32 %v1257_v49, %v1227_v40  ;;  %v1190_v55 = vadd.f32 %v2158_v27, %v1189_v50 }
 0x14e   : > { %v1259_v61 = vadd.f32 %v1258_v51, %v1228_v57  ;;  %v1191_v59 = vadd.f32 %v1760_v45, %v1190_v55 }
 0x150   : > { %v1192_v30 = vrot.slane %v1191_v59, 4  ;;  %v1260_v63 = vadd.f32 %v1259_v61, %v1229_v60 }
 0x152   : > { %v1193_v17 = vadd.f32 %v1192_v30, %v1191_v59  ;;  %v1261_v0 = vrot.slane %v1260_v63, 4 }
 0x154   : > { %v1194_v1 = vrot.slane %v1193_v17, 2  ;;  %v1262_v2 = vadd.f32 %v1261_v0, %v1260_v63 }
 0x156   : > { %v1195_v3 = vadd.f32 %v1194_v1, %v1193_v17  ;;  %v1263_v4 = vrot.slane %v1262_v2, 2 }
 0x158   : > { %v1196_v31 = vrot.slane %v1195_v3, 1  ;;  %v1264_v5 = vadd.f32 %v1263_v4, %v1262_v2 }
 0x15a   : > { %v1265_v7 = vrot.slane %v1264_v5, 1  ;;  %v1197_v27 = vadd.f32 %v1196_v31, %v1195_v3 }
 0x15c   : > { %v1266_v45 = vadd.f32 %v1265_v7, %v1264_v5 }
 0x15e   : > { %v1268_v11 = vsel %vm1267_vm0, %v1197_v27, %v1266_v45 }
 0x15f   : > { %1269 = vst [vmem:[%s312_s22] sm:$0x3] %v1268_v11 }
 0x160 PF: > { %s15_s17 = sadd.s32 1, %s1887_s17   ;;  %s2233_s15 = smov %s1883_s16 }
 0x161   : > { %p12_p6 = scmp.ge.s32.totalorder %s15_s17, 4   ;;  %s2234_s16 = smov %s2236_s18 }
 0x163   :  { %14 = sbr.rel (!%p12_p6) target bundleno = 2 (0x2), region = 88 }

// kernel: encoder_forward.14
= control target key start
LH: loop header
LB: loop body
LE: loop exit
PB: predicated region body
PF: predicated region fallthrough
CT: control target
= control target key end

     0   :  { %s140_s0 = inlined_call_operand.vmem [shape: bf16[32,128], index: 0, kind: input, shape index: {}]   ;;  %s141_s1 = inlined_call_operand.vmem [shape: f32[1,128], index: 1, kind: input, shape index: {}]   ;;  %s142_s2 = inlined_call_operand.vmem [shape: f32[1,128], index: 2, kind: input, shape index: {}]   ;;  %s143_s3 = inlined_call_operand.vmem [shape: bf16[32,128], index: 3, kind: output, shape index: {}]  }
   0x1   :  { %v83_v0 = vld [vmem:[%s140_s0] sm:$0xff]   ;;  %v100_v4 = vld [vmem:[%s140_s0 + $0x8] sm:$0xff]  }
   0x2   :  { %v72_v1 = vld [vmem:[%s141_s1] ss:$0 sm:$0xff]  ;;  %v84_v2 = vunpack.c.l.bf16 %v83_v0  ;;  %v85_v3 = vunpack.c.h.bf16 %v83_v0  ;;  %v88_v6 = vunpack.c.l.bf16 %v100_v4  ;;  %v89_v7 = vunpack.c.h.bf16 %v100_v4 }
   0x3   :  { %v73_v5 = vld [vmem:[%s142_s2] ss:$0 sm:$0xff] }
   0x4   :  { %v29_v8 = vmul.f32 %v84_v2, %v72_v1  ;;  %v30_v9 = vmul.f32 %v85_v3, %v72_v1  ;;  %v31_v10 = vmul.f32 %v88_v6, %v72_v1  ;;  %v32_v11 = vmul.f32 %v89_v7, %v72_v1 }
   0x6   :  { %v40_v12 = vadd.f32 %v73_v5, %v29_v8  ;;  %v41_v13 = vadd.f32 %v73_v5, %v30_v9  ;;  %v42_v14 = vadd.f32 %v73_v5, %v31_v10  ;;  %v43_v15 = vadd.f32 %v73_v5, %v32_v11 }
   0x8   :  { %v44_v16 = vmax.f32 %v40_v12, 0.0  ;;  %v45_v17 = vmax.f32 %v41_v13, 0.0  ;;  %v46_v18 = vmax.f32 %v42_v14, 0.0  ;;  %v47_v19 = vmax.f32 %v43_v15, 0.0 }
   0xa   :  { %v93_v20 = vpack.c.bf16 %v45_v17, %v44_v16  ;;  %v98_v21 = vpack.c.bf16 %v47_v19, %v46_v18 }
   0xc   :  { %94 = vst [vmem:[%s143_s3] sm:$0xff] %v93_v20   ;;  %101 = vst [vmem:[%s143_s3 + $0x8] sm:$0xff] %v98_v21  }

// kernel: tile.73
= control target key start
LH: loop header
LB: loop body
LE: loop exit
PB: predicated region body
PF: predicated region fallthrough
CT: control target
= control target key end

     0   :  { %s22_s0 = inlined_call_operand.vmem [shape: f32[16], index: 0, kind: input, shape index: {}]   ;;  %s23_s1 = inlined_call_operand.vmem [shape: f32[8,16], index: 1, kind: output, shape index: {}]  }
   0x1   :  { %v4_v0 = vld [vmem:[%s22_s0] ss:$0 sm:$0xff] }
   0x2   :  { %5 = vst [vmem:[%s23_s1] sm:$0xff] %v4_v0 }

// kernel: tile.74
= control target key start
LH: loop header
LB: loop body
LE: loop exit
PB: predicated region body
PF: predicated region fallthrough
CT: control target
= control target key end

     0   :  { %s69_s10 = smov 112   ;;  %s70_s11 = smov 80   ;;  %vm3_vm0 = vcmask 130048   ;;  %vm9_vm1 = vcmask 1048448   ;;  %vm15_vm2 = vcmask 917248   ;;  %vm21_vm3 = vcmask 786048   ;;  %s113_s0 = inlined_call_operand.vmem [shape: f32[8,16], index: 0, kind: input, shape index: {}]   ;;  %s114_s1 = inlined_call_operand.vmem [shape: f32[1,128], index: 1, kind: output, shape index: {}]  }
   0x1   :  { %v55_v0 = vld [vmem:[%s113_s0 + $0x7] sm:$0x1]   ;;  %v57_v1 = vld [vmem:[%s113_s0 + $0x5] sm:$0x1]   ;;  %v56_v2 = vld [vmem:[%s113_s0 + $0x6] sm:$0x1]  }
   0x2   :  { %7 = vrot.lane.b32.xlu0 %v55_v0, %s69_s10  ;;  %19 = vrot.lane.b32.xlu1 %v57_v1, %s70_s11  ;;  %v58_v3 = vld [vmem:[%s113_s0 + $0x4] sm:$0x1]   ;;  %v2_v4 = vld [vmem:[%s113_s0] sm:$0x1]   ;;  %s71_s18 = smov 96   ;;  %s72_s19 = smov 64  }
   0x3   :  { %4 = vst.msk [vmem:[#allocation0] sm:$0x1] %vm3_vm0, %v2_v4   ;;  %v59_v5 = vld [vmem:[%s113_s0 + $0x3] sm:$0x1]   ;;  %v60_v6 = vld [vmem:[%s113_s0 + $0x2] sm:$0x1]  }
   0x4   :  { %s73_s24 = smov 48   ;;  %s74_s25 = smov 32   ;;  %v61_v7 = vld [vmem:[%s113_s0 + $0x1] sm:$0x1]   ;;  %vm27_vm4 = vcmask 654848   ;;  %vm33_vm5 = vcmask 523648  }
   0x5   :  { %s75_s0 = smov 16   ;;  %vm39_vm6 = vcmask 392448   ;;  %vm45_vm7 = vcmask 261248  }
   0x6   :  { %13 = vrot.lane.b32.xlu0 %v56_v2, %s71_s18  ;;  %25 = vrot.lane.b32.xlu1 %v58_v3, %s72_s19 }
   0xa   :  { %31 = vrot.lane.b32.xlu0 %v59_v5, %s73_s24  ;;  %37 = vrot.lane.b32.xlu1 %v60_v6, %s74_s25 }
   0xe   :  { %43 = vrot.lane.b32.xlu0 %v61_v7, %s75_s0 }
  0x74   :  { %v8_v8 = vpop.permute.xlu0 %7   ;;  %v20_v9 = vpop.permute.xlu1 %19  }
  0x75   :  { %10 = vst.msk [vmem:[#allocation0] sm:$0x1] %vm9_vm1, %v8_v8  }
  0x78   :  { %v14_v10 = vpop.permute.xlu0 %13   ;;  %v26_v11 = vpop.permute.xlu1 %25  }
  0x79   :  { %16 = vst.msk [vmem:[#allocation0] sm:$0x1] %vm15_vm2, %v14_v10  }
  0x7a   :  { %22 = vst.msk [vmem:[#allocation0] sm:$0x1] %vm21_vm3, %v20_v9  }
  0x7b   :  { %28 = vst.msk [vmem:[#allocation0] sm:$0x1] %vm27_vm4, %v26_v11  }
  0x7c   :  { %v32_v12 = vpop.permute.xlu0 %31   ;;  %v38_v13 = vpop.permute.xlu1 %37  }
  0x7d   :  { %34 = vst.msk [vmem:[#allocation0] sm:$0x1] %vm33_vm5, %v32_v12  }
  0x7e   :  { %40 = vst.msk [vmem:[#allocation0] sm:$0x1] %vm39_vm6, %v38_v13  }
  0x80   :  { %v44_v14 = vpop.permute.xlu0 %43  }
  0x81   :  { %46 = vst.msk [vmem:[#allocation0] sm:$0x1] %vm45_vm7, %v44_v14  }
  0x88   :  { %v51_v15 = vld [vmem:[#allocation0] sm:$0x1] }
  0x89   :  { %54 = vst [vmem:[%s114_s1] sm:$0x1] %v51_v15 }

// kernel: encoder_forward.15
= control target key start
LH: loop header
LB: loop body
LE: loop exit
PB: predicated region body
PF: predicated region fallthrough
CT: control target
= control target key end

     0   :  { %s961_s15 = smov 0   ;;  %s963_s16 = smov 0   ;;  %s1042_s0 = inlined_call_operand.vmem [shape: bf16[128,128], index: 0, kind: input, shape index: {}]   ;;  %s1043_s1 = inlined_call_operand.vmem [shape: bf16[128,128], index: 1, kind: input, shape index: {}]   ;;  %s1044_s2 = inlined_call_operand.vmem [shape: f32[1,128], index: 2, kind: input, shape index: {}]   ;;  %s1045_s3 = inlined_call_operand.vmem [shape: bf16[128,128], index: 3, kind: output, shape index: {0}]   ;;  %s1046_s4 = inlined_call_operand.vmem [shape: f32[2,2,128], index: 4, kind: output, shape index: {1}]  }
   0x1   :  { %s965_s17 = smov 0  }
   0x2 LB: > { %s34_s18 = sadd.s32 1, %s930_s16  ;;  %p764_p0 = scmp.ge.s32.totalorder %s934_s17, 1  ;;  %s934_s17 = sphi %s965_s17, %s15_s17   ;;  %s930_s16 = sphi %s963_s16, %s1048_s16   ;;  %s926_s15 = sphi %s961_s15, %s1047_s15  }
   0x3   : > { %p36_p1 = scmp.ge.s32.totalorder %s34_s18, 2  ;;  %p218_p2 = scmp.lt.s32.totalorder %s934_s17, 3 }
   0x5   : > { %s1050_s18 = smov (%p36_p1, %s34_s18), 0  ;;  %p219_p3 = pnand %p764_p0, %p218_p2 }
   0x6   : > { %s765_s21 = sshll.u32 (!%p219_p3), %s926_s15, 3  ;;  %p298_p5 = scmp.lt.s32.totalorder (!%p219_p3), %s926_s15, 1 }
   0x7   : > { %222 = sbr.rel (%p219_p3) target bundleno = 274 (0x112), region = 32  ;;  %p269_p4 = scmp.lt.s32.totalorder (!%p219_p3), %s765_s21, 15 }
   0xc   : > { %v900_v0 = vld [vmem:[%s1043_s1 + $0x38] sm:$0xff]   ;;  %v901_v1 = vld [vmem:[%s1043_s1 + $0x30] sm:$0xff]   ;;  %s1052_s21 = smov (!%p269_p4, %s765_s21), 15  ;;  %v902_v2 = vld [vmem:[%s1043_s1 + $0x28] sm:$0xff]   ;;  %s1054_s15 = smov (!%p298_p5, %s926_s15), 1  ;;  %vm603_vm0 = vcmask 1040384  }
   0xd   : > { %836 = vmatprep.subr.bf16.mxu0 %v900_v0  ;;  %860 = vmatprep.subr.bf16.mxu1 %v900_v0  ;;  %s766_s26 = sshll.u32 %s1052_s21, 2  ;;  %v903_v3 = vld [vmem:[%s1043_s1 + $0x20] sm:$0xff]   ;;  %v904_v6 = vld [vmem:[%s1043_s1 + $0x18] sm:$0xff]   ;;  %v905_v7 = vld [vmem:[%s1043_s1 + $0x10] sm:$0xff]   ;;  %s769_s21 = sshll.u32 %s1054_s15, 1 }
   0xe   : > { %837 = vmatpush3.bf16.msra.mxu0 %v900_v0  ;;  %868 = vmatpush3.bf16.msra.mxu1 %v900_v0  ;;  %s999_s29 = scalar_lea.vmem %s1042_s0, %s766_s26  ;;  %v906_v8 = vld [vmem:[%s1043_s1 + $0x8] sm:$0xff]   ;;  %v907_v9 = vld [vmem:[%s1043_s1] sm:$0xff]   ;;  %s296_s23 = scalar_lea.vmem %s1045_s3, %s766_s26 }
   0xf   : > { %838 = vmatprep.subr.bf16.mxu0 %v901_v1  ;;  %861 = vmatprep.subr.bf16.mxu1 %v901_v1  ;;  %v908_v4 = vld [vmem:[%s999_s29] sm:$0xff]   ;;  %v910_v5 = vld [vmem:[%s999_s29 + $0x10] sm:$0xff]   ;;  %v909_v10 = vld [vmem:[%s999_s29 + $0x8] sm:$0xff]   ;;  %s304_s26 = scalar_lea.vmem %s1046_s4, %s769_s21 }
  0x10   : > { %852 = vmatprep.mubr.bf16.mxu0 %v908_v4  ;;  %856 = vmatprep.mubr.bf16.mxu1 %v910_v5  ;;  %v911_v11 = vld [vmem:[%s999_s29 + $0x18] sm:$0xff]   ;;  %v782_v14 = vld [vmem:[%s1044_s2] ss:$0 sm:$0xff] }
  0x12   : > { %839 = vmatpush3.bf16.msra.mxu0 %v901_v1  ;;  %869 = vmatpush3.bf16.msra.mxu1 %v901_v1 }
  0x13   : > { %840 = vmatprep.subr.bf16.mxu0 %v902_v2  ;;  %862 = vmatprep.subr.bf16.mxu1 %v902_v2 }
  0x16   : > { %841 = vmatpush3.bf16.msra.mxu0 %v902_v2  ;;  %870 = vmatpush3.bf16.msra.mxu1 %v902_v2 }
  0x17   : > { %842 = vmatprep.subr.bf16.mxu0 %v903_v3  ;;  %863 = vmatprep.subr.bf16.mxu1 %v903_v3 }
  0x1a   : > { %843 = vmatpush3.bf16.msra.mxu0 %v903_v3  ;;  %871 = vmatpush3.bf16.msra.mxu1 %v903_v3 }
  0x1b   : > { %844 = vmatprep.subr.bf16.mxu0 %v904_v6  ;;  %864 = vmatprep.subr.bf16.mxu1 %v904_v6 }
  0x1e   : > { %845 = vmatpush3.bf16.msra.mxu0 %v904_v6  ;;  %872 = vmatpush3.bf16.msra.mxu1 %v904_v6 }
  0x1f   : > { %846 = vmatprep.subr.bf16.mxu0 %v905_v7  ;;  %865 = vmatprep.subr.bf16.mxu1 %v905_v7 }
  0x22   : > { %847 = vmatpush3.bf16.msra.mxu0 %v905_v7  ;;  %873 = vmatpush3.bf16.msra.mxu1 %v905_v7 }
  0x23   : > { %848 = vmatprep.subr.bf16.mxu0 %v906_v8  ;;  %866 = vmatprep.subr.bf16.mxu1 %v906_v8 }
  0x26   : > { %849 = vmatpush3.bf16.msra.mxu0 %v906_v8  ;;  %874 = vmatpush3.bf16.msra.mxu1 %v906_v8 }
  0x27   : > { %850 = vmatprep.subr.bf16.mxu0 %v907_v9  ;;  %867 = vmatprep.subr.bf16.mxu1 %v907_v9 }
  0x2a   : > { %851 = vmatpush3.bf16.msra.mxu0 %v907_v9  ;;  %875 = vmatpush3.bf16.msra.mxu1 %v907_v9 }
  0x2d   : > { %853 = vmatmul.mubr.bf16.vlgmr.msra.gmra.mxu0 %v909_v10  ;;  %857 = vmatmul.mubr.bf16.vlgmr.msra.gmra.mxu1 %v911_v11 }
  0xed   : > { %v854_v12 = vpop.f32.mrf.mxu0  ;;  %v858_v13 = vpop.f32.mrf.mxu1 }
  0xee   : > { %v527_v17 = vadd.f32 %v858_v13, %v782_v14  ;;  %v523_v20 = vadd.f32 %v854_v12, %v782_v14  ;;  %v584_v34 = vmul.f32 %v854_v12, %v854_v12  ;;  %v588_v48 = vmul.f32 %v858_v13, %v858_v13 }
  0xef   : > { %v456_v15 = vpop.f32.mrf.mxu0  ;;  %v472_v16 = vpop.f32.mrf.mxu1 }
  0xf0   : > { %v521_v23 = vadd.f32 %v782_v14, %v456_v15  ;;  %v582_v24 = vmul.f32 %v456_v15, %v456_v15  ;;  %v525_v25 = vadd.f32 %v782_v14, %v472_v16  ;;  %v586_v42 = vmul.f32 %v472_v16, %v472_v16 }
  0xf1   : > { %v855_v18 = vpop.f32.mrf.mxu0  ;;  %v859_v19 = vpop.f32.mrf.mxu1 }
  0xf2   : > { %v524_v21 = vadd.f32 %v855_v18, %v782_v14  ;;  %v528_v22 = vadd.f32 %v859_v19, %v782_v14  ;;  %v585_v39 = vmul.f32 %v855_v18, %v855_v18  ;;  %v589_v51 = vmul.f32 %v859_v19, %v859_v19 }
  0xf3   : > { %v459_v26 = vpop.f32.mrf.mxu0  ;;  %v475_v27 = vpop.f32.mrf.mxu1 }
  0xf4   : > { %v809_v28 = vpack.c.bf16 %v524_v21, %v523_v20  ;;  %v522_v29 = vadd.f32 %v782_v14, %v459_v26  ;;  %v569_v30 = vadd.f32 %v459_v26, %v456_v15  ;;  %v583_v31 = vmul.f32 %v459_v26, %v459_v26 }
  0xf5   : > { %v819_v32 = vpack.c.bf16 %v528_v22, %v527_v17  ;;  %v526_v33 = vadd.f32 %v782_v14, %v475_v27  ;;  %v587_v46 = vmul.f32 %v475_v27, %v475_v27 }
  0xf6   : > { %821 = vst [vmem:[%s296_s23 + $0x8] sm:$0xff] %v809_v28   ;;  %v804_v35 = vpack.c.bf16 %v522_v29, %v521_v23  ;;  %v570_v36 = vadd.f32 %v854_v12, %v569_v30  ;;  %v590_v37 = vadd.f32 %v583_v31, %v582_v24 }
  0xf7   : > { %823 = vst [vmem:[%s296_s23 + $0x18] sm:$0xff] %v819_v32   ;;  %v814_v38 = vpack.c.bf16 %v526_v33, %v525_v25 }
  0xf8   : > { %805 = vst [vmem:[%s296_s23] sm:$0xff] %v804_v35   ;;  %v591_v40 = vadd.f32 %v590_v37, %v584_v34  ;;  %v571_v41 = vadd.f32 %v855_v18, %v570_v36 }
  0xf9   : > { %822 = vst [vmem:[%s296_s23 + $0x10] sm:$0xff] %v814_v38  }
  0xfa   : > { %v572_v43 = vadd.f32 %v571_v41, %v472_v16  ;;  %v592_v44 = vadd.f32 %v591_v40, %v585_v39 }
  0xfc   : > { %v573_v45 = vadd.f32 %v572_v43, %v475_v27  ;;  %v593_v47 = vadd.f32 %v592_v44, %v586_v42 }
  0xfe   : > { %v574_v49 = vadd.f32 %v858_v13, %v573_v45  ;;  %v594_v50 = vadd.f32 %v593_v47, %v587_v46 }
 0x100   : > { %v575_v52 = vadd.f32 %v859_v19, %v574_v49  ;;  %v595_v53 = vadd.f32 %v594_v50, %v588_v48 }
 0x102   : > { %v576_v54 = vrot.slane %v575_v52, 4  ;;  %v596_v55 = vadd.f32 %v595_v53, %v589_v51 }
 0x104   : > { %v577_v56 = vadd.f32 %v576_v54, %v575_v52  ;;  %v597_v57 = vrot.slane %v596_v55, 4 }
 0x106   : > { %v578_v58 = vrot.slane %v577_v56, 2  ;;  %v598_v59 = vadd.f32 %v597_v57, %v596_v55 }
 0x108   : > { %v579_v60 = vadd.f32 %v578_v58, %v577_v56  ;;  %v599_v61 = vrot.slane %v598_v59, 2 }
 0x10a   : > { %v580_v62 = vrot.slane %v579_v60, 1  ;;  %v600_v63 = vadd.f32 %v599_v61, %v598_v59 }
 0x10c   : > { %v601_v0 = vrot.slane %v600_v63, 1  ;;  %v581_v1 = vadd.f32 %v580_v62, %v579_v60 }
 0x10e   : > { %v602_v2 = vadd.f32 %v601_v0, %v600_v63 }
 0x110   : > { %v604_v3 = vsel %vm603_vm0, %v581_v1, %v602_v2 }
 0x111   : > { %605 = vst [vmem:[%s304_s26] sm:$0x3] %v604_v3 }
 0x112 PF: > { %s15_s17 = sadd.s32 1, %s934_s17   ;;  %s1047_s15 = smov %s930_s16 }
 0x113   : > { %p12_p6 = scmp.ge.s32.totalorder %s15_s17, 4   ;;  %s1048_s16 = smov %s1050_s18 }
 0x115   :  { %14 = sbr.rel (!%p12_p6) target bundleno = 2 (0x2), region = 88 }

// kernel: encoder_forward.16
= control target key start
LH: loop header
LB: loop body
LE: loop exit
PB: predicated region body
PF: predicated region fallthrough
CT: control target
= control target key end

     0   :  { %s99_s0 = inlined_call_operand.vmem [shape: bf16[16,128], index: 0, kind: input, shape index: {}]   ;;  %s100_s1 = inlined_call_operand.vmem [shape: f32[1,128], index: 1, kind: input, shape index: {}]   ;;  %s101_s2 = inlined_call_operand.vmem [shape: f32[1,128], index: 2, kind: input, shape index: {}]   ;;  %s102_s3 = inlined_call_operand.vmem [shape: bf16[16,128], index: 3, kind: output, shape index: {}]  }
   0x1   :  { %v59_v0 = vld [vmem:[%s99_s0] sm:$0xff]  }
   0x2   :  { %v52_v1 = vld [vmem:[%s100_s1] ss:$0 sm:$0xff]  ;;  %v60_v2 = vunpack.c.l.bf16 %v59_v0  ;;  %v61_v3 = vunpack.c.h.bf16 %v59_v0 }
   0x3   :  { %v53_v4 = vld [vmem:[%s101_s2] ss:$0 sm:$0xff] }
   0x4   :  { %v25_v5 = vmul.f32 %v60_v2, %v52_v1  ;;  %v26_v6 = vmul.f32 %v61_v3, %v52_v1 }
   0x6   :  { %v34_v7 = vadd.f32 %v53_v4, %v25_v5  ;;  %v35_v8 = vadd.f32 %v53_v4, %v26_v6 }
   0x8   :  { %v36_v9 = vmax.f32 %v34_v7, 0.0  ;;  %v37_v10 = vmax.f32 %v35_v8, 0.0 }
   0xa   :  { %v65_v11 = vpack.c.bf16 %v37_v10, %v36_v9 }
   0xc   :  { %66 = vst [vmem:[%s102_s3] sm:$0xff] %v65_v11  }

// kernel: tile.83
= control target key start
LH: loop header
LB: loop body
LE: loop exit
PB: predicated region body
PF: predicated region fallthrough
CT: control target
= control target key end

     0   :  { %s22_s0 = inlined_call_operand.vmem [shape: f32[32], index: 0, kind: input, shape index: {}]   ;;  %s23_s1 = inlined_call_operand.vmem [shape: f32[4,32], index: 1, kind: output, shape index: {}]  }
   0x1   :  { %v4_v0 = vld [vmem:[%s22_s0] ss:$0 sm:$0xff] }
   0x2   :  { %5 = vst [vmem:[%s23_s1] sm:$0xf] %v4_v0 }

// kernel: tile.84
= control target key start
LH: loop header
LB: loop body
LE: loop exit
PB: predicated region body
PF: predicated region fallthrough
CT: control target
= control target key end

     0   :  { %vm8_vm0 = vcmask 261120   ;;  %s40_s8 = smov 32   ;;  %s41_s9 = smov 64   ;;  %vm14_vm1 = vcmask 1048320   ;;  %vm20_vm2 = vcmask 785920   ;;  %vm26_vm3 = vcmask 523520   ;;  %s58_s0 = inlined_call_operand.vmem [shape: f32[4,32], index: 0, kind: input, shape index: {}]   ;;  %s59_s1 = inlined_call_operand.vmem [shape: f32[1,128], index: 1, kind: output, shape index: {}]  }
   0x1   :  { %v5_v0 = vld [vmem:[%s58_s0] sm:$0xf]  ;;  %s39_s0 = smov 96  }
   0x2   :  { %6 = vst [vmem:[#allocation1] sm:$0xf] %v5_v0 }
   0x9   :  { %v11_v1 = vld [vmem:[#allocation1 + $0x3] sm:$0x1]   ;;  %v23_v2 = vld [vmem:[#allocation1 + $0x1] sm:$0x1]   ;;  %v7_v3 = vld [vmem:[#allocation1] sm:$0x1]  }
   0xa   :  { %12 = vrot.lane.b32.xlu0 %v11_v1, %s39_s0  ;;  %24 = vrot.lane.b32.xlu1 %v23_v2, %s40_s8  ;;  %v17_v4 = vld [vmem:[#allocation1 + $0x2] sm:$0x1]   ;;  %9 = vst.msk [vmem:[#allocation0] sm:$0x1] %vm8_vm0, %v7_v3  }
   0xe   :  { %18 = vrot.lane.b32.xlu0 %v17_v4, %s41_s9 }
  0x7c   :  { %v13_v5 = vpop.permute.xlu0 %12   ;;  %v25_v6 = vpop.permute.xlu1 %24  }
  0x7d   :  { %15 = vst.msk [vmem:[#allocation0] sm:$0x1] %vm14_vm1, %v13_v5  }
  0x80   :  { %v19_v7 = vpop.permute.xlu0 %18  }
  0x81   :  { %21 = vst.msk [vmem:[#allocation0] sm:$0x1] %vm20_vm2, %v19_v7  }
  0x82   :  { %27 = vst.msk [vmem:[#allocation0] sm:$0x1] %vm26_vm3, %v25_v6  }
  0x89   :  { %v32_v8 = vld [vmem:[#allocation0] sm:$0x1] }
  0x8a   :  { %35 = vst [vmem:[%s59_s1] sm:$0x1] %v32_v8 }

// kernel: encoder_forward.18
= control target key start
LH: loop header
LB: loop body
LE: loop exit
PB: predicated region body
PF: predicated region fallthrough
CT: control target
= control target key end

     0   :  { %s73_s0 = inlined_call_operand.vmem [shape: bf16[8,128], index: 0, kind: input, shape index: {}]   ;;  %s74_s1 = inlined_call_operand.vmem [shape: f32[1,128], index: 1, kind: input, shape index: {}]   ;;  %s75_s2 = inlined_call_operand.vmem [shape: f32[1,128], index: 2, kind: input, shape index: {}]   ;;  %s76_s3 = inlined_call_operand.vmem [shape: bf16[8,128], index: 3, kind: output, shape index: {}]  }
   0x1   :  { %v14_v0 = vld [vmem:[%s73_s0] sm:$0xf] }
   0x2   :  { %v39_v1 = vld [vmem:[%s74_s1] ss:$0 sm:$0xff]  ;;  %v15_v2 = vunpack.c.l.bf16 %v14_v0 }
   0x3   :  { %v40_v3 = vld [vmem:[%s75_s2] ss:$0 sm:$0xff] }
   0x4   :  { %v23_v4 = vmul.f32 %v39_v1, %v15_v2 }
   0x6   :  { %v31_v5 = vadd.f32 %v40_v3, %v23_v4 }
   0x8   :  { %v32_v6 = vmax.f32 %v31_v5, 0.0 }
   0xa   :  { %v33_v7 = vpack.c.bf16 %v32_v6, %v32_v6 }
   0xc   :  { %34 = vst [vmem:[%s76_s3] sm:$0xf] %v33_v7 }

// kernel: tile.93
= control target key start
LH: loop header
LB: loop body
LE: loop exit
PB: predicated region body
PF: predicated region fallthrough
CT: control target
= control target key end

     0   :  { %s22_s0 = inlined_call_operand.vmem [shape: f32[16], index: 0, kind: input, shape index: {}]   ;;  %s23_s1 = inlined_call_operand.vmem [shape: f32[4,16], index: 1, kind: output, shape index: {}]  }
   0x1   :  { %v4_v0 = vld [vmem:[%s22_s0] ss:$0 sm:$0xff] }
   0x2   :  { %5 = vst [vmem:[%s23_s1] sm:$0xf] %v4_v0 }

// kernel: tile.94
= control target key start
LH: loop header
LB: loop body
LE: loop exit
PB: predicated region body
PF: predicated region fallthrough
CT: control target
= control target key end

     0   :  { %vm8_vm0 = vcmask 130048   ;;  %s40_s8 = smov 16   ;;  %s41_s9 = smov 32   ;;  %vm14_vm1 = vcmask 523648   ;;  %vm20_vm2 = vcmask 392448   ;;  %vm26_vm3 = vcmask 261248   ;;  %s58_s0 = inlined_call_operand.vmem [shape: f32[4,16], index: 0, kind: input, shape index: {}]   ;;  %s59_s1 = inlined_call_operand.vmem [shape: f32[64], index: 1, kind: output, shape index: {}]  }
   0x1   :  { %v5_v0 = vld [vmem:[%s58_s0] sm:$0xf]  ;;  %s39_s0 = smov 48  }
   0x2   :  { %6 = vst [vmem:[#allocation1] sm:$0xf] %v5_v0 }
   0x9   :  { %v11_v1 = vld [vmem:[#allocation1 + $0x3] sm:$0x1]   ;;  %v23_v2 = vld [vmem:[#allocation1 + $0x1] sm:$0x1]   ;;  %v7_v3 = vld [vmem:[#allocation1] sm:$0x1]  }
   0xa   :  { %12 = vrot.lane.b32.xlu0 %v11_v1, %s39_s0  ;;  %24 = vrot.lane.b32.xlu1 %v23_v2, %s40_s8  ;;  %v17_v4 = vld [vmem:[#allocation1 + $0x2] sm:$0x1]   ;;  %9 = vst.msk [vmem:[#allocation0] sm:$0x1] %vm8_vm0, %v7_v3  }
   0xe   :  { %18 = vrot.lane.b32.xlu0 %v17_v4, %s41_s9 }
  0x7c   :  { %v13_v5 = vpop.permute.xlu0 %12   ;;  %v25_v6 = vpop.permute.xlu1 %24  }
  0x7d   :  { %15 = vst.msk [vmem:[#allocation0] sm:$0x1] %vm14_vm1, %v13_v5  }
  0x80   :  { %v19_v7 = vpop.permute.xlu0 %18  }
  0x81   :  { %21 = vst.msk [vmem:[#allocation0] sm:$0x1] %vm20_vm2, %v19_v7  }
  0x82   :  { %27 = vst.msk [vmem:[#allocation0] sm:$0x1] %vm26_vm3, %v25_v6  }
  0x89   :  { %v32_v8 = vld [vmem:[#allocation0] sm:$0x1] }
  0x8a   :  { %35 = vst [vmem:[%s59_s1] sm:$0x1] %v32_v8 }

// kernel: encoder_forward.17
= control target key start
LH: loop header
LB: loop body
LE: loop exit
PB: predicated region body
PF: predicated region fallthrough
CT: control target
= control target key end

     0   :  { %vm298_vm0 = vcmask 1040384   ;;  %s512_s1 = inlined_call_operand.vmem [shape: bf16[256,128], index: 1, kind: input, shape index: {}]   ;;  %s513_s0 = inlined_call_operand.vmem [shape: bf16[32,256], index: 0, kind: input, shape index: {}]   ;;  %s514_s2 = inlined_call_operand.vmem [shape: f32[1,128], index: 2, kind: input, shape index: {}]   ;;  %s515_s3 = inlined_call_operand.vmem [shape: bf16[32,128], index: 3, kind: output, shape index: {0}]   ;;  %s516_s4 = inlined_call_operand.vmem [shape: f32[1,2,128], index: 4, kind: output, shape index: {1}]  }
   0x1   :  { %v393_v0 = vld [vmem:[%s512_s1 + $0x78] sm:$0xff]   ;;  %v395_v2 = vld [vmem:[%s512_s1 + $0x70] sm:$0xff]   ;;  %v397_v4 = vld [vmem:[%s512_s1 + $0x68] sm:$0xff]  }
   0x2   :  { %v394_v1 = vld [vmem:[%s512_s1 + $0x38] sm:$0xff]   ;;  %349 = vmatprep.subr.bf16.mxu0 %v393_v0  ;;  %377 = vmatprep.subr.bf16.mxu1 %v393_v0  ;;  %v396_v3 = vld [vmem:[%s512_s1 + $0x30] sm:$0xff]   ;;  %v398_v5 = vld [vmem:[%s512_s1 + $0x28] sm:$0xff]  }
   0x3   :  { %350 = vmatpush3.bf16.msra.mxu0 %v394_v1  ;;  %385 = vmatpush3.bf16.msra.mxu1 %v394_v1  ;;  %v399_v6 = vld [vmem:[%s512_s1 + $0x60] sm:$0xff]   ;;  %v401_v8 = vld [vmem:[%s512_s1 + $0x58] sm:$0xff]   ;;  %v403_v10 = vld [vmem:[%s512_s1 + $0x50] sm:$0xff]  }
   0x4   :  { %351 = vmatprep.subr.bf16.mxu0 %v395_v2  ;;  %378 = vmatprep.subr.bf16.mxu1 %v395_v2  ;;  %v400_v7 = vld [vmem:[%s512_s1 + $0x20] sm:$0xff]   ;;  %v402_v9 = vld [vmem:[%s512_s1 + $0x18] sm:$0xff]   ;;  %v404_v13 = vld [vmem:[%s512_s1 + $0x10] sm:$0xff]  }
   0x5   :  { %v411_v11 = vld [vmem:[%s513_s0 + $0x4] ss:$8 sps:$4 sm:$0xff]   ;;  %v414_v12 = vld [vmem:[%s513_s0 + $0x14] ss:$8 sps:$4 sm:$0xff]   ;;  %v409_v18 = vld [vmem:[%s513_s0] ss:$8 sps:$4 sm:$0xff]  }
   0x6   :  { %v405_v14 = vld [vmem:[%s512_s1 + $0x48] sm:$0xff]   ;;  %213 = vmatprep.mubr.bf16.mxu0 %v411_v11  ;;  %221 = vmatprep.mubr.bf16.mxu1 %v414_v12  ;;  %v407_v16 = vld [vmem:[%s512_s1 + $0x40] sm:$0xff]   ;;  %v412_v19 = vld [vmem:[%s513_s0 + $0x10] ss:$8 sps:$4 sm:$0xff]  }
   0x7   :  { %352 = vmatpush3.bf16.msra.mxu0 %v396_v3  ;;  %386 = vmatpush3.bf16.msra.mxu1 %v396_v3  ;;  %v406_v15 = vld [vmem:[%s512_s1 + $0x8] sm:$0xff]   ;;  %v408_v17 = vld [vmem:[%s512_s1] sm:$0xff]  }
   0x8   :  { %353 = vmatprep.subr.bf16.mxu0 %v397_v4  ;;  %379 = vmatprep.subr.bf16.mxu1 %v397_v4  ;;  %v329_v28 = vld [vmem:[%s514_s2] ss:$0 sm:$0xff] }
   0xb   :  { %354 = vmatpush3.bf16.msra.mxu0 %v398_v5  ;;  %387 = vmatpush3.bf16.msra.mxu1 %v398_v5 }
   0xc   :  { %355 = vmatprep.subr.bf16.mxu0 %v399_v6  ;;  %380 = vmatprep.subr.bf16.mxu1 %v399_v6 }
   0xf   :  { %356 = vmatpush3.bf16.msra.mxu0 %v400_v7  ;;  %388 = vmatpush3.bf16.msra.mxu1 %v400_v7 }
  0x10   :  { %357 = vmatprep.subr.bf16.mxu0 %v401_v8  ;;  %381 = vmatprep.subr.bf16.mxu1 %v401_v8 }
  0x13   :  { %358 = vmatpush3.bf16.msra.mxu0 %v402_v9  ;;  %389 = vmatpush3.bf16.msra.mxu1 %v402_v9 }
  0x14   :  { %359 = vmatprep.subr.bf16.mxu0 %v403_v10  ;;  %382 = vmatprep.subr.bf16.mxu1 %v403_v10 }
  0x17   :  { %360 = vmatpush3.bf16.msra.mxu0 %v404_v13  ;;  %390 = vmatpush3.bf16.msra.mxu1 %v404_v13 }
  0x18   :  { %361 = vmatprep.subr.bf16.mxu0 %v405_v14  ;;  %383 = vmatprep.subr.bf16.mxu1 %v405_v14 }
  0x1b   :  { %362 = vmatpush3.bf16.msra.mxu0 %v406_v15  ;;  %391 = vmatpush3.bf16.msra.mxu1 %v406_v15 }
  0x1c   :  { %363 = vmatprep.subr.bf16.mxu0 %v407_v16  ;;  %384 = vmatprep.subr.bf16.mxu1 %v407_v16 }
  0x1f   :  { %364 = vmatpush3.bf16.msra.mxu0 %v408_v17  ;;  %392 = vmatpush3.bf16.msra.mxu1 %v408_v17 }
  0x22   :  { %214 = vmatmul.mubr.bf16.vlgmr.msra.gmra.mxu0 %v409_v18  ;;  %222 = vmatmul.mubr.bf16.vlgmr.msra.gmra.mxu1 %v412_v19 }
  0xe2   :  { %v365_v20 = vpop.f32.mrf.mxu0  ;;  %v371_v21 = vpop.f32.mrf.mxu1 }
  0xe4   :  { %v366_v22 = vpop.f32.mrf.mxu0  ;;  %v372_v23 = vpop.f32.mrf.mxu1 }
  0xe5   :  { %v367_v24 = vadd.f32 %v366_v22, %v365_v20  ;;  %v373_v25 = vadd.f32 %v372_v23, %v371_v21 }
  0xe6   :  { %v368_v26 = vpop.f32.mrf.mxu0  ;;  %v374_v27 = vpop.f32.mrf.mxu1 }
  0xe7   :  { %v252_v33 = vadd.f32 %v367_v24, %v329_v28  ;;  %v285_v34 = vmul.f32 %v367_v24, %v367_v24  ;;  %v254_v35 = vadd.f32 %v373_v25, %v329_v28  ;;  %v287_v40 = vmul.f32 %v373_v25, %v373_v25 }
  0xe8   :  { %v369_v29 = vpop.f32.mrf.mxu0  ;;  %v375_v30 = vpop.f32.mrf.mxu1 }
  0xe9   :  { %v370_v31 = vadd.f32 %v369_v29, %v368_v26  ;;  %v376_v32 = vadd.f32 %v375_v30, %v374_v27 }
  0xeb   :  { %v253_v36 = vadd.f32 %v370_v31, %v329_v28  ;;  %v276_v37 = vadd.f32 %v370_v31, %v367_v24  ;;  %v286_v38 = vmul.f32 %v370_v31, %v370_v31  ;;  %v255_v39 = vadd.f32 %v376_v32, %v329_v28 }
  0xec   :  { %v288_v46 = vmul.f32 %v376_v32, %v376_v32 }
  0xed   :  { %v341_v41 = vpack.c.bf16 %v253_v36, %v252_v33  ;;  %v289_v42 = vadd.f32 %v286_v38, %v285_v34  ;;  %v346_v43 = vpack.c.bf16 %v255_v39, %v254_v35  ;;  %v277_v44 = vadd.f32 %v373_v25, %v276_v37 }
  0xef   :  { %342 = vst [vmem:[%s515_s3] sm:$0xff] %v341_v41   ;;  %348 = vst [vmem:[%s515_s3 + $0x8] sm:$0xff] %v346_v43   ;;  %v278_v45 = vadd.f32 %v376_v32, %v277_v44  ;;  %v290_v47 = vadd.f32 %v289_v42, %v287_v40 }
  0xf1   :  { %v279_v48 = vrot.slane %v278_v45, 4  ;;  %v291_v49 = vadd.f32 %v290_v47, %v288_v46 }
  0xf3   :  { %v280_v50 = vadd.f32 %v279_v48, %v278_v45  ;;  %v292_v51 = vrot.slane %v291_v49, 4 }
  0xf5   :  { %v281_v52 = vrot.slane %v280_v50, 2  ;;  %v293_v53 = vadd.f32 %v292_v51, %v291_v49 }
  0xf7   :  { %v282_v54 = vadd.f32 %v281_v52, %v280_v50  ;;  %v294_v55 = vrot.slane %v293_v53, 2 }
  0xf9   :  { %v283_v56 = vrot.slane %v282_v54, 1  ;;  %v295_v57 = vadd.f32 %v294_v55, %v293_v53 }
  0xfb   :  { %v296_v58 = vrot.slane %v295_v57, 1  ;;  %v284_v59 = vadd.f32 %v283_v56, %v282_v54 }
  0xfd   :  { %v297_v60 = vadd.f32 %v296_v58, %v295_v57 }
  0xff   :  { %v299_v61 = vsel %vm298_vm0, %v284_v59, %v297_v60 }
 0x100   :  { %300 = vst [vmem:[%s516_s4] sm:$0x3] %v299_v61 }

// kernel: encoder_forward.19
= control target key start
LH: loop header
LB: loop body
LE: loop exit
PB: predicated region body
PF: predicated region fallthrough
CT: control target
= control target key end

     0   :  { %vm226_vm0 = vcmask 1040384   ;;  %s374_s1 = inlined_call_operand.vmem [shape: bf16[128,128], index: 1, kind: input, shape index: {}]   ;;  %s375_s0 = inlined_call_operand.vmem [shape: bf16[32,128], index: 0, kind: input, shape index: {}]   ;;  %s376_s2 = inlined_call_operand.vmem [shape: f32[1,128], index: 2, kind: input, shape index: {}]   ;;  %s377_s3 = inlined_call_operand.vmem [shape: bf16[32,128], index: 3, kind: output, shape index: {0}]   ;;  %s378_s4 = inlined_call_operand.vmem [shape: f32[1,2,128], index: 4, kind: output, shape index: {1}]  }
   0x1   :  { %v297_v0 = vld [vmem:[%s374_s1 + $0x38] sm:$0xff]   ;;  %v298_v1 = vld [vmem:[%s374_s1 + $0x30] sm:$0xff]   ;;  %v299_v2 = vld [vmem:[%s374_s1 + $0x28] sm:$0xff]  }
   0x2   :  { %277 = vmatprep.subr.bf16.mxu0 %v297_v0  ;;  %v300_v3 = vld [vmem:[%s374_s1 + $0x20] sm:$0xff]   ;;  %v301_v5 = vld [vmem:[%s374_s1 + $0x18] sm:$0xff]   ;;  %v302_v6 = vld [vmem:[%s374_s1 + $0x10] sm:$0xff]  }
   0x3   :  { %278 = vmatpush3.bf16.msra.mxu0 %v297_v0  ;;  %v305_v4 = vld [vmem:[%s375_s0] sm:$0xff]   ;;  %v303_v7 = vld [vmem:[%s374_s1 + $0x8] sm:$0xff]  }
   0x4   :  { %279 = vmatprep.subr.bf16.mxu0 %v298_v1  ;;  %293 = vmatprep.mubr.bf16.mxu0 %v305_v4  ;;  %v304_v8 = vld [vmem:[%s374_s1] sm:$0xff]   ;;  %v306_v9 = vld [vmem:[%s375_s0 + $0x8] sm:$0xff]  }
   0x5   :  { %v247_v11 = vld [vmem:[%s376_s2] ss:$0 sm:$0xff] }
   0x7   :  { %280 = vmatpush3.bf16.msra.mxu0 %v298_v1 }
   0x8   :  { %281 = vmatprep.subr.bf16.mxu0 %v299_v2 }
   0xb   :  { %282 = vmatpush3.bf16.msra.mxu0 %v299_v2 }
   0xc   :  { %283 = vmatprep.subr.bf16.mxu0 %v300_v3 }
   0xf   :  { %284 = vmatpush3.bf16.msra.mxu0 %v300_v3 }
  0x10   :  { %285 = vmatprep.subr.bf16.mxu0 %v301_v5 }
  0x13   :  { %286 = vmatpush3.bf16.msra.mxu0 %v301_v5 }
  0x14   :  { %287 = vmatprep.subr.bf16.mxu0 %v302_v6 }
  0x17   :  { %288 = vmatpush3.bf16.msra.mxu0 %v302_v6 }
  0x18   :  { %289 = vmatprep.subr.bf16.mxu0 %v303_v7 }
  0x1b   :  { %290 = vmatpush3.bf16.msra.mxu0 %v303_v7 }
  0x1c   :  { %291 = vmatprep.subr.bf16.mxu0 %v304_v8 }
  0x1f   :  { %292 = vmatpush3.bf16.msra.mxu0 %v304_v8 }
  0x22   :  { %294 = vmatmul.mubr.bf16.vlgmr.msra.gmra.mxu0 %v306_v9 }
  0xe2   :  { %v295_v10 = vpop.f32.mrf.mxu0 }
  0xe3   :  { %v182_v14 = vadd.f32 %v295_v10, %v247_v11  ;;  %v215_v23 = vmul.f32 %v295_v10, %v295_v10 }
  0xe4   :  { %v143_v12 = vpop.f32.mrf.mxu0 }
  0xe5   :  { %v180_v16 = vadd.f32 %v247_v11, %v143_v12  ;;  %v213_v17 = vmul.f32 %v143_v12, %v143_v12 }
  0xe6   :  { %v296_v13 = vpop.f32.mrf.mxu0 }
  0xe7   :  { %v183_v15 = vadd.f32 %v296_v13, %v247_v11  ;;  %v216_v27 = vmul.f32 %v296_v13, %v296_v13 }
  0xe8   :  { %v146_v18 = vpop.f32.mrf.mxu0 }
  0xe9   :  { %v264_v19 = vpack.c.bf16 %v183_v15, %v182_v14  ;;  %v181_v20 = vadd.f32 %v247_v11, %v146_v18  ;;  %v204_v21 = vadd.f32 %v146_v18, %v143_v12  ;;  %v214_v22 = vmul.f32 %v146_v18, %v146_v18 }
  0xeb   :  { %v259_v24 = vpack.c.bf16 %v181_v20, %v180_v16  ;;  %266 = vst [vmem:[%s377_s3 + $0x8] sm:$0xff] %v264_v19   ;;  %v205_v25 = vadd.f32 %v295_v10, %v204_v21  ;;  %v217_v26 = vadd.f32 %v214_v22, %v213_v17 }
  0xed   :  { %260 = vst [vmem:[%s377_s3] sm:$0xff] %v259_v24   ;;  %v206_v28 = vadd.f32 %v296_v13, %v205_v25  ;;  %v218_v29 = vadd.f32 %v217_v26, %v215_v23 }
  0xef   :  { %v207_v30 = vrot.slane %v206_v28, 4  ;;  %v219_v31 = vadd.f32 %v218_v29, %v216_v27 }
  0xf1   :  { %v208_v32 = vadd.f32 %v207_v30, %v206_v28  ;;  %v220_v33 = vrot.slane %v219_v31, 4 }
  0xf3   :  { %v209_v34 = vrot.slane %v208_v32, 2  ;;  %v221_v35 = vadd.f32 %v220_v33, %v219_v31 }
  0xf5   :  { %v210_v36 = vadd.f32 %v209_v34, %v208_v32  ;;  %v222_v37 = vrot.slane %v221_v35, 2 }
  0xf7   :  { %v211_v38 = vrot.slane %v210_v36, 1  ;;  %v223_v39 = vadd.f32 %v222_v37, %v221_v35 }
  0xf9   :  { %v224_v40 = vrot.slane %v223_v39, 1  ;;  %v212_v41 = vadd.f32 %v211_v38, %v210_v36 }
  0xfb   :  { %v225_v42 = vadd.f32 %v224_v40, %v223_v39 }
  0xfd   :  { %v227_v43 = vsel %vm226_vm0, %v212_v41, %v225_v42 }
  0xfe   :  { %228 = vst [vmem:[%s378_s4] sm:$0x3] %v227_v43 }

// kernel: tile.108
= control target key start
LH: loop header
LB: loop body
LE: loop exit
PB: predicated region body
PF: predicated region fallthrough
CT: control target
= control target key end

     0   :  { %s22_s0 = inlined_call_operand.vmem [shape: f32[8], index: 0, kind: input, shape index: {}]   ;;  %s23_s1 = inlined_call_operand.vmem [shape: f32[4,8], index: 1, kind: output, shape index: {}]  }
   0x1   :  { %v4_v0 = vld [vmem:[%s22_s0] ss:$0 sm:$0xff] }
   0x2   :  { %5 = vst [vmem:[%s23_s1] sm:$0xf] %v4_v0 }

// kernel: tile.109
= control target key start
LH: loop header
LB: loop body
LE: loop exit
PB: predicated region body
PF: predicated region fallthrough
CT: control target
= control target key end

     0   :  { %vm8_vm0 = vcmask 64512   ;;  %s40_s8 = smov 8   ;;  %s41_s9 = smov 16   ;;  %vm14_vm1 = vcmask 261312   ;;  %vm20_vm2 = vcmask 195712   ;;  %vm26_vm3 = vcmask 130112   ;;  %s58_s0 = inlined_call_operand.vmem [shape: f32[4,8], index: 0, kind: input, shape index: {}]   ;;  %s59_s1 = inlined_call_operand.vmem [shape: f32[32], index: 1, kind: output, shape index: {}]  }
   0x1   :  { %v5_v0 = vld [vmem:[%s58_s0] sm:$0xf]  ;;  %s39_s0 = smov 24  }
   0x2   :  { %6 = vst [vmem:[#allocation1] sm:$0xf] %v5_v0 }
   0x9   :  { %v11_v1 = vld [vmem:[#allocation1 + $0x3] sm:$0x1]   ;;  %v23_v2 = vld [vmem:[#allocation1 + $0x1] sm:$0x1]   ;;  %v7_v3 = vld [vmem:[#allocation1] sm:$0x1]  }
   0xa   :  { %12 = vrot.lane.b32.xlu0 %v11_v1, %s39_s0  ;;  %24 = vrot.lane.b32.xlu1 %v23_v2, %s40_s8  ;;  %v17_v4 = vld [vmem:[#allocation1 + $0x2] sm:$0x1]   ;;  %9 = vst.msk [vmem:[#allocation0] sm:$0x1] %vm8_vm0, %v7_v3  }
   0xe   :  { %18 = vrot.lane.b32.xlu0 %v17_v4, %s41_s9 }
  0x7c   :  { %v13_v5 = vpop.permute.xlu0 %12   ;;  %v25_v6 = vpop.permute.xlu1 %24  }
  0x7d   :  { %15 = vst.msk [vmem:[#allocation0] sm:$0x1] %vm14_vm1, %v13_v5  }
  0x80   :  { %v19_v7 = vpop.permute.xlu0 %18  }
  0x81   :  { %21 = vst.msk [vmem:[#allocation0] sm:$0x1] %vm20_vm2, %v19_v7  }
  0x82   :  { %27 = vst.msk [vmem:[#allocation0] sm:$0x1] %vm26_vm3, %v25_v6  }
  0x89   :  { %v32_v8 = vld [vmem:[#allocation0] sm:$0x1] }
  0x8a   :  { %35 = vst [vmem:[%s59_s1] sm:$0x1] %v32_v8 }

// kernel: encoder_forward.23
= control target key start
LH: loop header
LB: loop body
LE: loop exit
PB: predicated region body
PF: predicated region fallthrough
CT: control target
= control target key end

     0   :  { %s2210_s12 = smov 0   ;;  %s2212_s13 = smov 0   ;;  %s2483_s0 = inlined_call_operand.vmem [shape: bf16[512,512], index: 0, kind: input, shape index: {}]   ;;  %s2484_s1 = inlined_call_operand.vmem [shape: bf16[512,128], index: 1, kind: input, shape index: {}]   ;;  %s2485_s2 = inlined_call_operand.vmem [shape: f32[1,128], index: 2, kind: input, shape index: {}]   ;;  %s2486_s3 = inlined_call_operand.vmem [shape: f32[512,128], index: 3, kind: output, shape index: {}]  }
   0x1   :  { %s2214_s14 = smov 0  }
   0x2 LB: > { %s32_s15 = sadd.s32 1, %s2184_s13  ;;  %p1620_p0 = scmp.ge.s32.totalorder %s2188_s14, 1  ;;  %s2188_s14 = sphi %s2214_s14, %s13_s14   ;;  %s2184_s13 = sphi %s2212_s13, %s2488_s13   ;;  %s2180_s12 = sphi %s2210_s12, %s2487_s12  }
   0x3   : > { %p34_p1 = scmp.ge.s32.totalorder %s32_s15, 2  ;;  %p191_p2 = scmp.lt.s32.totalorder %s2188_s14, 3 }
   0x5   : > { %s2490_s15 = smov (%p34_p1, %s32_s15), 0  ;;  %p192_p3 = pnand %p1620_p0, %p191_p2 }
   0x6   : > { %s1621_s25 = sshll.u32 (!%p192_p3), %s2180_s12, 5 }
   0x7   : > { %195 = sbr.rel (%p192_p3) target bundleno = 387 (0x183), region = 32  ;;  %p236_p4 = scmp.lt.s32.totalorder (!%p192_p3), %s1621_s25, 63 }
   0xc   : > { %v1974_v0 = vld [vmem:[%s2484_s1 + $0x78] sm:$0xff]   ;;  %v1978_v4 = vld [vmem:[%s2484_s1 + $0x70] sm:$0xff]   ;;  %v1982_v8 = vld [vmem:[%s2484_s1 + $0x68] sm:$0xff]   ;;  %s2492_s25 = smov (!%p236_p4, %s1621_s25), 63 }
   0xd   : > { %v1975_v1 = vld [vmem:[%s2484_s1 + $0xf8] sm:$0xff]   ;;  %1726 = vmatprep.subr.bf16.mxu0 %v1974_v0  ;;  %v1979_v5 = vld [vmem:[%s2484_s1 + $0xf0] sm:$0xff]   ;;  %v1983_v9 = vld [vmem:[%s2484_s1 + $0xe8] sm:$0xff]   ;;  %s1725_s24 = sshll.u32 %s2492_s25, 4  ;;  %s1625_s17 = sshll.u32 %s2492_s25, 3 }
   0xe   : > { %v1976_v2 = vld [vmem:[%s2484_s1 + $0x38] sm:$0xff]   ;;  %1838 = vmatprep.subr.bf16.mxu1 %v1975_v1  ;;  %v1980_v6 = vld [vmem:[%s2484_s1 + $0x30] sm:$0xff]   ;;  %v1984_v10 = vld [vmem:[%s2484_s1 + $0x28] sm:$0xff]   ;;  %s2327_s12 = scalar_lea.vmem %s2483_s0, %s1725_s24  ;;  %s2412_s20 = scalar_lea.vmem %s2486_s3, %s1625_s17 }
   0xf   : > { %v1977_v3 = vld [vmem:[%s2484_s1 + $0xb8] sm:$0xff]   ;;  %1727 = vmatpush3.bf16.msra.mxu0 %v1976_v2  ;;  %v1981_v7 = vld [vmem:[%s2484_s1 + $0xb0] sm:$0xff]   ;;  %v1985_v11 = vld [vmem:[%s2484_s1 + $0xa8] sm:$0xff]  }
  0x10   : > { %1839 = vmatpush3.bf16.msra.mxu1 %v1977_v3  ;;  %1728 = vmatprep.subr.bf16.mxu0 %v1978_v4  ;;  %v1986_v12 = vld [vmem:[%s2484_s1 + $0x60] sm:$0xff]   ;;  %v1990_v16 = vld [vmem:[%s2484_s1 + $0x58] sm:$0xff]   ;;  %v1994_v20 = vld [vmem:[%s2484_s1 + $0x50] sm:$0xff]  }
  0x11   : > { %1840 = vmatprep.subr.bf16.mxu1 %v1979_v5  ;;  %v1987_v13 = vld [vmem:[%s2484_s1 + $0xe0] sm:$0xff]   ;;  %v1991_v17 = vld [vmem:[%s2484_s1 + $0xd8] sm:$0xff]   ;;  %v1995_v21 = vld [vmem:[%s2484_s1 + $0xd0] sm:$0xff]  }
  0x12   : > { %v1988_v14 = vld [vmem:[%s2484_s1 + $0x20] sm:$0xff]   ;;  %v1992_v18 = vld [vmem:[%s2484_s1 + $0x18] sm:$0xff]   ;;  %v1996_v22 = vld [vmem:[%s2484_s1 + $0x10] sm:$0xff]  }
  0x13   : > { %1729 = vmatpush3.bf16.msra.mxu0 %v1980_v6  ;;  %v1989_v15 = vld [vmem:[%s2484_s1 + $0xa0] sm:$0xff]   ;;  %v1993_v19 = vld [vmem:[%s2484_s1 + $0x98] sm:$0xff]   ;;  %v1997_v23 = vld [vmem:[%s2484_s1 + $0x90] sm:$0xff]  }
  0x14   : > { %1841 = vmatpush3.bf16.msra.mxu1 %v1981_v7  ;;  %1730 = vmatprep.subr.bf16.mxu0 %v1982_v8  ;;  %v1998_v24 = vld [vmem:[%s2484_s1 + $0x48] sm:$0xff]   ;;  %v2002_v28 = vld [vmem:[%s2484_s1 + $0x40] sm:$0xff]  }
  0x15   : > { %1842 = vmatprep.subr.bf16.mxu1 %v1983_v9  ;;  %v1999_v25 = vld [vmem:[%s2484_s1 + $0xc8] sm:$0xff]   ;;  %v2003_v29 = vld [vmem:[%s2484_s1 + $0xc0] sm:$0xff]  }
  0x16   : > { %v2000_v26 = vld [vmem:[%s2484_s1 + $0x8] sm:$0xff]   ;;  %v2004_v30 = vld [vmem:[%s2484_s1] sm:$0xff]  }
  0x17   : > { %1731 = vmatpush3.bf16.msra.mxu0 %v1984_v10  ;;  %v2001_v27 = vld [vmem:[%s2484_s1 + $0x88] sm:$0xff]   ;;  %v2005_v31 = vld [vmem:[%s2484_s1 + $0x80] sm:$0xff]  }
  0x18   : > { %1843 = vmatpush3.bf16.msra.mxu1 %v1985_v11  ;;  %1732 = vmatprep.subr.bf16.mxu0 %v1986_v12  ;;  %v2006_v32 = vld [vmem:[%s2327_s12] ss:$16 sps:$4 sm:$0xff]   ;;  %v2008_v33 = vld [vmem:[%s2327_s12 + $0x4] ss:$16 sps:$4 sm:$0xff]   ;;  %v2009_v34 = vld [vmem:[%s2327_s12 + $0x8] ss:$16 sps:$4 sm:$0xff]  }
  0x19   : > { %1844 = vmatprep.subr.bf16.mxu1 %v1987_v13  ;;  %v2011_v35 = vld [vmem:[%s2327_s12 + $0xc] ss:$16 sps:$4 sm:$0xff]   ;;  %1008 = vmatprep.mubr.bf16.mxu0 %v2008_v33  ;;  %v2012_v36 = vld [vmem:[%s2327_s12 + $0x24] ss:$16 sps:$4 sm:$0xff]   ;;  %v2016_v38 = vld [vmem:[%s2327_s12 + $0x20] ss:$16 sps:$4 sm:$0xff]  }
  0x1a   : > { %1169 = vmatprep.mubr.bf16.mxu1 %v2011_v35  ;;  %v2014_v37 = vld [vmem:[%s2327_s12 + $0x2c] ss:$16 sps:$4 sm:$0xff]   ;;  %v2017_v39 = vld [vmem:[%s2327_s12 + $0x28] ss:$16 sps:$4 sm:$0xff]   ;;  %v2018_v40 = vld [vmem:[%s2327_s12 + $0x44] ss:$16 sps:$4 sm:$0xff]  }
  0x1b   : > { %1733 = vmatpush3.bf16.msra.mxu0 %v1988_v14  ;;  %v2020_v41 = vld [vmem:[%s2327_s12 + $0x4c] ss:$16 sps:$4 sm:$0xff]   ;;  %v2022_v42 = vld [vmem:[%s2327_s12 + $0x40] ss:$16 sps:$4 sm:$0xff]   ;;  %v2023_v43 = vld [vmem:[%s2327_s12 + $0x48] ss:$16 sps:$4 sm:$0xff]  }
  0x1c   : > { %1845 = vmatpush3.bf16.msra.mxu1 %v1989_v15  ;;  %1734 = vmatprep.subr.bf16.mxu0 %v1990_v16  ;;  %v2024_v44 = vld [vmem:[%s2327_s12 + $0x64] ss:$16 sps:$4 sm:$0xff]   ;;  %v2026_v45 = vld [vmem:[%s2327_s12 + $0x6c] ss:$16 sps:$4 sm:$0xff]   ;;  %v2028_v46 = vld [vmem:[%s2327_s12 + $0x60] ss:$16 sps:$4 sm:$0xff]  }
  0x1d   : > { %1846 = vmatprep.subr.bf16.mxu1 %v1991_v17  ;;  %v2029_v47 = vld [vmem:[%s2327_s12 + $0x68] ss:$16 sps:$4 sm:$0xff]   ;;  %v2030_v48 = vld [vmem:[%s2327_s12 + $0x84] ss:$16 sps:$4 sm:$0xff]   ;;  %v2032_v49 = vld [vmem:[%s2327_s12 + $0x8c] ss:$16 sps:$4 sm:$0xff]  }
  0x1e   : > { %v2034_v50 = vld [vmem:[%s2327_s12 + $0x80] ss:$16 sps:$4 sm:$0xff]   ;;  %v2035_v51 = vld [vmem:[%s2327_s12 + $0x88] ss:$16 sps:$4 sm:$0xff]   ;;  %v2036_v52 = vld [vmem:[%s2327_s12 + $0xa4] ss:$16 sps:$4 sm:$0xff]  }
  0x1f   : > { %1735 = vmatpush3.bf16.msra.mxu0 %v1992_v18  ;;  %v2038_v53 = vld [vmem:[%s2327_s12 + $0xac] ss:$16 sps:$4 sm:$0xff]   ;;  %v2040_v54 = vld [vmem:[%s2327_s12 + $0xa0] ss:$16 sps:$4 sm:$0xff]   ;;  %v2041_v55 = vld [vmem:[%s2327_s12 + $0xa8] ss:$16 sps:$4 sm:$0xff]  }
  0x20   : > { %1847 = vmatpush3.bf16.msra.mxu1 %v1993_v19  ;;  %1736 = vmatprep.subr.bf16.mxu0 %v1994_v20  ;;  %v2042_v56 = vld [vmem:[%s2327_s12 + $0xc4] ss:$16 sps:$4 sm:$0xff]   ;;  %v2044_v57 = vld [vmem:[%s2327_s12 + $0xcc] ss:$16 sps:$4 sm:$0xff]   ;;  %v2046_v58 = vld [vmem:[%s2327_s12 + $0xc0] ss:$16 sps:$4 sm:$0xff]  }
  0x21   : > { %1848 = vmatprep.subr.bf16.mxu1 %v1995_v21  ;;  %v2047_v59 = vld [vmem:[%s2327_s12 + $0xc8] ss:$16 sps:$4 sm:$0xff]   ;;  %v2048_v60 = vld [vmem:[%s2327_s12 + $0xe4] ss:$16 sps:$4 sm:$0xff]   ;;  %v2050_v61 = vld [vmem:[%s2327_s12 + $0xec] ss:$16 sps:$4 sm:$0xff]  }
  0x22   : > { %v2052_v62 = vld [vmem:[%s2327_s12 + $0xe0] ss:$16 sps:$4 sm:$0xff]   ;;  %v2053_v63 = vld [vmem:[%s2327_s12 + $0xe8] ss:$16 sps:$4 sm:$0xff]   ;;  %v2054_v0 = vld [vmem:[%s2327_s12 + $0x104] ss:$16 sps:$4 sm:$0xff]  }
  0x23   : > { %1737 = vmatpush3.bf16.msra.mxu0 %v1996_v22  ;;  %v2056_v1 = vld [vmem:[%s2327_s12 + $0x10c] ss:$16 sps:$4 sm:$0xff]   ;;  %v2058_v2 = vld [vmem:[%s2327_s12 + $0x100] ss:$16 sps:$4 sm:$0xff]   ;;  %v2059_v3 = vld [vmem:[%s2327_s12 + $0x108] ss:$16 sps:$4 sm:$0xff]  }
  0x24   : > { %1849 = vmatpush3.bf16.msra.mxu1 %v1997_v23  ;;  %1738 = vmatprep.subr.bf16.mxu0 %v1998_v24  ;;  %v2060_v4 = vld [vmem:[%s2327_s12 + $0x124] ss:$16 sps:$4 sm:$0xff]   ;;  %v2062_v5 = vld [vmem:[%s2327_s12 + $0x12c] ss:$16 sps:$4 sm:$0xff]   ;;  %v2064_v6 = vld [vmem:[%s2327_s12 + $0x120] ss:$16 sps:$4 sm:$0xff]  }
  0x25   : > { %1850 = vmatprep.subr.bf16.mxu1 %v1999_v25  ;;  %v2065_v7 = vld [vmem:[%s2327_s12 + $0x128] ss:$16 sps:$4 sm:$0xff]   ;;  %v2066_v8 = vld [vmem:[%s2327_s12 + $0x144] ss:$16 sps:$4 sm:$0xff]   ;;  %v2068_v9 = vld [vmem:[%s2327_s12 + $0x14c] ss:$16 sps:$4 sm:$0xff]  }
  0x26   : > { %v2070_v10 = vld [vmem:[%s2327_s12 + $0x140] ss:$16 sps:$4 sm:$0xff]   ;;  %v2071_v11 = vld [vmem:[%s2327_s12 + $0x148] ss:$16 sps:$4 sm:$0xff]   ;;  %v2072_v12 = vld [vmem:[%s2327_s12 + $0x164] ss:$16 sps:$4 sm:$0xff]  }
  0x27   : > { %1739 = vmatpush3.bf16.msra.mxu0 %v2000_v26  ;;  %v2074_v13 = vld [vmem:[%s2327_s12 + $0x16c] ss:$16 sps:$4 sm:$0xff]   ;;  %v2076_v14 = vld [vmem:[%s2327_s12 + $0x160] ss:$16 sps:$4 sm:$0xff]   ;;  %v2077_v15 = vld [vmem:[%s2327_s12 + $0x168] ss:$16 sps:$4 sm:$0xff]  }
  0x28   : > { %1851 = vmatpush3.bf16.msra.mxu1 %v2001_v27  ;;  %1740 = vmatprep.subr.bf16.mxu0 %v2002_v28  ;;  %v2078_v16 = vld [vmem:[%s2327_s12 + $0x184] ss:$16 sps:$4 sm:$0xff]   ;;  %v2080_v17 = vld [vmem:[%s2327_s12 + $0x18c] ss:$16 sps:$4 sm:$0xff]   ;;  %v2082_v18 = vld [vmem:[%s2327_s12 + $0x180] ss:$16 sps:$4 sm:$0xff]  }
  0x29   : > { %1852 = vmatprep.subr.bf16.mxu1 %v2003_v29  ;;  %v2083_v19 = vld [vmem:[%s2327_s12 + $0x188] ss:$16 sps:$4 sm:$0xff]   ;;  %v2084_v20 = vld [vmem:[%s2327_s12 + $0x1a4] ss:$16 sps:$4 sm:$0xff]   ;;  %v2086_v21 = vld [vmem:[%s2327_s12 + $0x1ac] ss:$16 sps:$4 sm:$0xff]  }
  0x2a   : > { %v2088_v22 = vld [vmem:[%s2327_s12 + $0x1a0] ss:$16 sps:$4 sm:$0xff]   ;;  %v2089_v23 = vld [vmem:[%s2327_s12 + $0x1a8] ss:$16 sps:$4 sm:$0xff]   ;;  %v2090_v24 = vld [vmem:[%s2327_s12 + $0x1c4] ss:$16 sps:$4 sm:$0xff]  }
  0x2b   : > { %1741 = vmatpush3.bf16.msra.mxu0 %v2004_v30  ;;  %v2092_v25 = vld [vmem:[%s2327_s12 + $0x1cc] ss:$16 sps:$4 sm:$0xff]   ;;  %v2094_v26 = vld [vmem:[%s2327_s12 + $0x1c0] ss:$16 sps:$4 sm:$0xff]   ;;  %v2095_v27 = vld [vmem:[%s2327_s12 + $0x1c8] ss:$16 sps:$4 sm:$0xff]  }
  0x2c   : > { %1853 = vmatpush3.bf16.msra.mxu1 %v2005_v31  ;;  %v2096_v28 = vld [vmem:[%s2327_s12 + $0x1e4] ss:$16 sps:$4 sm:$0xff]   ;;  %v2098_v29 = vld [vmem:[%s2327_s12 + $0x1ec] ss:$16 sps:$4 sm:$0xff]   ;;  %v2100_v30 = vld [vmem:[%s2327_s12 + $0x1e0] ss:$16 sps:$4 sm:$0xff]  }
  0x2d   : > { %v2101_v31 = vld [vmem:[%s2327_s12 + $0x1e8] ss:$16 sps:$4 sm:$0xff]  }
  0x2e   : > { %1009 = vmatmul.mubr.bf16.vlgmr.msra.gmra.mxu0 %v2006_v32 }
  0x2f   : > { %1170 = vmatmul.mubr.bf16.vlgmr.msra.gmra.mxu1 %v2009_v34  ;;  %1016 = vmatprep.mubr.bf16.mxu0 %v2012_v36 }
  0x30   : > { %1177 = vmatprep.mubr.bf16.mxu1 %v2014_v37 }
  0x36   : > { %1017 = vmatmul.mubr.bf16.gmra.mxu0 %v2016_v38 }
  0x37   : > { %1178 = vmatmul.mubr.bf16.gmra.mxu1 %v2017_v39  ;;  %1024 = vmatprep.mubr.bf16.mxu0 %v2018_v40  ;;  %v2402_v39 = vld [vmem:[%s2485_s2] ss:$0 sm:$0xff] }
  0x38   : > { %1185 = vmatprep.mubr.bf16.mxu1 %v2020_v41 }
  0x3e   : > { %1025 = vmatmul.mubr.bf16.gmra.mxu0 %v2022_v42 }
  0x3f   : > { %1186 = vmatmul.mubr.bf16.gmra.mxu1 %v2023_v43  ;;  %1032 = vmatprep.mubr.bf16.mxu0 %v2024_v44 }
  0x40   : > { %1193 = vmatprep.mubr.bf16.mxu1 %v2026_v45 }
  0x46   : > { %1033 = vmatmul.mubr.bf16.gmra.mxu0 %v2028_v46 }
  0x47   : > { %1194 = vmatmul.mubr.bf16.gmra.mxu1 %v2029_v47  ;;  %1040 = vmatprep.mubr.bf16.mxu0 %v2030_v48 }
  0x48   : > { %1201 = vmatprep.mubr.bf16.mxu1 %v2032_v49 }
  0x4e   : > { %1041 = vmatmul.mubr.bf16.gmra.mxu0 %v2034_v50 }
  0x4f   : > { %1202 = vmatmul.mubr.bf16.gmra.mxu1 %v2035_v51  ;;  %1048 = vmatprep.mubr.bf16.mxu0 %v2036_v52 }
  0x50   : > { %1209 = vmatprep.mubr.bf16.mxu1 %v2038_v53 }
  0x56   : > { %1049 = vmatmul.mubr.bf16.gmra.mxu0 %v2040_v54 }
  0x57   : > { %1210 = vmatmul.mubr.bf16.gmra.mxu1 %v2041_v55  ;;  %1056 = vmatprep.mubr.bf16.mxu0 %v2042_v56 }
  0x58   : > { %1217 = vmatprep.mubr.bf16.mxu1 %v2044_v57 }
  0x5e   : > { %1057 = vmatmul.mubr.bf16.gmra.mxu0 %v2046_v58 }
  0x5f   : > { %1218 = vmatmul.mubr.bf16.gmra.mxu1 %v2047_v59  ;;  %1064 = vmatprep.mubr.bf16.mxu0 %v2048_v60 }
  0x60   : > { %1225 = vmatprep.mubr.bf16.mxu1 %v2050_v61 }
  0x66   : > { %1065 = vmatmul.mubr.bf16.gmra.mxu0 %v2052_v62 }
  0x67   : > { %1226 = vmatmul.mubr.bf16.gmra.mxu1 %v2053_v63  ;;  %1072 = vmatprep.mubr.bf16.mxu0 %v2054_v0 }
  0x68   : > { %1233 = vmatprep.mubr.bf16.mxu1 %v2056_v1 }
  0x6e   : > { %1073 = vmatmul.mubr.bf16.gmra.mxu0 %v2058_v2 }
  0x6f   : > { %1234 = vmatmul.mubr.bf16.gmra.mxu1 %v2059_v3  ;;  %1080 = vmatprep.mubr.bf16.mxu0 %v2060_v4 }
  0x70   : > { %1241 = vmatprep.mubr.bf16.mxu1 %v2062_v5 }
  0x76   : > { %1081 = vmatmul.mubr.bf16.gmra.mxu0 %v2064_v6 }
  0x77   : > { %1242 = vmatmul.mubr.bf16.gmra.mxu1 %v2065_v7  ;;  %1088 = vmatprep.mubr.bf16.mxu0 %v2066_v8 }
  0x78   : > { %1249 = vmatprep.mubr.bf16.mxu1 %v2068_v9 }
  0x7e   : > { %1089 = vmatmul.mubr.bf16.gmra.mxu0 %v2070_v10 }
  0x7f   : > { %1250 = vmatmul.mubr.bf16.gmra.mxu1 %v2071_v11  ;;  %1096 = vmatprep.mubr.bf16.mxu0 %v2072_v12 }
  0x80   : > { %1257 = vmatprep.mubr.bf16.mxu1 %v2074_v13 }
  0x86   : > { %1097 = vmatmul.mubr.bf16.gmra.mxu0 %v2076_v14 }
  0x87   : > { %1258 = vmatmul.mubr.bf16.gmra.mxu1 %v2077_v15  ;;  %1104 = vmatprep.mubr.bf16.mxu0 %v2078_v16 }
  0x88   : > { %1265 = vmatprep.mubr.bf16.mxu1 %v2080_v17 }
  0x8e   : > { %1105 = vmatmul.mubr.bf16.gmra.mxu0 %v2082_v18 }
  0x8f   : > { %1266 = vmatmul.mubr.bf16.gmra.mxu1 %v2083_v19  ;;  %1112 = vmatprep.mubr.bf16.mxu0 %v2084_v20 }
  0x90   : > { %1273 = vmatprep.mubr.bf16.mxu1 %v2086_v21 }
  0x96   : > { %1113 = vmatmul.mubr.bf16.gmra.mxu0 %v2088_v22 }
  0x97   : > { %1274 = vmatmul.mubr.bf16.gmra.mxu1 %v2089_v23  ;;  %1120 = vmatprep.mubr.bf16.mxu0 %v2090_v24 }
  0x98   : > { %1281 = vmatprep.mubr.bf16.mxu1 %v2092_v25 }
  0x9e   : > { %1121 = vmatmul.mubr.bf16.gmra.mxu0 %v2094_v26 }
  0x9f   : > { %1282 = vmatmul.mubr.bf16.gmra.mxu1 %v2095_v27  ;;  %1128 = vmatprep.mubr.bf16.mxu0 %v2096_v28 }
  0xa0   : > { %1289 = vmatprep.mubr.bf16.mxu1 %v2098_v29 }
  0xa6   : > { %1129 = vmatmul.mubr.bf16.gmra.mxu0 %v2100_v30 }
  0xa7   : > { %1290 = vmatmul.mubr.bf16.gmra.mxu1 %v2101_v31 }
  0xee   : > { %v1742_v32 = vpop.f32.mrf.mxu0 }
  0xef   : > { %v1854_v33 = vpop.f32.mrf.mxu1 }
  0xf0   : > { %v1743_v34 = vpop.f32.mrf.mxu0 }
  0xf1   : > { %v1744_v35 = vadd.f32 %v1743_v34, %v1742_v32  ;;  %v1855_v36 = vpop.f32.mrf.mxu1 }
  0xf2   : > { %v1856_v37 = vadd.f32 %v1855_v36, %v1854_v33  ;;  %v1745_v38 = vpop.f32.mrf.mxu0 }
  0xf3   : > { %v1857_v40 = vpop.f32.mrf.mxu1 }
  0xf4   : > { %v1172_v41 = vadd.f32 %v1856_v37, %v1744_v35  ;;  %v1746_v42 = vpop.f32.mrf.mxu0 }
  0xf5   : > { %v1747_v43 = vadd.f32 %v1746_v42, %v1745_v38  ;;  %v1858_v44 = vpop.f32.mrf.mxu1 }
  0xf6   : > { %v1404_v45 = vadd.f32 %v2402_v39, %v1172_v41  ;;  %v1859_v46 = vadd.f32 %v1858_v44, %v1857_v40  ;;  %v1748_v47 = vpop.f32.mrf.mxu0 }
  0xf7   : > { %v1860_v48 = vpop.f32.mrf.mxu1 }
  0xf8   : > { %2102 = vtanh.f32 %v1404_v45  ;;  %v1175_v49 = vadd.f32 %v1859_v46, %v1747_v43  ;;  %v1749_v50 = vpop.f32.mrf.mxu0 }
  0xf9   : > { %v1750_v51 = vadd.f32 %v1749_v50, %v1748_v47  ;;  %v1861_v52 = vpop.f32.mrf.mxu1 }
  0xfa   : > { %v1405_v53 = vadd.f32 %v2402_v39, %v1175_v49  ;;  %v1862_v54 = vadd.f32 %v1861_v52, %v1860_v48  ;;  %v1751_v55 = vpop.f32.mrf.mxu0 }
  0xfb   : > { %v1863_v56 = vpop.f32.mrf.mxu1 }
  0xfc   : > { %2104 = vtanh.f32 %v1405_v53  ;;  %v1180_v57 = vadd.f32 %v1862_v54, %v1750_v51  ;;  %v1752_v58 = vpop.f32.mrf.mxu0 }
  0xfd   : > { %v1753_v59 = vadd.f32 %v1752_v58, %v1751_v55  ;;  %v1864_v60 = vpop.f32.mrf.mxu1 }
  0xfe   : > { %v1406_v61 = vadd.f32 %v2402_v39, %v1180_v57  ;;  %v1865_v62 = vadd.f32 %v1864_v60, %v1863_v56  ;;  %v1754_v63 = vpop.f32.mrf.mxu0 }
  0xff   : > { %v1866_v0 = vpop.f32.mrf.mxu1 }
 0x100   : > { %2106 = vtanh.f32 %v1406_v61  ;;  %v1183_v1 = vadd.f32 %v1865_v62, %v1753_v59  ;;  %v1755_v2 = vpop.f32.mrf.mxu0 }
 0x101   : > { %v1756_v3 = vadd.f32 %v1755_v2, %v1754_v63  ;;  %v1867_v4 = vpop.f32.mrf.mxu1 }
 0x102   : > { %v1407_v5 = vadd.f32 %v2402_v39, %v1183_v1  ;;  %v1868_v6 = vadd.f32 %v1867_v4, %v1866_v0  ;;  %v1757_v7 = vpop.f32.mrf.mxu0 }
 0x103   : > { %v1869_v8 = vpop.f32.mrf.mxu1 }
 0x104   : > { %2108 = vtanh.f32 %v1407_v5  ;;  %v1188_v9 = vadd.f32 %v1868_v6, %v1756_v3  ;;  %v1758_v10 = vpop.f32.mrf.mxu0 }
 0x105   : > { %v2103_v11 = vpop.eup %2102  ;;  %v1759_v12 = vadd.f32 %v1758_v10, %v1757_v7  ;;  %v1870_v13 = vpop.f32.mrf.mxu1 }
 0x106   : > { %1468 = vst [vmem:[%s2412_s20] sm:$0xff] %v2103_v11  ;;  %v1408_v14 = vadd.f32 %v2402_v39, %v1188_v9  ;;  %v1871_v15 = vadd.f32 %v1870_v13, %v1869_v8  ;;  %v1760_v16 = vpop.f32.mrf.mxu0 }
 0x107   : > { %v1872_v17 = vpop.f32.mrf.mxu1 }
 0x108   : > { %2110 = vtanh.f32 %v1408_v14  ;;  %v1191_v18 = vadd.f32 %v1871_v15, %v1759_v12  ;;  %v1761_v19 = vpop.f32.mrf.mxu0 }
 0x109   : > { %v2105_v20 = vpop.eup %2104  ;;  %v1762_v21 = vadd.f32 %v1761_v19, %v1760_v16  ;;  %v1873_v22 = vpop.f32.mrf.mxu1 }
 0x10a   : > { %1469 = vst [vmem:[%s2412_s20 + $0x8] sm:$0xff] %v2105_v20  ;;  %v1409_v23 = vadd.f32 %v2402_v39, %v1191_v18  ;;  %v1874_v24 = vadd.f32 %v1873_v22, %v1872_v17  ;;  %v1763_v25 = vpop.f32.mrf.mxu0 }
 0x10b   : > { %v1875_v26 = vpop.f32.mrf.mxu1 }
 0x10c   : > { %2112 = vtanh.f32 %v1409_v23  ;;  %v1196_v27 = vadd.f32 %v1874_v24, %v1762_v21  ;;  %v1764_v28 = vpop.f32.mrf.mxu0 }
 0x10d   : > { %v2107_v29 = vpop.eup %2106  ;;  %v1765_v30 = vadd.f32 %v1764_v28, %v1763_v25  ;;  %v1876_v31 = vpop.f32.mrf.mxu1 }
 0x10e   : > { %1470 = vst [vmem:[%s2412_s20 + $0x10] sm:$0xff] %v2107_v29  ;;  %v1410_v32 = vadd.f32 %v2402_v39, %v1196_v27  ;;  %v1877_v33 = vadd.f32 %v1876_v31, %v1875_v26  ;;  %v1766_v34 = vpop.f32.mrf.mxu0 }
 0x10f   : > { %v1878_v35 = vpop.f32.mrf.mxu1 }
 0x110   : > { %2114 = vtanh.f32 %v1410_v32  ;;  %v1199_v36 = vadd.f32 %v1877_v33, %v1765_v30  ;;  %v1767_v37 = vpop.f32.mrf.mxu0 }
 0x111   : > { %v2109_v38 = vpop.eup %2108  ;;  %v1768_v40 = vadd.f32 %v1767_v37, %v1766_v34  ;;  %v1879_v41 = vpop.f32.mrf.mxu1 }
 0x112   : > { %1471 = vst [vmem:[%s2412_s20 + $0x18] sm:$0xff] %v2109_v38  ;;  %v1411_v42 = vadd.f32 %v2402_v39, %v1199_v36  ;;  %v1880_v43 = vadd.f32 %v1879_v41, %v1878_v35  ;;  %v1769_v44 = vpop.f32.mrf.mxu0 }
 0x113   : > { %v1881_v45 = vpop.f32.mrf.mxu1 }
 0x114   : > { %2116 = vtanh.f32 %v1411_v42  ;;  %v1204_v46 = vadd.f32 %v1880_v43, %v1768_v40  ;;  %v1770_v47 = vpop.f32.mrf.mxu0 }
 0x115   : > { %v2111_v48 = vpop.eup %2110  ;;  %v1771_v49 = vadd.f32 %v1770_v47, %v1769_v44  ;;  %v1882_v50 = vpop.f32.mrf.mxu1 }
 0x116   : > { %1472 = vst [vmem:[%s2412_s20 + $0x20] sm:$0xff] %v2111_v48  ;;  %v1412_v51 = vadd.f32 %v2402_v39, %v1204_v46  ;;  %v1883_v52 = vadd.f32 %v1882_v50, %v1881_v45  ;;  %v1772_v53 = vpop.f32.mrf.mxu0 }
 0x117   : > { %v1884_v54 = vpop.f32.mrf.mxu1 }
 0x118   : > { %2118 = vtanh.f32 %v1412_v51  ;;  %v1207_v55 = vadd.f32 %v1883_v52, %v1771_v49  ;;  %v1773_v56 = vpop.f32.mrf.mxu0 }
 0x119   : > { %v2113_v57 = vpop.eup %2112  ;;  %v1774_v58 = vadd.f32 %v1773_v56, %v1772_v53  ;;  %v1885_v59 = vpop.f32.mrf.mxu1 }
 0x11a   : > { %1473 = vst [vmem:[%s2412_s20 + $0x28] sm:$0xff] %v2113_v57  ;;  %v1413_v60 = vadd.f32 %v2402_v39, %v1207_v55  ;;  %v1886_v61 = vadd.f32 %v1885_v59, %v1884_v54  ;;  %v1775_v62 = vpop.f32.mrf.mxu0 }
 0x11b   : > { %v1887_v63 = vpop.f32.mrf.mxu1 }
 0x11c   : > { %2120 = vtanh.f32 %v1413_v60  ;;  %v1212_v0 = vadd.f32 %v1886_v61, %v1774_v58  ;;  %v1776_v1 = vpop.f32.mrf.mxu0 }
 0x11d   : > { %v2115_v2 = vpop.eup %2114  ;;  %v1777_v3 = vadd.f32 %v1776_v1, %v1775_v62  ;;  %v1888_v4 = vpop.f32.mrf.mxu1 }
 0x11e   : > { %1474 = vst [vmem:[%s2412_s20 + $0x30] sm:$0xff] %v2115_v2  ;;  %v1414_v5 = vadd.f32 %v2402_v39, %v1212_v0  ;;  %v1889_v6 = vadd.f32 %v1888_v4, %v1887_v63  ;;  %v1778_v7 = vpop.f32.mrf.mxu0 }
 0x11f   : > { %v1890_v8 = vpop.f32.mrf.mxu1 }
 0x120   : > { %2122 = vtanh.f32 %v1414_v5  ;;  %v1215_v9 = vadd.f32 %v1889_v6, %v1777_v3  ;;  %v1779_v10 = vpop.f32.mrf.mxu0 }
 0x121   : > { %v2117_v11 = vpop.eup %2116  ;;  %v1780_v12 = vadd.f32 %v1779_v10, %v1778_v7  ;;  %v1891_v13 = vpop.f32.mrf.mxu1 }
 0x122   : > { %1475 = vst [vmem:[%s2412_s20 + $0x38] sm:$0xff] %v2117_v11  ;;  %v1415_v14 = vadd.f32 %v2402_v39, %v1215_v9  ;;  %v1892_v15 = vadd.f32 %v1891_v13, %v1890_v8  ;;  %v1781_v16 = vpop.f32.mrf.mxu0 }
 0x123   : > { %v1893_v17 = vpop.f32.mrf.mxu1 }
 0x124   : > { %2124 = vtanh.f32 %v1415_v14  ;;  %v1220_v18 = vadd.f32 %v1892_v15, %v1780_v12  ;;  %v1782_v19 = vpop.f32.mrf.mxu0 }
 0x125   : > { %v2119_v20 = vpop.eup %2118  ;;  %v1783_v21 = vadd.f32 %v1782_v19, %v1781_v16  ;;  %v1894_v22 = vpop.f32.mrf.mxu1 }
 0x126   : > { %1476 = vst [vmem:[%s2412_s20 + $0x40] sm:$0xff] %v2119_v20  ;;  %v1416_v23 = vadd.f32 %v2402_v39, %v1220_v18  ;;  %v1895_v24 = vadd.f32 %v1894_v22, %v1893_v17  ;;  %v1784_v25 = vpop.f32.mrf.mxu0 }
 0x127   : > { %v1896_v26 = vpop.f32.mrf.mxu1 }
 0x128   : > { %2126 = vtanh.f32 %v1416_v23  ;;  %v1223_v27 = vadd.f32 %v1895_v24, %v1783_v21  ;;  %v1785_v28 = vpop.f32.mrf.mxu0 }
 0x129   : > { %v2121_v29 = vpop.eup %2120  ;;  %v1786_v30 = vadd.f32 %v1785_v28, %v1784_v25  ;;  %v1897_v31 = vpop.f32.mrf.mxu1 }
 0x12a   : > { %1477 = vst [vmem:[%s2412_s20 + $0x48] sm:$0xff] %v2121_v29  ;;  %v1417_v32 = vadd.f32 %v2402_v39, %v1223_v27  ;;  %v1898_v33 = vadd.f32 %v1897_v31, %v1896_v26  ;;  %v1787_v34 = vpop.f32.mrf.mxu0 }
 0x12b   : > { %v1899_v35 = vpop.f32.mrf.mxu1 }
 0x12c   : > { %2128 = vtanh.f32 %v1417_v32  ;;  %v1228_v36 = vadd.f32 %v1898_v33, %v1786_v30  ;;  %v1788_v37 = vpop.f32.mrf.mxu0 }
 0x12d   : > { %v2123_v38 = vpop.eup %2122  ;;  %v1789_v40 = vadd.f32 %v1788_v37, %v1787_v34  ;;  %v1900_v41 = vpop.f32.mrf.mxu1 }
 0x12e   : > { %1478 = vst [vmem:[%s2412_s20 + $0x50] sm:$0xff] %v2123_v38  ;;  %v1418_v42 = vadd.f32 %v2402_v39, %v1228_v36  ;;  %v1901_v43 = vadd.f32 %v1900_v41, %v1899_v35  ;;  %v1790_v44 = vpop.f32.mrf.mxu0 }
 0x12f   : > { %v1902_v45 = vpop.f32.mrf.mxu1 }
 0x130   : > { %2130 = vtanh.f32 %v1418_v42  ;;  %v1231_v46 = vadd.f32 %v1901_v43, %v1789_v40  ;;  %v1791_v47 = vpop.f32.mrf.mxu0 }
 0x131   : > { %v2125_v48 = vpop.eup %2124  ;;  %v1792_v49 = vadd.f32 %v1791_v47, %v1790_v44  ;;  %v1903_v50 = vpop.f32.mrf.mxu1 }
 0x132   : > { %1479 = vst [vmem:[%s2412_s20 + $0x58] sm:$0xff] %v2125_v48  ;;  %v1419_v51 = vadd.f32 %v2402_v39, %v1231_v46  ;;  %v1904_v52 = vadd.f32 %v1903_v50, %v1902_v45  ;;  %v1793_v53 = vpop.f32.mrf.mxu0 }
 0x133   : > { %v1905_v54 = vpop.f32.mrf.mxu1 }
 0x134   : > { %2132 = vtanh.f32 %v1419_v51  ;;  %v1236_v55 = vadd.f32 %v1904_v52, %v1792_v49  ;;  %v1794_v56 = vpop.f32.mrf.mxu0 }
 0x135   : > { %v2127_v57 = vpop.eup %2126  ;;  %v1795_v58 = vadd.f32 %v1794_v56, %v1793_v53  ;;  %v1906_v59 = vpop.f32.mrf.mxu1 }
 0x136   : > { %1480 = vst [vmem:[%s2412_s20 + $0x60] sm:$0xff] %v2127_v57  ;;  %v1420_v60 = vadd.f32 %v2402_v39, %v1236_v55  ;;  %v1907_v61 = vadd.f32 %v1906_v59, %v1905_v54  ;;  %v1796_v62 = vpop.f32.mrf.mxu0 }
 0x137   : > { %v1908_v63 = vpop.f32.mrf.mxu1 }
 0x138   : > { %2134 = vtanh.f32 %v1420_v60  ;;  %v1239_v0 = vadd.f32 %v1907_v61, %v1795_v58  ;;  %v1797_v1 = vpop.f32.mrf.mxu0 }
 0x139   : > { %v2129_v2 = vpop.eup %2128  ;;  %v1798_v3 = vadd.f32 %v1797_v1, %v1796_v62  ;;  %v1909_v4 = vpop.f32.mrf.mxu1 }
 0x13a   : > { %1481 = vst [vmem:[%s2412_s20 + $0x68] sm:$0xff] %v2129_v2  ;;  %v1421_v5 = vadd.f32 %v2402_v39, %v1239_v0  ;;  %v1910_v6 = vadd.f32 %v1909_v4, %v1908_v63  ;;  %v1799_v7 = vpop.f32.mrf.mxu0 }
 0x13b   : > { %v1911_v8 = vpop.f32.mrf.mxu1 }
 0x13c   : > { %2136 = vtanh.f32 %v1421_v5  ;;  %v1244_v9 = vadd.f32 %v1910_v6, %v1798_v3  ;;  %v1800_v10 = vpop.f32.mrf.mxu0 }
 0x13d   : > { %v2131_v11 = vpop.eup %2130  ;;  %v1801_v12 = vadd.f32 %v1800_v10, %v1799_v7  ;;  %v1912_v13 = vpop.f32.mrf.mxu1 }
 0x13e   : > { %1482 = vst [vmem:[%s2412_s20 + $0x70] sm:$0xff] %v2131_v11  ;;  %v1422_v14 = vadd.f32 %v2402_v39, %v1244_v9  ;;  %v1913_v15 = vadd.f32 %v1912_v13, %v1911_v8  ;;  %v1802_v16 = vpop.f32.mrf.mxu0 }
 0x13f   : > { %v1914_v17 = vpop.f32.mrf.mxu1 }
 0x140   : > { %2138 = vtanh.f32 %v1422_v14  ;;  %v1247_v18 = vadd.f32 %v1913_v15, %v1801_v12  ;;  %v1803_v19 = vpop.f32.mrf.mxu0 }
 0x141   : > { %v2133_v20 = vpop.eup %2132  ;;  %v1804_v21 = vadd.f32 %v1803_v19, %v1802_v16  ;;  %v1915_v22 = vpop.f32.mrf.mxu1 }
 0x142   : > { %1483 = vst [vmem:[%s2412_s20 + $0x78] sm:$0xff] %v2133_v20  ;;  %v1423_v23 = vadd.f32 %v2402_v39, %v1247_v18  ;;  %v1916_v24 = vadd.f32 %v1915_v22, %v1914_v17  ;;  %v1805_v25 = vpop.f32.mrf.mxu0 }
 0x143   : > { %v1917_v26 = vpop.f32.mrf.mxu1 }
 0x144   : > { %2140 = vtanh.f32 %v1423_v23  ;;  %v1252_v27 = vadd.f32 %v1916_v24, %v1804_v21  ;;  %v1806_v28 = vpop.f32.mrf.mxu0 }
 0x145   : > { %v2135_v29 = vpop.eup %2134  ;;  %v1807_v30 = vadd.f32 %v1806_v28, %v1805_v25  ;;  %v1918_v31 = vpop.f32.mrf.mxu1 }
 0x146   : > { %1484 = vst [vmem:[%s2412_s20 + $0x80] sm:$0xff] %v2135_v29  ;;  %v1424_v32 = vadd.f32 %v2402_v39, %v1252_v27  ;;  %v1919_v33 = vadd.f32 %v1918_v31, %v1917_v26  ;;  %v1808_v34 = vpop.f32.mrf.mxu0 }
 0x147   : > { %v1920_v35 = vpop.f32.mrf.mxu1 }
 0x148   : > { %2142 = vtanh.f32 %v1424_v32  ;;  %v1255_v36 = vadd.f32 %v1919_v33, %v1807_v30  ;;  %v1809_v37 = vpop.f32.mrf.mxu0 }
 0x149   : > { %v2137_v38 = vpop.eup %2136  ;;  %v1810_v40 = vadd.f32 %v1809_v37, %v1808_v34  ;;  %v1921_v41 = vpop.f32.mrf.mxu1 }
 0x14a   : > { %1485 = vst [vmem:[%s2412_s20 + $0x88] sm:$0xff] %v2137_v38  ;;  %v1425_v42 = vadd.f32 %v2402_v39, %v1255_v36  ;;  %v1922_v43 = vadd.f32 %v1921_v41, %v1920_v35  ;;  %v1811_v44 = vpop.f32.mrf.mxu0 }
 0x14b   : > { %v1923_v45 = vpop.f32.mrf.mxu1 }
 0x14c   : > { %2144 = vtanh.f32 %v1425_v42  ;;  %v1260_v46 = vadd.f32 %v1922_v43, %v1810_v40  ;;  %v1812_v47 = vpop.f32.mrf.mxu0 }
 0x14d   : > { %v2139_v48 = vpop.eup %2138  ;;  %v1813_v49 = vadd.f32 %v1812_v47, %v1811_v44  ;;  %v1924_v50 = vpop.f32.mrf.mxu1 }
 0x14e   : > { %1486 = vst [vmem:[%s2412_s20 + $0x90] sm:$0xff] %v2139_v48  ;;  %v1426_v51 = vadd.f32 %v2402_v39, %v1260_v46  ;;  %v1925_v52 = vadd.f32 %v1924_v50, %v1923_v45  ;;  %v1814_v53 = vpop.f32.mrf.mxu0 }
 0x14f   : > { %v1926_v54 = vpop.f32.mrf.mxu1 }
 0x150   : > { %2146 = vtanh.f32 %v1426_v51  ;;  %v1263_v55 = vadd.f32 %v1925_v52, %v1813_v49  ;;  %v1815_v56 = vpop.f32.mrf.mxu0 }
 0x151   : > { %v2141_v57 = vpop.eup %2140  ;;  %v1816_v58 = vadd.f32 %v1815_v56, %v1814_v53  ;;  %v1927_v59 = vpop.f32.mrf.mxu1 }
 0x152   : > { %1487 = vst [vmem:[%s2412_s20 + $0x98] sm:$0xff] %v2141_v57  ;;  %v1427_v60 = vadd.f32 %v2402_v39, %v1263_v55  ;;  %v1928_v61 = vadd.f32 %v1927_v59, %v1926_v54  ;;  %v1817_v62 = vpop.f32.mrf.mxu0 }
 0x153   : > { %v1929_v63 = vpop.f32.mrf.mxu1 }
 0x154   : > { %2148 = vtanh.f32 %v1427_v60  ;;  %v1268_v0 = vadd.f32 %v1928_v61, %v1816_v58  ;;  %v1818_v1 = vpop.f32.mrf.mxu0 }
 0x155   : > { %v2143_v2 = vpop.eup %2142  ;;  %v1819_v3 = vadd.f32 %v1818_v1, %v1817_v62  ;;  %v1930_v4 = vpop.f32.mrf.mxu1 }
 0x156   : > { %1488 = vst [vmem:[%s2412_s20 + $0xa0] sm:$0xff] %v2143_v2  ;;  %v1428_v5 = vadd.f32 %v2402_v39, %v1268_v0  ;;  %v1931_v6 = vadd.f32 %v1930_v4, %v1929_v63  ;;  %v1820_v7 = vpop.f32.mrf.mxu0 }
 0x157   : > { %v1932_v8 = vpop.f32.mrf.mxu1 }
 0x158   : > { %2150 = vtanh.f32 %v1428_v5  ;;  %v1271_v9 = vadd.f32 %v1931_v6, %v1819_v3  ;;  %v1821_v10 = vpop.f32.mrf.mxu0 }
 0x159   : > { %v2145_v11 = vpop.eup %2144  ;;  %v1822_v12 = vadd.f32 %v1821_v10, %v1820_v7  ;;  %v1933_v13 = vpop.f32.mrf.mxu1 }
 0x15a   : > { %1489 = vst [vmem:[%s2412_s20 + $0xa8] sm:$0xff] %v2145_v11  ;;  %v1429_v14 = vadd.f32 %v2402_v39, %v1271_v9  ;;  %v1934_v15 = vadd.f32 %v1933_v13, %v1932_v8  ;;  %v1823_v16 = vpop.f32.mrf.mxu0 }
 0x15b   : > { %v1935_v17 = vpop.f32.mrf.mxu1 }
 0x15c   : > { %2152 = vtanh.f32 %v1429_v14  ;;  %v1276_v18 = vadd.f32 %v1934_v15, %v1822_v12  ;;  %v1824_v19 = vpop.f32.mrf.mxu0 }
 0x15d   : > { %v2147_v20 = vpop.eup %2146  ;;  %v1825_v21 = vadd.f32 %v1824_v19, %v1823_v16  ;;  %v1936_v22 = vpop.f32.mrf.mxu1 }
 0x15e   : > { %1490 = vst [vmem:[%s2412_s20 + $0xb0] sm:$0xff] %v2147_v20  ;;  %v1430_v23 = vadd.f32 %v2402_v39, %v1276_v18  ;;  %v1937_v24 = vadd.f32 %v1936_v22, %v1935_v17  ;;  %v1826_v25 = vpop.f32.mrf.mxu0 }
 0x15f   : > { %v1938_v26 = vpop.f32.mrf.mxu1 }
 0x160   : > { %2154 = vtanh.f32 %v1430_v23  ;;  %v1279_v27 = vadd.f32 %v1937_v24, %v1825_v21  ;;  %v1827_v28 = vpop.f32.mrf.mxu0 }
 0x161   : > { %v2149_v29 = vpop.eup %2148  ;;  %v1828_v30 = vadd.f32 %v1827_v28, %v1826_v25  ;;  %v1939_v31 = vpop.f32.mrf.mxu1 }
 0x162   : > { %1491 = vst [vmem:[%s2412_s20 + $0xb8] sm:$0xff] %v2149_v29  ;;  %v1431_v32 = vadd.f32 %v2402_v39, %v1279_v27  ;;  %v1940_v33 = vadd.f32 %v1939_v31, %v1938_v26  ;;  %v1829_v34 = vpop.f32.mrf.mxu0 }
 0x163   : > { %v1941_v35 = vpop.f32.mrf.mxu1 }
 0x164   : > { %2156 = vtanh.f32 %v1431_v32  ;;  %v1284_v36 = vadd.f32 %v1940_v33, %v1828_v30  ;;  %v1830_v37 = vpop.f32.mrf.mxu0 }
 0x165   : > { %v2151_v38 = vpop.eup %2150  ;;  %v1831_v40 = vadd.f32 %v1830_v37, %v1829_v34  ;;  %v1942_v41 = vpop.f32.mrf.mxu1 }
 0x166   : > { %1492 = vst [vmem:[%s2412_s20 + $0xc0] sm:$0xff] %v2151_v38  ;;  %v1432_v42 = vadd.f32 %v2402_v39, %v1284_v36  ;;  %v1943_v43 = vadd.f32 %v1942_v41, %v1941_v35  ;;  %v1832_v44 = vpop.f32.mrf.mxu0 }
 0x167   : > { %v1944_v45 = vpop.f32.mrf.mxu1 }
 0x168   : > { %2158 = vtanh.f32 %v1432_v42  ;;  %v1287_v46 = vadd.f32 %v1943_v43, %v1831_v40  ;;  %v1833_v47 = vpop.f32.mrf.mxu0 }
 0x169   : > { %v2153_v48 = vpop.eup %2152  ;;  %v1834_v49 = vadd.f32 %v1833_v47, %v1832_v44  ;;  %v1945_v50 = vpop.f32.mrf.mxu1 }
 0x16a   : > { %1493 = vst [vmem:[%s2412_s20 + $0xc8] sm:$0xff] %v2153_v48  ;;  %v1433_v51 = vadd.f32 %v2402_v39, %v1287_v46  ;;  %v1946_v52 = vadd.f32 %v1945_v50, %v1944_v45  ;;  %v1835_v53 = vpop.f32.mrf.mxu0 }
 0x16b   : > { %v1947_v54 = vpop.f32.mrf.mxu1 }
 0x16c   : > { %2160 = vtanh.f32 %v1433_v51  ;;  %v1292_v55 = vadd.f32 %v1946_v52, %v1834_v49  ;;  %v1836_v56 = vpop.f32.mrf.mxu0 }
 0x16d   : > { %v2155_v57 = vpop.eup %2154  ;;  %v1837_v58 = vadd.f32 %v1836_v56, %v1835_v53  ;;  %v1948_v59 = vpop.f32.mrf.mxu1 }
 0x16e   : > { %1494 = vst [vmem:[%s2412_s20 + $0xd0] sm:$0xff] %v2155_v57  ;;  %v1434_v60 = vadd.f32 %v2402_v39, %v1292_v55  ;;  %v1949_v61 = vadd.f32 %v1948_v59, %v1947_v54 }
 0x170   : > { %2162 = vtanh.f32 %v1434_v60  ;;  %v1295_v62 = vadd.f32 %v1949_v61, %v1837_v58 }
 0x171   : > { %v2157_v63 = vpop.eup %2156 }
 0x172   : > { %1495 = vst [vmem:[%s2412_s20 + $0xd8] sm:$0xff] %v2157_v63  ;;  %v1435_v0 = vadd.f32 %v2402_v39, %v1295_v62 }
 0x174   : > { %2164 = vtanh.f32 %v1435_v0 }
 0x175   : > { %v2159_v1 = vpop.eup %2158 }
 0x176   : > { %1496 = vst [vmem:[%s2412_s20 + $0xe0] sm:$0xff] %v2159_v1 }
 0x179   : > { %v2161_v2 = vpop.eup %2160 }
 0x17a   : > { %1497 = vst [vmem:[%s2412_s20 + $0xe8] sm:$0xff] %v2161_v2 }
 0x17d   : > { %v2163_v3 = vpop.eup %2162 }
 0x17e   : > { %1498 = vst [vmem:[%s2412_s20 + $0xf0] sm:$0xff] %v2163_v3 }
 0x181   : > { %v2165_v4 = vpop.eup %2164 }
 0x182   : > { %1499 = vst [vmem:[%s2412_s20 + $0xf8] sm:$0xff] %v2165_v4 }
 0x183 PF: > { %s13_s14 = sadd.s32 1, %s2188_s14   ;;  %s2487_s12 = smov %s2184_s13 }
 0x184   : > { %p10_p5 = scmp.ge.s32.totalorder %s13_s14, 4   ;;  %s2488_s13 = smov %s2490_s15 }
 0x186   :  { %12 = sbr.rel (!%p10_p5) target bundleno = 2 (0x2), region = 76 }

// kernel: encoder_forward.24
= control target key start
LH: loop header
LB: loop body
LE: loop exit
PB: predicated region body
PF: predicated region fallthrough
CT: control target
= control target key end

     0   :  { %s1061_s12 = smov 0   ;;  %s1063_s13 = smov 0   ;;  %s1610_s0 = inlined_call_operand.vmem [shape: s32[2,1,256], index: 0, kind: input, shape index: {}]   ;;  %s1611_s1 = inlined_call_operand.vmem [shape: f32[2,256,128], index: 1, kind: input, shape index: {}]   ;;  %s1612_s2 = inlined_call_operand.vmem [shape: f32[2,128,128], index: 2, kind: output, shape index: {0}]   ;;  %s1613_s3 = inlined_call_operand.vmem [shape: f32[2,128,1], index: 3, kind: output, shape index: {1}]  }
   0x1   :  { %s1065_s14 = smov 0  }
   0x2 LB: > { %s26_s15 = sadd.s32 1, %s1033_s13  ;;  %p832_p0 = scmp.ge.s32.totalorder %s1037_s14, 1  ;;  %s1037_s14 = sphi %s1065_s14, %s14_s14   ;;  %s1033_s13 = sphi %s1063_s13, %s1641_s13   ;;  %s1029_s12 = sphi %s1061_s12, %s1640_s12  }
   0x3   : > { %p28_p1 = scmp.ge.s32.totalorder %s26_s15, 2  ;;  %p175_p2 = scmp.lt.s32.totalorder %s1037_s14, 3 }
   0x5   : > { %s1643_s15 = smov (%p28_p1, %s26_s15), 0  ;;  %p176_p3 = pnand %p832_p0, %p175_p2 }
   0x6   : > { %p217_p4 = scmp.lt.s32.totalorder (!%p176_p3), %s1029_s12, 1 }
   0x7   : > { %179 = sbr.rel (%p176_p3) target bundleno = 276 (0x114), region = 28 }
   0xc   : > { %s1645_s12 = smov (!%p217_p4, %s1029_s12), 1  ;;  %v284_v0 = vlaneseq  ;;  %v1039_v42 = vmov 1.0|1.0   ;;  %v1040_v54 = vmov 0.0  }
   0xd   : > { %s906_s16 = sshll.u32 %s1645_s12, 8  ;;  %s833_s20 = sshll.u32 %s1645_s12, 1 }
   0xe   : > { %s1085_s19 = scalar_lea.vmem %s1611_s1, %s906_s16  ;;  %v1097_v14 = vshrl.u32 %v284_v0, 7  ;;  %s223_s23 = scalar_lea.vmem %s1610_s0, %s833_s20 }
   0xf   : > { %v564_v1 = vld [vmem:[%s1085_s19 + $0xf0] sm:$0xff]  ;;  %v565_v2 = vld [vmem:[%s1085_s19 + $0xf8] sm:$0xff]  ;;  %v562_v6 = vld [vmem:[%s1085_s19 + $0xe0] sm:$0xff]  ;;  %s907_s24 = sshll.u32 %s1645_s12, 7 }
  0x10   : > { %v548_v3 = vld [vmem:[%s1085_s19 + $0x70] sm:$0xff]  ;;  %v581_v4 = vpack.c.bf16 %v565_v2, %v564_v1  ;;  %v549_v5 = vld [vmem:[%s1085_s19 + $0x78] sm:$0xff]  ;;  %v563_v7 = vld [vmem:[%s1085_s19 + $0xe8] sm:$0xff]  ;;  %v307_v21 = vsub.s32 1, %v1097_v14  ;;  %v1113_v28 = vadd.s32 8, %v1097_v14  ;;  %v1116_v29 = vadd.s32 64, %v1097_v14  ;;  %s1480_s27 = scalar_lea.vmem %s1613_s3, %s907_s24  ;;  %s1583_s30 = scalar_lea.vmem %s1612_s2, %s907_s24 }
  0x11   : > { %v573_v8 = vpack.c.bf16 %v549_v5, %v548_v3  ;;  %v580_v9 = vpack.c.bf16 %v563_v7, %v562_v6  ;;  %v546_v10 = vld [vmem:[%s1085_s19 + $0x60] sm:$0xff]  ;;  %v547_v11 = vld [vmem:[%s1085_s19 + $0x68] sm:$0xff]  ;;  %v560_v12 = vld [vmem:[%s1085_s19 + $0xd0] sm:$0xff]  ;;  %v1119_v31 = vadd.s32 72, %v1097_v14  ;;  %v303_v32 = vsub.s32 0, %v1097_v14 }
  0x12   : > { %909 = vmatprep.subr.bf16.mxu0 %v581_v4  ;;  %973 = vmatprep.subr.bf16.mxu1 %v581_v4  ;;  %v561_v13 = vld [vmem:[%s1085_s19 + $0xd8] sm:$0xff]  ;;  %v572_v15 = vpack.c.bf16 %v547_v11, %v546_v10  ;;  %v544_v17 = vld [vmem:[%s1085_s19 + $0x50] sm:$0xff]  ;;  %v558_v19 = vld [vmem:[%s1085_s19 + $0xc0] sm:$0xff]  ;;  %v1143_v40 = vadd.s32 16, %v1097_v14  ;;  %v1162_v51 = vadd.s32 24, %v1097_v14  ;;  %v1167_v52 = vadd.s32 80, %v1097_v14 }
  0x13   : > { %910 = vmatpush3.bf16.msra.mxu0 %v573_v8  ;;  %981 = vmatpush3.bf16.msra.mxu1 %v573_v8  ;;  %v579_v16 = vpack.c.bf16 %v561_v13, %v560_v12  ;;  %v545_v18 = vld [vmem:[%s1085_s19 + $0x58] sm:$0xff]  ;;  %v559_v20 = vld [vmem:[%s1085_s19 + $0xc8] sm:$0xff]  ;;  %v542_v23 = vld [vmem:[%s1085_s19 + $0x40] sm:$0xff]  ;;  %v1174_v53 = vadd.s32 88, %v1097_v14  ;;  %v1186_v59 = vadd.s32 32, %v1097_v14  ;;  %v1189_v60 = vadd.s32 40, %v1097_v14 }
  0x14   : > { %911 = vmatprep.subr.bf16.mxu0 %v580_v9  ;;  %974 = vmatprep.subr.bf16.mxu1 %v580_v9  ;;  %v571_v22 = vpack.c.bf16 %v545_v18, %v544_v17  ;;  %v578_v24 = vpack.c.bf16 %v559_v20, %v558_v19  ;;  %v543_v25 = vld [vmem:[%s1085_s19 + $0x48] sm:$0xff]  ;;  %v556_v26 = vld [vmem:[%s1085_s19 + $0xb0] sm:$0xff]  ;;  %v557_v27 = vld [vmem:[%s1085_s19 + $0xb8] sm:$0xff]  ;;  %v1227_v12 = vadd.s32 48, %v1097_v14  ;;  %v1236_v13 = vadd.s32 56, %v1097_v14 }
  0x15   : > { %v283_v30 = vld [vmem:[%s223_s23] sm:$0x3]  ;;  %v570_v34 = vpack.c.bf16 %v543_v25, %v542_v23  ;;  %v577_v35 = vpack.c.bf16 %v557_v27, %v556_v26  ;;  %v540_v36 = vld [vmem:[%s1085_s19 + $0x30] sm:$0xff]  ;;  %v541_v37 = vld [vmem:[%s1085_s19 + $0x38] sm:$0xff] }
  0x16   : > { %v1122_v33 = vrot.slane %v283_v30, %v307_v21  ;;  %v554_v38 = vld [vmem:[%s1085_s19 + $0xa0] sm:$0xff]  ;;  %v555_v39 = vld [vmem:[%s1085_s19 + $0xa8] sm:$0xff]  ;;  %v1145_v41 = vrot.slane %v283_v30, %v303_v32  ;;  %v569_v43 = vpack.c.bf16 %v541_v37, %v540_v36  ;;  %v552_v47 = vld [vmem:[%s1085_s19 + $0x90] sm:$0xff]  ;;  %v297_v30 = vadd.s32 96, %v1097_v14 }
  0x17   : > { %912 = vmatpush3.bf16.msra.mxu0 %v572_v15  ;;  %982 = vmatpush3.bf16.msra.mxu1 %v572_v15  ;;  %v576_v44 = vpack.c.bf16 %v555_v39, %v554_v38  ;;  %v538_v45 = vld [vmem:[%s1085_s19 + $0x20] sm:$0xff]  ;;  %v539_v46 = vld [vmem:[%s1085_s19 + $0x28] sm:$0xff]  ;;  %v553_v48 = vld [vmem:[%s1085_s19 + $0x98] sm:$0xff]  ;;  %v298_v32 = vadd.s32 104, %v1097_v14 }
  0x18   : > { %913 = vmatprep.subr.bf16.mxu0 %v579_v16  ;;  %975 = vmatprep.subr.bf16.mxu1 %v579_v16  ;;  %vm310_vm0 = vcmp.eq.s32.totalorder %v1097_v14, %v1122_v33  ;;  %vm312_vm1 = vcmp.eq.s32.totalorder %v1113_v28, %v1122_v33  ;;  %vm326_vm2 = vcmp.eq.s32.totalorder %v1116_v29, %v1122_v33  ;;  %v536_v49 = vld [vmem:[%s1085_s19 + $0x10] sm:$0xff]  ;;  %v537_v50 = vld [vmem:[%s1085_s19 + $0x18] sm:$0xff]  ;;  %v550_v58 = vld [vmem:[%s1085_s19 + $0x80] sm:$0xff] }
  0x19   : > { %vm872_vm3 = vmpackc.low %vm312_vm1, %vm310_vm0  ;;  %vm328_vm4 = vcmp.eq.s32.totalorder %v1119_v31, %v1122_v33  ;;  %vm314_vm6 = vcmp.eq.s32.totalorder %v1143_v40, %v1122_v33  ;;  %vm1619_vm7 = vcmp.eq.s32.totalorder %v1143_v40, %v1145_v41  ;;  %vm309_vm8 = vcmp.eq.s32.totalorder %v1097_v14, %v1145_v41  ;;  %v551_v0 = vld [vmem:[%s1085_s19 + $0x88] sm:$0xff]  ;;  %v534_v1 = vld [vmem:[%s1085_s19] sm:$0xff] }
  0x1a   : > { %873 = vmatprep.mubr.msk.bf16.mxu0 %vm872_vm3, %v1039_v42  ;;  %vm888_vm5 = vmpackc.low %vm328_vm4, %vm326_vm2  ;;  %v844_v55 = vsel %vm1619_vm7, 1.0, %v1040_v54  ;;  %v845_v56 = vsel %vm314_vm6, 1.0, %v1040_v54  ;;  %v568_v57 = vpack.c.bf16 %v539_v46, %v538_v45  ;;  %v840_v61 = vsel %vm309_vm8, 1.0, %v1040_v54  ;;  %v535_v2 = vld [vmem:[%s1085_s19 + $0x8] sm:$0xff] }
  0x1b   : > { %914 = vmatpush3.bf16.msra.mxu0 %v571_v22  ;;  %983 = vmatpush3.bf16.msra.mxu1 %v571_v22  ;;  %v575_v62 = vpack.c.bf16 %v553_v48, %v552_v47  ;;  %v567_v63 = vpack.c.bf16 %v537_v50, %v536_v49  ;;  %vm311_vm9 = vcmp.eq.s32.totalorder %v1113_v28, %v1145_v41  ;;  %v841_v3 = vsel %vm310_vm0, 1.0, %v1040_v54 }
  0x1c   : > { %915 = vmatprep.subr.bf16.mxu0 %v578_v24  ;;  %976 = vmatprep.subr.bf16.mxu1 %v578_v24  ;;  %vm316_vm10 = vcmp.eq.s32.totalorder %v1162_v51, %v1122_v33  ;;  %vm1618_vm11 = vcmp.eq.s32.totalorder %v1162_v51, %v1145_v41  ;;  %v427_v4 = vadd.f32 %v845_v56, %v844_v55  ;;  %v842_v8 = vsel %vm311_vm9, 1.0, %v1040_v54 }
  0x1d   : > { %889 = vmatprep.mubr.msk.bf16.mxu1 %vm888_vm5, %v1039_v42  ;;  %v421_v5 = vadd.f32 %v841_v3, %v840_v61  ;;  %v846_v6 = vsel %vm1618_vm11, 1.0, %v1040_v54  ;;  %v847_v7 = vsel %vm316_vm10, 1.0, %v1040_v54  ;;  %v843_v9 = vsel %vm312_vm1, 1.0, %v1040_v54 }
  0x1e   : > { %v574_v10 = vpack.c.bf16 %v551_v0, %v550_v58  ;;  %v566_v11 = vpack.c.bf16 %v535_v2, %v534_v1  ;;  %vm325_vm12 = vcmp.eq.s32.totalorder %v1116_v29, %v1145_v41  ;;  %vm1617_vm13 = vcmp.eq.s32.totalorder %v1186_v59, %v1122_v33  ;;  %428 = vadd.xlane.f32.xlu1 %v427_v4 }
  0x1f   : > { %916 = vmatpush3.bf16.msra.mxu0 %v570_v34  ;;  %984 = vmatpush3.bf16.msra.mxu1 %v570_v34  ;;  %vm1616_vm14 = vcmp.eq.s32.totalorder %v1189_v60, %v1122_v33  ;;  %vm1615_vm15 = vcmp.eq.s32.totalorder %v1186_v59, %v1145_v41  ;;  %vm1614_vm0 = vcmp.eq.s32.totalorder %v1189_v60, %v1145_v41  ;;  %v849_v20 = vsel %vm1617_vm13, 1.0, %v1040_v54  ;;  %vm1274_vm13 = vmpackc.low %vm311_vm9, %vm309_vm8 }
  0x20   : > { %917 = vmatprep.subr.bf16.mxu0 %v577_v35  ;;  %977 = vmatprep.subr.bf16.mxu1 %v577_v35  ;;  %v430_v15 = vadd.f32 %v847_v7, %v846_v6  ;;  %v424_v16 = vadd.f32 %v843_v9, %v842_v8  ;;  %v850_v17 = vsel %vm1614_vm0, 1.0, %v1040_v54  ;;  %v851_v18 = vsel %vm1616_vm14, 1.0, %v1040_v54  ;;  %vm876_vm8 = vmpackc.low %vm316_vm10, %vm314_vm6 }
  0x21   : > { %422 = vadd.xlane.f32.xlu0 %v421_v5  ;;  %v848_v19 = vsel %vm1615_vm15, 1.0, %v1040_v54  ;;  %vm327_vm1 = vcmp.eq.s32.totalorder %v1119_v31, %v1145_v41  ;;  %vm330_vm3 = vcmp.eq.s32.totalorder %v1167_v52, %v1122_v33  ;;  %vm332_vm5 = vcmp.eq.s32.totalorder %v1174_v53, %v1122_v33 }
  0x22   : > { %vm322_vm0 = vcmp.eq.s32.totalorder %v1227_v12, %v1122_v33  ;;  %vm324_vm15 = vcmp.eq.s32.totalorder %v1236_v13, %v1122_v33  ;;  %vm321_vm14 = vcmp.eq.s32.totalorder %v1227_v12, %v1145_v41  ;;  %vm323_vm11 = vcmp.eq.s32.totalorder %v1236_v13, %v1145_v41  ;;  %431 = vadd.xlane.f32.xlu1 %v430_v15  ;;  %vm1286_vm7 = vmpackc.low %vm327_vm1, %vm325_vm12 }
  0x23   : > { %918 = vmatpush3.bf16.msra.mxu0 %v569_v43  ;;  %985 = vmatpush3.bf16.msra.mxu1 %v569_v43  ;;  %v436_v22 = vadd.f32 %v851_v18, %v850_v17  ;;  %v433_v23 = vadd.f32 %v849_v20, %v848_v19  ;;  %v854_v25 = vsel %vm323_vm11, 1.0, %v1040_v54  ;;  %v855_v26 = vsel %vm324_vm15, 1.0, %v1040_v54  ;;  %vm892_vm9 = vmpackc.low %vm332_vm5, %vm330_vm3 }
  0x24   : > { %919 = vmatprep.subr.bf16.mxu0 %v576_v44  ;;  %978 = vmatprep.subr.bf16.mxu1 %v576_v44  ;;  %v852_v27 = vsel %vm321_vm14, 1.0, %v1040_v54  ;;  %v853_v28 = vsel %vm322_vm0, 1.0, %v1040_v54  ;;  %v442_v34 = vadd.f32 %v855_v26, %v854_v25  ;;  %v858_v36 = vsel %vm327_vm1, 1.0, %v1040_v54 }
  0x25   : > { %425 = vadd.xlane.f32.xlu0 %v424_v16  ;;  %v439_v35 = vadd.f32 %v853_v28, %v852_v27  ;;  %v859_v37 = vsel %vm328_vm4, 1.0, %v1040_v54  ;;  %v856_v38 = vsel %vm325_vm12, 1.0, %v1040_v54  ;;  %v857_v39 = vsel %vm326_vm2, 1.0, %v1040_v54 }
  0x26   : > { %437 = vadd.xlane.f32.xlu1 %v436_v22  ;;  %vm329_vm6 = vcmp.eq.s32.totalorder %v1167_v52, %v1145_v41  ;;  %vm331_vm4 = vcmp.eq.s32.totalorder %v1174_v53, %v1145_v41  ;;  %vm1624_vm10 = vcmp.eq.s32.totalorder %v1143_v40, %v1145_v41  ;;  %vm1625_vm12 = vcmp.eq.s32.totalorder %v1162_v51, %v1145_v41 }
  0x27   : > { %920 = vmatpush3.bf16.msra.mxu0 %v568_v57  ;;  %986 = vmatpush3.bf16.msra.mxu1 %v568_v57  ;;  %vm336_vm2 = vcmp.eq.s32.totalorder %v298_v32, %v1122_v33  ;;  %v448_v31 = vadd.f32 %v859_v37, %v858_v36  ;;  %v445_v43 = vadd.f32 %v857_v39, %v856_v38  ;;  %vm1360_vm1 = vmpackc.low %vm331_vm4, %vm329_vm6  ;;  %v862_v45 = vsel %vm331_vm4, 1.0, %v1040_v54 }
  0x28   : > { %921 = vmatprep.subr.bf16.mxu0 %v575_v62  ;;  %979 = vmatprep.subr.bf16.mxu1 %v575_v62  ;;  %v863_v40 = vsel %vm332_vm5, 1.0, %v1040_v54  ;;  %v860_v46 = vsel %vm329_vm6, 1.0, %v1040_v54  ;;  %v861_v47 = vsel %vm330_vm3, 1.0, %v1040_v54  ;;  %vm333_vm3 = vcmp.eq.s32.totalorder %v297_v30, %v1145_v41 }
  0x29   : > { %434 = vadd.xlane.f32.xlu0 %v433_v23  ;;  %v299_v50 = vadd.s32 112, %v1097_v14  ;;  %v300_v51 = vadd.s32 120, %v1097_v14  ;;  %vm335_vm6 = vcmp.eq.s32.totalorder %v298_v32, %v1145_v41  ;;  %v454_v52 = vadd.f32 %v863_v40, %v862_v45 }
  0x2a   : > { %443 = vadd.xlane.f32.xlu1 %v442_v34  ;;  %v451_v53 = vadd.f32 %v861_v47, %v860_v46  ;;  %v866_v55 = vsel %vm335_vm6, 1.0, %v1040_v54  ;;  %v867_v14 = vsel %vm336_vm2, 1.0, %v1040_v54  ;;  %v864_v56 = vsel %vm333_vm3, 1.0, %v1040_v54 }
  0x2b   : > { %922 = vmatpush3.bf16.msra.mxu0 %v567_v63  ;;  %987 = vmatpush3.bf16.msra.mxu1 %v567_v63  ;;  %vm338_vm4 = vcmp.eq.s32.totalorder %v299_v50, %v1122_v33  ;;  %v460_v61 = vadd.f32 %v867_v14, %v866_v55 }
  0x2c   : > { %923 = vmatprep.subr.bf16.mxu0 %v574_v10  ;;  %980 = vmatprep.subr.bf16.mxu1 %v574_v10  ;;  %v869_v0 = vsel %vm338_vm4, 1.0, %v1040_v54 }
  0x2d   : > { %440 = vadd.xlane.f32.xlu0 %v439_v35 }
  0x2e   : > { %449 = vadd.xlane.f32.xlu1 %v448_v31 }
  0x2f   : > { %924 = vmatpush3.bf16.msra.mxu0 %v566_v11  ;;  %988 = vmatpush3.bf16.msra.mxu1 %v566_v11 }
  0x31   : > { %446 = vadd.xlane.f32.xlu0 %v445_v43 }
  0x32   : > { %875 = vmatmul.mubr.msk.bf16.vlgmr.msra.gmra.mxu0 %vm1274_vm13, %v1039_v42  ;;  %891 = vmatmul.mubr.msk.bf16.vlgmr.msra.gmra.mxu1 %vm1286_vm7, %v1039_v42  ;;  %vm334_vm7 = vcmp.eq.s32.totalorder %v297_v30, %v1122_v33  ;;  %vm1355_vm13 = vmpackc.low %vm1625_vm12, %vm1624_vm10  ;;  %vm340_vm12 = vcmp.eq.s32.totalorder %v300_v51, %v1122_v33 }
  0x33   : > { %877 = vmatprep.mubr.msk.bf16.mxu0 %vm876_vm8, %v1039_v42  ;;  %893 = vmatprep.mubr.msk.bf16.mxu1 %vm892_vm9, %v1039_v42  ;;  %vm1630_vm8 = vcmp.eq.s32.totalorder %v1186_v59, %v1122_v33  ;;  %vm1631_vm9 = vcmp.eq.s32.totalorder %v1189_v60, %v1122_v33  ;;  %vm1388_vm5 = vmpackc.low %vm336_vm2, %vm334_vm7  ;;  %v865_v57 = vsel %vm334_vm7, 1.0, %v1040_v54  ;;  %vm1636_vm2 = vcmp.eq.s32.totalorder %v1186_v59, %v1145_v41 }
  0x34   : > { %vm1380_vm10 = vmpackc.low %vm1631_vm9, %vm1630_vm8  ;;  %vm1637_vm7 = vcmp.eq.s32.totalorder %v1189_v60, %v1145_v41  ;;  %vm339_vm8 = vcmp.eq.s32.totalorder %v300_v51, %v1145_v41  ;;  %455 = vadd.xlane.f32.xlu1 %v454_v52  ;;  %v457_v62 = vadd.f32 %v865_v57, %v864_v56  ;;  %v871_v60 = vsel %vm340_vm12, 1.0, %v1040_v54 }
  0x35   : > { %452 = vadd.xlane.f32.xlu0 %v451_v53  ;;  %vm898_vm9 = vmpackc.low %vm335_vm6, %vm333_vm3  ;;  %v870_v59 = vsel %vm339_vm8, 1.0, %v1040_v54 }
  0x36   : > { %v466_v1 = vadd.f32 %v871_v60, %v870_v59 }
  0x38   : > { %461 = vadd.xlane.f32.xlu1 %v460_v61 }
  0x39   : > { %458 = vadd.xlane.f32.xlu0 %v457_v62 }
  0x3a   : > { %879 = vmatmul.mubr.msk.bf16.gmra.mxu0 %vm1355_vm13, %v1039_v42  ;;  %895 = vmatmul.mubr.msk.bf16.gmra.mxu1 %vm1360_vm1, %v1039_v42  ;;  %vm337_vm13 = vcmp.eq.s32.totalorder %v299_v50, %v1145_v41  ;;  %vm1429_vm1 = vmpackc.low %vm1637_vm7, %vm1636_vm2 }
  0x3b   : > { %881 = vmatprep.mubr.msk.bf16.mxu0 %vm1380_vm10, %v1039_v42  ;;  %897 = vmatprep.mubr.msk.bf16.mxu1 %vm1388_vm5, %v1039_v42  ;;  %v868_v63 = vsel %vm337_vm13, 1.0, %v1040_v54  ;;  %vm884_vm10 = vmpackc.low %vm324_vm15, %vm322_vm0 }
  0x3c   : > { %vm900_vm5 = vmpackc.low %vm340_vm12, %vm338_vm4  ;;  %v463_v2 = vadd.f32 %v869_v0, %v868_v63  ;;  %467 = vadd.xlane.f32.xlu1 %v466_v1 }
  0x3d   : > { %vm886_vm15 = vmpackc.low %vm323_vm11, %vm321_vm14  ;;  %vm266_vm11 = vcmask 7168  }
  0x3e   : > { %464 = vadd.xlane.f32.xlu0 %v463_v2  ;;  %vm902_vm0 = vmpackc.low %vm339_vm8, %vm337_vm13  ;;  %269 = vst.msk [vmem:[%s1480_s27 + $0x10] sm:$0xff] %vm266_vm11, %v1040_v54 }
  0x3f   : > { %267 = vst.msk [vmem:[%s1480_s27] sm:$0xff] %vm266_vm11, %v1040_v54  ;;  %268 = vst.msk [vmem:[%s1480_s27 + $0x8] sm:$0xff] %vm266_vm11, %v1040_v54 }
  0x40   : > { %270 = vst.msk [vmem:[%s1480_s27 + $0x18] sm:$0xff] %vm266_vm11, %v1040_v54  ;;  %271 = vst.msk [vmem:[%s1480_s27 + $0x20] sm:$0xff] %vm266_vm11, %v1040_v54 }
  0x41   : > { %272 = vst.msk [vmem:[%s1480_s27 + $0x28] sm:$0xff] %vm266_vm11, %v1040_v54  ;;  %273 = vst.msk [vmem:[%s1480_s27 + $0x30] sm:$0xff] %vm266_vm11, %v1040_v54 }
  0x42   : > { %883 = vmatmul.mubr.msk.bf16.gmra.mxu0 %vm1429_vm1, %v1039_v42  ;;  %899 = vmatmul.mubr.msk.bf16.gmra.mxu1 %vm898_vm9, %v1039_v42  ;;  %274 = vst.msk [vmem:[%s1480_s27 + $0x38] sm:$0xff] %vm266_vm11, %v1040_v54  ;;  %275 = vst.msk [vmem:[%s1480_s27 + $0x40] sm:$0xff] %vm266_vm11, %v1040_v54 }
  0x43   : > { %885 = vmatprep.mubr.msk.bf16.mxu0 %vm884_vm10, %v1039_v42  ;;  %901 = vmatprep.mubr.msk.bf16.mxu1 %vm900_vm5, %v1039_v42  ;;  %276 = vst.msk [vmem:[%s1480_s27 + $0x48] sm:$0xff] %vm266_vm11, %v1040_v54  ;;  %277 = vst.msk [vmem:[%s1480_s27 + $0x50] sm:$0xff] %vm266_vm11, %v1040_v54 }
  0x44   : > { %278 = vst.msk [vmem:[%s1480_s27 + $0x58] sm:$0xff] %vm266_vm11, %v1040_v54  ;;  %279 = vst.msk [vmem:[%s1480_s27 + $0x60] sm:$0xff] %vm266_vm11, %v1040_v54 }
  0x45   : > { %280 = vst.msk [vmem:[%s1480_s27 + $0x68] sm:$0xff] %vm266_vm11, %v1040_v54  ;;  %281 = vst.msk [vmem:[%s1480_s27 + $0x70] sm:$0xff] %vm266_vm11, %v1040_v54  ;;  %v343_v33 = vld [vmem:[%s1480_s27 + $0x10] sm:$0xff] }
  0x46   : > { %282 = vst.msk [vmem:[%s1480_s27 + $0x78] sm:$0xff] %vm266_vm11, %v1040_v54  ;;  %v341_v41 = vld [vmem:[%s1480_s27] sm:$0xff]  ;;  %v342_v7 = vld [vmem:[%s1480_s27 + $0x8] sm:$0xff] }
  0x47   : > { %v344_v6 = vld [vmem:[%s1480_s27 + $0x18] sm:$0xff]  ;;  %v345_v12 = vld [vmem:[%s1480_s27 + $0x20] sm:$0xff] }
  0x48   : > { %v346_v11 = vld [vmem:[%s1480_s27 + $0x28] sm:$0xff]  ;;  %v347_v19 = vld [vmem:[%s1480_s27 + $0x30] sm:$0xff] }
  0x49   : > { %v348_v18 = vld [vmem:[%s1480_s27 + $0x38] sm:$0xff]  ;;  %v349_v25 = vld [vmem:[%s1480_s27 + $0x40] sm:$0xff] }
  0x4a   : > { %887 = vmatmul.mubr.msk.bf16.gmra.mxu0 %vm886_vm15, %v1039_v42  ;;  %903 = vmatmul.mubr.msk.bf16.gmra.mxu1 %vm902_vm0, %v1039_v42  ;;  %v350_v24 = vld [vmem:[%s1480_s27 + $0x48] sm:$0xff]  ;;  %v351_v34 = vld [vmem:[%s1480_s27 + $0x50] sm:$0xff] }
  0x4b   : > { %v352_v32 = vld [vmem:[%s1480_s27 + $0x58] sm:$0xff]  ;;  %v353_v29 = vld [vmem:[%s1480_s27 + $0x60] sm:$0xff] }
  0x4c   : > { %v354_v39 = vld [vmem:[%s1480_s27 + $0x68] sm:$0xff]  ;;  %v355_v46 = vld [vmem:[%s1480_s27 + $0x70] sm:$0xff] }
  0x4d   : > { %v356_v40 = vld [vmem:[%s1480_s27 + $0x78] sm:$0xff] }
  0xa7   : > { %v429_v42 = vpop.xlane.xlu1 %428 }
  0xa8   : > { %v471_v4 = vadd.f32 %v429_v42, %v343_v33 }
  0xaa   : > { %v423_v3 = vpop.xlane.xlu0 %422  ;;  %488 = vst.msk [vmem:[%s1480_s27 + $0x10] sm:$0xff] %vm266_vm11, %v471_v4 }
  0xab   : > { %v469_v5 = vadd.f32 %v423_v3, %v341_v41  ;;  %v432_v54 = vpop.xlane.xlu1 %431 }
  0xac   : > { %v472_v9 = vadd.f32 %v432_v54, %v344_v6 }
  0xad   : > { %486 = vst.msk [vmem:[%s1480_s27] sm:$0xff] %vm266_vm11, %v469_v5 }
  0xae   : > { %v426_v8 = vpop.xlane.xlu0 %425  ;;  %489 = vst.msk [vmem:[%s1480_s27 + $0x18] sm:$0xff] %vm266_vm11, %v472_v9 }
  0xaf   : > { %v470_v10 = vadd.f32 %v426_v8, %v342_v7  ;;  %v438_v13 = vpop.xlane.xlu1 %437 }
  0xb0   : > { %v474_v16 = vadd.f32 %v438_v13, %v346_v11 }
  0xb1   : > { %487 = vst.msk [vmem:[%s1480_s27 + $0x8] sm:$0xff] %vm266_vm11, %v470_v10 }
  0xb2   : > { %v435_v15 = vpop.xlane.xlu0 %434  ;;  %491 = vst.msk [vmem:[%s1480_s27 + $0x28] sm:$0xff] %vm266_vm11, %v474_v16 }
  0xb3   : > { %v473_v17 = vadd.f32 %v435_v15, %v345_v12  ;;  %v444_v20 = vpop.xlane.xlu1 %443 }
  0xb4   : > { %v476_v22 = vadd.f32 %v444_v20, %v348_v18 }
  0xb5   : > { %490 = vst.msk [vmem:[%s1480_s27 + $0x20] sm:$0xff] %vm266_vm11, %v473_v17 }
  0xb6   : > { %v441_v21 = vpop.xlane.xlu0 %440  ;;  %493 = vst.msk [vmem:[%s1480_s27 + $0x38] sm:$0xff] %vm266_vm11, %v476_v22 }
  0xb7   : > { %v475_v23 = vadd.f32 %v441_v21, %v347_v19  ;;  %v450_v26 = vpop.xlane.xlu1 %449 }
  0xb8   : > { %v478_v28 = vadd.f32 %v450_v26, %v350_v24 }
  0xb9   : > { %492 = vst.msk [vmem:[%s1480_s27 + $0x30] sm:$0xff] %vm266_vm11, %v475_v23 }
  0xba   : > { %v447_v27 = vpop.xlane.xlu0 %446  ;;  %495 = vst.msk [vmem:[%s1480_s27 + $0x48] sm:$0xff] %vm266_vm11, %v478_v28 }
  0xbb   : > { %v477_v30 = vadd.f32 %v447_v27, %v349_v25 }
  0xbd   : > { %494 = vst.msk [vmem:[%s1480_s27 + $0x40] sm:$0xff] %vm266_vm11, %v477_v30  ;;  %v456_v35 = vpop.xlane.xlu1 %455 }
  0xbe   : > { %v453_v36 = vpop.xlane.xlu0 %452  ;;  %v480_v37 = vadd.f32 %v456_v35, %v352_v32 }
  0xbf   : > { %v479_v38 = vadd.f32 %v453_v36, %v351_v34 }
  0xc0   : > { %497 = vst.msk [vmem:[%s1480_s27 + $0x58] sm:$0xff] %vm266_vm11, %v480_v37 }
  0xc1   : > { %496 = vst.msk [vmem:[%s1480_s27 + $0x50] sm:$0xff] %vm266_vm11, %v479_v38  ;;  %v462_v31 = vpop.xlane.xlu1 %461 }
  0xc2   : > { %v459_v43 = vpop.xlane.xlu0 %458  ;;  %v482_v44 = vadd.f32 %v462_v31, %v354_v39 }
  0xc3   : > { %v481_v45 = vadd.f32 %v459_v43, %v353_v29 }
  0xc4   : > { %499 = vst.msk [vmem:[%s1480_s27 + $0x68] sm:$0xff] %vm266_vm11, %v482_v44 }
  0xc5   : > { %498 = vst.msk [vmem:[%s1480_s27 + $0x60] sm:$0xff] %vm266_vm11, %v481_v45  ;;  %v468_v47 = vpop.xlane.xlu1 %467 }
  0xc6   : > { %v484_v49 = vadd.f32 %v468_v47, %v356_v40 }
  0xc7   : > { %v465_v48 = vpop.xlane.xlu0 %464 }
  0xc8   : > { %v483_v50 = vadd.f32 %v465_v48, %v355_v46  ;;  %501 = vst.msk [vmem:[%s1480_s27 + $0x78] sm:$0xff] %vm266_vm11, %v484_v49 }
  0xca   : > { %500 = vst.msk [vmem:[%s1480_s27 + $0x70] sm:$0xff] %vm266_vm11, %v483_v50 }
  0xf2   : > { %v925_v51 = vpop.f32.mrf.mxu0  ;;  %v949_v52 = vpop.f32.mrf.mxu1 }
  0xf4   : > { %v926_v53 = vpop.f32.mrf.mxu0  ;;  %v950_v55 = vpop.f32.mrf.mxu1 }
  0xf5   : > { %v927_v14 = vadd.f32 %v926_v53, %v925_v51  ;;  %v951_v56 = vadd.f32 %v950_v55, %v949_v52 }
  0xf6   : > { %v952_v57 = vpop.f32.mrf.mxu1  ;;  %v928_v58 = vpop.f32.mrf.mxu0 }
  0xf7   : > { %695 = vst [vmem:[%s1583_s30] sm:$0xff] %v927_v14  ;;  %703 = vst [vmem:[%s1583_s30 + $0x40] sm:$0xff] %v951_v56 }
  0xf8   : > { %v929_v61 = vpop.f32.mrf.mxu0  ;;  %v953_v62 = vpop.f32.mrf.mxu1 }
  0xf9   : > { %v930_v59 = vadd.f32 %v929_v61, %v928_v58  ;;  %v954_v60 = vadd.f32 %v953_v62, %v952_v57 }
  0xfa   : > { %v955_v63 = vpop.f32.mrf.mxu1  ;;  %v931_v0 = vpop.f32.mrf.mxu0 }
  0xfb   : > { %696 = vst [vmem:[%s1583_s30 + $0x8] sm:$0xff] %v930_v59  ;;  %704 = vst [vmem:[%s1583_s30 + $0x48] sm:$0xff] %v954_v60 }
  0xfc   : > { %v932_v1 = vpop.f32.mrf.mxu0  ;;  %v956_v2 = vpop.f32.mrf.mxu1 }
  0xfd   : > { %v933_v33 = vadd.f32 %v932_v1, %v931_v0  ;;  %v957_v41 = vadd.f32 %v956_v2, %v955_v63 }
  0xfe   : > { %v958_v42 = vpop.f32.mrf.mxu1  ;;  %v934_v3 = vpop.f32.mrf.mxu0 }
  0xff   : > { %697 = vst [vmem:[%s1583_s30 + $0x10] sm:$0xff] %v933_v33  ;;  %705 = vst [vmem:[%s1583_s30 + $0x50] sm:$0xff] %v957_v41 }
 0x100   : > { %v935_v4 = vpop.f32.mrf.mxu0  ;;  %v959_v5 = vpop.f32.mrf.mxu1 }
 0x101   : > { %v936_v6 = vadd.f32 %v935_v4, %v934_v3  ;;  %v960_v7 = vadd.f32 %v959_v5, %v958_v42 }
 0x102   : > { %v961_v54 = vpop.f32.mrf.mxu1  ;;  %v937_v8 = vpop.f32.mrf.mxu0 }
 0x103   : > { %698 = vst [vmem:[%s1583_s30 + $0x18] sm:$0xff] %v936_v6  ;;  %706 = vst [vmem:[%s1583_s30 + $0x58] sm:$0xff] %v960_v7 }
 0x104   : > { %v938_v9 = vpop.f32.mrf.mxu0  ;;  %v962_v10 = vpop.f32.mrf.mxu1 }
 0x105   : > { %v939_v11 = vadd.f32 %v938_v9, %v937_v8  ;;  %v963_v12 = vadd.f32 %v962_v10, %v961_v54 }
 0x106   : > { %v964_v13 = vpop.f32.mrf.mxu1  ;;  %v940_v15 = vpop.f32.mrf.mxu0 }
 0x107   : > { %699 = vst [vmem:[%s1583_s30 + $0x20] sm:$0xff] %v939_v11  ;;  %707 = vst [vmem:[%s1583_s30 + $0x60] sm:$0xff] %v963_v12 }
 0x108   : > { %v941_v16 = vpop.f32.mrf.mxu0  ;;  %v965_v17 = vpop.f32.mrf.mxu1 }
 0x109   : > { %v942_v18 = vadd.f32 %v941_v16, %v940_v15  ;;  %v966_v19 = vadd.f32 %v965_v17, %v964_v13 }
 0x10a   : > { %v967_v20 = vpop.f32.mrf.mxu1  ;;  %v943_v21 = vpop.f32.mrf.mxu0 }
 0x10b   : > { %700 = vst [vmem:[%s1583_s30 + $0x28] sm:$0xff] %v942_v18  ;;  %708 = vst [vmem:[%s1583_s30 + $0x68] sm:$0xff] %v966_v19 }
 0x10c   : > { %v944_v22 = vpop.f32.mrf.mxu0  ;;  %v968_v23 = vpop.f32.mrf.mxu1 }
 0x10d   : > { %v945_v24 = vadd.f32 %v944_v22, %v943_v21  ;;  %v969_v25 = vadd.f32 %v968_v23, %v967_v20 }
 0x10e   : > { %v970_v26 = vpop.f32.mrf.mxu1  ;;  %v946_v27 = vpop.f32.mrf.mxu0 }
 0x10f   : > { %701 = vst [vmem:[%s1583_s30 + $0x30] sm:$0xff] %v945_v24  ;;  %709 = vst [vmem:[%s1583_s30 + $0x70] sm:$0xff] %v969_v25 }
 0x110   : > { %v947_v28 = vpop.f32.mrf.mxu0  ;;  %v971_v30 = vpop.f32.mrf.mxu1 }
 0x111   : > { %v948_v32 = vadd.f32 %v947_v28, %v946_v27  ;;  %v972_v34 = vadd.f32 %v971_v30, %v970_v26 }
 0x113   : > { %702 = vst [vmem:[%s1583_s30 + $0x38] sm:$0xff] %v948_v32  ;;  %710 = vst [vmem:[%s1583_s30 + $0x78] sm:$0xff] %v972_v34 }
 0x114 PF: > { %s14_s14 = sadd.s32 1, %s1037_s14   ;;  %s1640_s12 = smov %s1033_s13 }
 0x115   : > { %p11_p5 = scmp.ge.s32.totalorder %s14_s14, 4   ;;  %s1641_s13 = smov %s1643_s15 }
 0x117   :  { %13 = sbr.rel (!%p11_p5) target bundleno = 2 (0x2), region = 77 }

// kernel: encoder_forward.25
= control target key start
LH: loop header
LB: loop body
LE: loop exit
PB: predicated region body
PF: predicated region fallthrough
CT: control target
= control target key end

     0   :  { %s1314_s12 = smov 0   ;;  %s1316_s13 = smov 0   ;;  %s1726_s0 = inlined_call_operand.vmem [shape: s32[2,256,1], index: 0, kind: input, shape index: {}]   ;;  %s1727_s1 = inlined_call_operand.vmem [shape: f32[2,256,128], index: 1, kind: input, shape index: {}]   ;;  %s1728_s2 = inlined_call_operand.vmem [shape: f32[2,128,128], index: 2, kind: input, shape index: {}]   ;;  %s1729_s3 = inlined_call_operand.vmem [shape: f32[2,256,128], index: 3, kind: output, shape index: {}]  }
   0x1   :  { %s1318_s14 = smov 0  }
   0x2 LB: > { %s25_s15 = sadd.s32 1, %s1285_s13  ;;  %p1071_p0 = scmp.ge.s32.totalorder %s1289_s14, 1  ;;  %s1289_s14 = sphi %s1318_s14, %s13_s14   ;;  %s1285_s13 = sphi %s1316_s13, %s1739_s13   ;;  %s1281_s12 = sphi %s1314_s12, %s1738_s12  }
   0x3   : > { %p27_p1 = scmp.ge.s32.totalorder %s25_s15, 2  ;;  %p185_p2 = scmp.lt.s32.totalorder %s1289_s14, 3 }
   0x5   : > { %s1741_s15 = smov (%p27_p1, %s25_s15), 0  ;;  %p186_p3 = pnand %p1071_p0, %p185_p2 }
   0x6   : > { %p232_p4 = scmp.lt.s32.totalorder (!%p186_p3), %s1281_s12, 1 }
   0x7   : > { %189 = sbr.rel (%p186_p3) target bundleno = 407 (0x197), region = 32 }
   0xc   : > { %v1291_v0 = vmov 0   ;;  %s1743_s12 = smov (!%p232_p4, %s1281_s12), 1  ;;  %v299_v57 = vlaneseq  ;;  %v1292_v61 = vmov 0.0  }
   0xd   : > { %1266 = vset.pattern.permute.xlu1 %v1291_v0  ;;  %1265 = vset.pattern.permute.xlu0 %v1291_v0  ;;  %s1332_s16 = sshll.u32 %s1743_s12, 8  ;;  %s1148_s20 = sshll.u32 %s1743_s12, 7 }
   0xe   : > { %s1338_s19 = scalar_lea.vmem %s1726_s0, %s1332_s16  ;;  %s1349_s23 = scalar_lea.vmem %s1728_s2, %s1148_s20  ;;  %v1393_v58 = vand.u32 127, %v299_v57 }
   0xf   : > { %v283_v1 = vld [vmem:[%s1338_s19 + $0x80] sm:$0xff]  ;;  %v284_v3 = vld [vmem:[%s1338_s19 + $0x88] sm:$0xff]  ;;  %v270_v5 = vld [vmem:[%s1338_s19 + $0x18] sm:$0xff]  ;;  %s1617_s26 = scalar_lea.vmem %s1727_s1, %s1332_s16  ;;  %s1626_s29 = scalar_lea.vmem %s1729_s3, %s1332_s16 }
  0x10   : > { %v267_v2 = vld [vmem:[%s1338_s19] sm:$0xff]  ;;  %350 = vperm.xlu1 %1266, %v283_v1   ;;  %v268_v4 = vld [vmem:[%s1338_s19 + $0x8] sm:$0xff]  ;;  %v269_v6 = vld [vmem:[%s1338_s19 + $0x10] sm:$0xff] }
  0x11   : > { %302 = vperm.xlu0 %1265, %v267_v2   ;;  %v286_v7 = vld [vmem:[%s1338_s19 + $0x98] sm:$0xff]  ;;  %v285_v8 = vld [vmem:[%s1338_s19 + $0x90] sm:$0xff]  ;;  %v521_v11 = vld [vmem:[%s1349_s23 + $0x60] sm:$0xff]  ;;  %v1293_v2 = vmov 1.0|1.0  }
  0x12   : > { %v523_v9 = vld [vmem:[%s1349_s23 + $0x70] sm:$0xff]  ;;  %v524_v10 = vld [vmem:[%s1349_s23 + $0x78] sm:$0xff]  ;;  %v522_v12 = vld [vmem:[%s1349_s23 + $0x68] sm:$0xff] }
  0x13   : > { %v532_v13 = vpack.c.bf16 %v524_v10, %v523_v9  ;;  %v531_v14 = vpack.c.bf16 %v522_v12, %v521_v11  ;;  %v519_v15 = vld [vmem:[%s1349_s23 + $0x50] sm:$0xff]  ;;  %v520_v16 = vld [vmem:[%s1349_s23 + $0x58] sm:$0xff]  ;;  %v272_v17 = vld [vmem:[%s1338_s19 + $0x28] sm:$0xff] }
  0x14   : > { %353 = vperm.xlu1 %1266, %v284_v3   ;;  %v271_v18 = vld [vmem:[%s1338_s19 + $0x20] sm:$0xff]  ;;  %v530_v19 = vpack.c.bf16 %v520_v16, %v519_v15  ;;  %v518_v21 = vld [vmem:[%s1349_s23 + $0x48] sm:$0xff]  ;;  %v515_v25 = vld [vmem:[%s1349_s23 + $0x30] sm:$0xff] }
  0x15   : > { %305 = vperm.xlu0 %1265, %v268_v4   ;;  %1174 = vmatprep.subr.bf16.mxu0 %v532_v13  ;;  %v517_v20 = vld [vmem:[%s1349_s23 + $0x40] sm:$0xff]  ;;  %v288_v22 = vld [vmem:[%s1338_s19 + $0xa8] sm:$0xff]  ;;  %v516_v26 = vld [vmem:[%s1349_s23 + $0x38] sm:$0xff] }
  0x16   : > { %1222 = vmatprep.subr.bf16.mxu1 %v532_v13  ;;  %1175 = vmatpush3.bf16.msra.mxu0 %v532_v13  ;;  %v287_v23 = vld [vmem:[%s1338_s19 + $0xa0] sm:$0xff]  ;;  %v529_v24 = vpack.c.bf16 %v518_v21, %v517_v20  ;;  %v274_v27 = vld [vmem:[%s1338_s19 + $0x38] sm:$0xff]  ;;  %v273_v28 = vld [vmem:[%s1338_s19 + $0x30] sm:$0xff]  ;;  %v528_v29 = vpack.c.bf16 %v516_v26, %v515_v25 }
  0x17   : > { %1230 = vmatpush3.bf16.msra.mxu1 %v532_v13  ;;  %1176 = vmatprep.subr.bf16.mxu0 %v531_v14  ;;  %v513_v30 = vld [vmem:[%s1349_s23 + $0x20] sm:$0xff]  ;;  %v514_v31 = vld [vmem:[%s1349_s23 + $0x28] sm:$0xff]  ;;  %v290_v32 = vld [vmem:[%s1338_s19 + $0xb8] sm:$0xff] }
  0x18   : > { %311 = vperm.xlu1 %1266, %v270_v5   ;;  %1223 = vmatprep.subr.bf16.mxu1 %v531_v14  ;;  %v289_v33 = vld [vmem:[%s1338_s19 + $0xb0] sm:$0xff]  ;;  %v527_v34 = vpack.c.bf16 %v514_v31, %v513_v30  ;;  %v512_v36 = vld [vmem:[%s1349_s23 + $0x18] sm:$0xff]  ;;  %v276_v37 = vld [vmem:[%s1338_s19 + $0x48] sm:$0xff] }
  0x19   : > { %308 = vperm.xlu0 %1265, %v269_v6   ;;  %v511_v35 = vld [vmem:[%s1349_s23 + $0x10] sm:$0xff]  ;;  %v275_v38 = vld [vmem:[%s1338_s19 + $0x40] sm:$0xff]  ;;  %v510_v41 = vld [vmem:[%s1349_s23 + $0x8] sm:$0xff] }
  0x1a   : > { %1177 = vmatpush3.bf16.msra.mxu0 %v531_v14  ;;  %v526_v39 = vpack.c.bf16 %v512_v36, %v511_v35  ;;  %v509_v40 = vld [vmem:[%s1349_s23] sm:$0xff]  ;;  %v292_v42 = vld [vmem:[%s1338_s19 + $0xc8] sm:$0xff]  ;;  %v278_v45 = vld [vmem:[%s1338_s19 + $0x58] sm:$0xff] }
  0x1b   : > { %1231 = vmatpush3.bf16.msra.mxu1 %v531_v14  ;;  %1178 = vmatprep.subr.bf16.mxu0 %v530_v19  ;;  %v291_v43 = vld [vmem:[%s1338_s19 + $0xc0] sm:$0xff]  ;;  %v525_v44 = vpack.c.bf16 %v510_v41, %v509_v40  ;;  %v277_v46 = vld [vmem:[%s1338_s19 + $0x50] sm:$0xff]  ;;  %v294_v47 = vld [vmem:[%s1338_s19 + $0xd8] sm:$0xff] }
  0x1c   : > { %359 = vperm.xlu1 %1266, %v286_v7   ;;  %1224 = vmatprep.subr.bf16.mxu1 %v530_v19  ;;  %v293_v48 = vld [vmem:[%s1338_s19 + $0xd0] sm:$0xff]  ;;  %v280_v49 = vld [vmem:[%s1338_s19 + $0x68] sm:$0xff]  ;;  %v279_v50 = vld [vmem:[%s1338_s19 + $0x60] sm:$0xff] }
  0x1d   : > { %356 = vperm.xlu0 %1265, %v285_v8   ;;  %v296_v51 = vld [vmem:[%s1338_s19 + $0xe8] sm:$0xff]  ;;  %v295_v52 = vld [vmem:[%s1338_s19 + $0xe0] sm:$0xff]  ;;  %v282_v53 = vld [vmem:[%s1338_s19 + $0x78] sm:$0xff] }
  0x1e   : > { %1179 = vmatpush3.bf16.msra.mxu0 %v530_v19  ;;  %v281_v54 = vld [vmem:[%s1338_s19 + $0x70] sm:$0xff]  ;;  %v298_v55 = vld [vmem:[%s1338_s19 + $0xf8] sm:$0xff] }
  0x1f   : > { %1232 = vmatpush3.bf16.msra.mxu1 %v530_v19  ;;  %1180 = vmatprep.subr.bf16.mxu0 %v529_v24  ;;  %v297_v56 = vld [vmem:[%s1338_s19 + $0xf0] sm:$0xff] }
  0x20   : > { %317 = vperm.xlu1 %1266, %v272_v17   ;;  %1225 = vmatprep.subr.bf16.mxu1 %v529_v24 }
  0x21   : > { %314 = vperm.xlu0 %1265, %v271_v18  }
  0x22   : > { %1181 = vmatpush3.bf16.msra.mxu0 %v529_v24 }
  0x23   : > { %1233 = vmatpush3.bf16.msra.mxu1 %v529_v24  ;;  %1182 = vmatprep.subr.bf16.mxu0 %v528_v29 }
  0x24   : > { %365 = vperm.xlu1 %1266, %v288_v22   ;;  %1226 = vmatprep.subr.bf16.mxu1 %v528_v29 }
  0x25   : > { %362 = vperm.xlu0 %1265, %v287_v23  }
  0x26   : > { %1183 = vmatpush3.bf16.msra.mxu0 %v528_v29 }
  0x27   : > { %1234 = vmatpush3.bf16.msra.mxu1 %v528_v29  ;;  %1184 = vmatprep.subr.bf16.mxu0 %v527_v34 }
  0x28   : > { %323 = vperm.xlu1 %1266, %v274_v27   ;;  %1227 = vmatprep.subr.bf16.mxu1 %v527_v34 }
  0x29   : > { %320 = vperm.xlu0 %1265, %v273_v28  }
  0x2a   : > { %1185 = vmatpush3.bf16.msra.mxu0 %v527_v34 }
  0x2b   : > { %1235 = vmatpush3.bf16.msra.mxu1 %v527_v34  ;;  %1186 = vmatprep.subr.bf16.mxu0 %v526_v39 }
  0x2c   : > { %371 = vperm.xlu1 %1266, %v290_v32   ;;  %1228 = vmatprep.subr.bf16.mxu1 %v526_v39 }
  0x2d   : > { %368 = vperm.xlu0 %1265, %v289_v33  }
  0x2e   : > { %1187 = vmatpush3.bf16.msra.mxu0 %v526_v39 }
  0x2f   : > { %1236 = vmatpush3.bf16.msra.mxu1 %v526_v39  ;;  %1188 = vmatprep.subr.bf16.mxu0 %v525_v44 }
  0x30   : > { %329 = vperm.xlu1 %1266, %v276_v37   ;;  %1229 = vmatprep.subr.bf16.mxu1 %v525_v44 }
  0x31   : > { %326 = vperm.xlu0 %1265, %v275_v38  }
  0x32   : > { %1189 = vmatpush3.bf16.msra.mxu0 %v525_v44 }
  0x33   : > { %1237 = vmatpush3.bf16.msra.mxu1 %v525_v44 }
  0x34   : > { %377 = vperm.xlu1 %1266, %v292_v42  }
  0x35   : > { %374 = vperm.xlu0 %1265, %v291_v43  }
  0x38   : > { %335 = vperm.xlu1 %1266, %v278_v45  }
  0x39   : > { %332 = vperm.xlu0 %1265, %v277_v46  }
  0x3c   : > { %383 = vperm.xlu1 %1266, %v294_v47  }
  0x3d   : > { %380 = vperm.xlu0 %1265, %v293_v48  }
  0x40   : > { %341 = vperm.xlu1 %1266, %v280_v49  }
  0x41   : > { %338 = vperm.xlu0 %1265, %v279_v50  }
  0x44   : > { %389 = vperm.xlu1 %1266, %v296_v51  }
  0x45   : > { %386 = vperm.xlu0 %1265, %v295_v52  }
  0x48   : > { %347 = vperm.xlu1 %1266, %v282_v53  }
  0x49   : > { %344 = vperm.xlu0 %1265, %v281_v54  }
  0x4c   : > { %395 = vperm.xlu1 %1266, %v298_v55  }
  0x4d   : > { %392 = vperm.xlu0 %1265, %v297_v56  }
  0x8b   : > { %v1395_v59 = vpop.permute.xlu1 %350 }
  0x8c   : > { %v303_v60 = vpop.permute.xlu0 %302  ;;  %vm413_vm3 = vcmp.eq.s32.totalorder %v1395_v59, %v1393_v58 }
  0x8d   : > { %vm397_vm0 = vcmp.eq.s32.totalorder %v303_v60, %v1393_v58  ;;  %v1096_v46 = vsel %vm413_vm3, 1.0, %v1292_v61 }
  0x8e   : > { %v1080_v62 = vsel %vm397_vm0, 1.0, %v1292_v61 }
  0x8f   : > { %694 = vadd.xlane.f32.xlu0 %v1080_v62  ;;  %v1399_v63 = vpop.permute.xlu1 %353 }
  0x90   : > { %v306_v0 = vpop.permute.xlu0 %305  ;;  %vm414_vm1 = vcmp.eq.s32.totalorder %v1399_v63, %v1393_v58 }
  0x91   : > { %vm398_vm2 = vcmp.eq.s32.totalorder %v306_v0, %v1393_v58  ;;  %vm1128_vm5 = vmpackc.low %vm414_vm1, %vm413_vm3  ;;  %v1097_v45 = vsel %vm414_vm1, 1.0, %v1292_v61 }
  0x92   : > { %vm1112_vm4 = vmpackc.low %vm398_vm2, %vm397_vm0  ;;  %v1081_v1 = vsel %vm398_vm2, 1.0, %v1292_v61  ;;  %1206 = vmatprep.mubr.msk.bf16.mxu1 %vm1128_vm5, %v1293_v2 }
  0x93   : > { %1190 = vmatprep.mubr.msk.bf16.mxu0 %vm1112_vm4, %v1293_v2  ;;  %696 = vadd.xlane.f32.xlu1 %v1081_v1  ;;  %v312_v3 = vpop.permute.xlu1 %311 }
  0x94   : > { %v309_v4 = vpop.permute.xlu0 %308  ;;  %vm400_vm6 = vcmp.eq.s32.totalorder %v312_v3, %v1393_v58 }
  0x95   : > { %vm399_vm7 = vcmp.eq.s32.totalorder %v309_v4, %v1393_v58  ;;  %v1083_v8 = vsel %vm400_vm6, 1.0, %v1292_v61 }
  0x96   : > { %vm1114_vm8 = vmpackc.low %vm400_vm6, %vm399_vm7  ;;  %v1082_v5 = vsel %vm399_vm7, 1.0, %v1292_v61 }
  0x97   : > { %1191 = vmatmul.mubr.msk.bf16.vlgmr.msra.gmra.mxu0 %vm1114_vm8, %v1293_v2  ;;  %698 = vadd.xlane.f32.xlu0 %v1082_v5  ;;  %v1419_v6 = vpop.permute.xlu1 %359 }
  0x98   : > { %v1421_v7 = vpop.permute.xlu0 %356  ;;  %vm416_vm9 = vcmp.eq.s32.totalorder %v1419_v6, %v1393_v58 }
  0x99   : > { %vm415_vm10 = vcmp.eq.s32.totalorder %v1421_v7, %v1393_v58  ;;  %v1099_v47 = vsel %vm416_vm9, 1.0, %v1292_v61 }
  0x9a   : > { %vm1130_vm11 = vmpackc.low %vm416_vm9, %vm415_vm10  ;;  %v1098_v48 = vsel %vm415_vm10, 1.0, %v1292_v61 }
  0x9b   : > { %700 = vadd.xlane.f32.xlu0 %v1083_v8  ;;  %1207 = vmatmul.mubr.msk.bf16.vlgmr.msra.gmra.mxu1 %vm1130_vm11, %v1293_v2  ;;  %v318_v9 = vpop.permute.xlu1 %317 }
  0x9c   : > { %v315_v10 = vpop.permute.xlu0 %314  ;;  %vm402_vm12 = vcmp.eq.s32.totalorder %v318_v9, %v1393_v58 }
  0x9d   : > { %vm401_vm13 = vcmp.eq.s32.totalorder %v315_v10, %v1393_v58  ;;  %v1085_v11 = vsel %vm402_vm12, 1.0, %v1292_v61 }
  0x9e   : > { %vm1116_vm14 = vmpackc.low %vm402_vm12, %vm401_vm13  ;;  %v1084_v12 = vsel %vm401_vm13, 1.0, %v1292_v61 }
  0x9f   : > { %704 = vadd.xlane.f32.xlu0 %v1085_v11  ;;  %1194 = vmatprep.mubr.msk.bf16.mxu0 %vm1116_vm14, %v1293_v2  ;;  %v1440_v13 = vpop.permute.xlu1 %365 }
  0xa0   : > { %702 = vadd.xlane.f32.xlu1 %v1084_v12  ;;  %v1442_v14 = vpop.permute.xlu0 %362  ;;  %vm418_vm15 = vcmp.eq.s32.totalorder %v1440_v13, %v1393_v58 }
  0xa1   : > { %vm417_vm0 = vcmp.eq.s32.totalorder %v1442_v14, %v1393_v58  ;;  %v1101_v49 = vsel %vm418_vm15, 1.0, %v1292_v61 }
  0xa2   : > { %vm1132_vm2 = vmpackc.low %vm418_vm15, %vm417_vm0  ;;  %v1100_v50 = vsel %vm417_vm0, 1.0, %v1292_v61 }
  0xa3   : > { %1210 = vmatprep.mubr.msk.bf16.mxu1 %vm1132_vm2, %v1293_v2  ;;  %v324_v15 = vpop.permute.xlu1 %323 }
  0xa4   : > { %v321_v16 = vpop.permute.xlu0 %320  ;;  %vm404_vm4 = vcmp.eq.s32.totalorder %v324_v15, %v1393_v58 }
  0xa5   : > { %vm403_vm5 = vcmp.eq.s32.totalorder %v321_v16, %v1393_v58  ;;  %v1087_v17 = vsel %vm404_vm4, 1.0, %v1292_v61  ;;  %v824_v16 = vld [vmem:[%s1617_s26 + $0x10] sm:$0xff] }
  0xa6   : > { %vm1118_vm6 = vmpackc.low %vm404_vm4, %vm403_vm5  ;;  %v1086_v18 = vsel %vm403_vm5, 1.0, %v1292_v61  ;;  %708 = vadd.xlane.f32.xlu0 %v1087_v17 }
  0xa7   : > { %1195 = vmatmul.mubr.msk.bf16.gmra.mxu0 %vm1118_vm6, %v1293_v2  ;;  %706 = vadd.xlane.f32.xlu1 %v1086_v18  ;;  %v1460_v19 = vpop.permute.xlu1 %371  ;;  %v822_v18 = vld [vmem:[%s1617_s26] sm:$0xff] }
  0xa8   : > { %v1462_v20 = vpop.permute.xlu0 %368  ;;  %vm420_vm7 = vcmp.eq.s32.totalorder %v1460_v19, %v1393_v58 }
  0xa9   : > { %vm419_vm8 = vcmp.eq.s32.totalorder %v1462_v20, %v1393_v58  ;;  %v1103_v51 = vsel %vm420_vm7, 1.0, %v1292_v61 }
  0xaa   : > { %vm1134_vm11 = vmpackc.low %vm420_vm7, %vm419_vm8  ;;  %v1102_v52 = vsel %vm419_vm8, 1.0, %v1292_v61 }
  0xab   : > { %1211 = vmatmul.mubr.msk.bf16.gmra.mxu1 %vm1134_vm11, %v1293_v2  ;;  %v330_v21 = vpop.permute.xlu1 %329 }
  0xac   : > { %v327_v22 = vpop.permute.xlu0 %326  ;;  %vm406_vm12 = vcmp.eq.s32.totalorder %v330_v21, %v1393_v58 }
  0xad   : > { %vm405_vm13 = vcmp.eq.s32.totalorder %v327_v22, %v1393_v58  ;;  %v1089_v23 = vsel %vm406_vm12, 1.0, %v1292_v61  ;;  %v825_v22 = vld [vmem:[%s1617_s26 + $0x18] sm:$0xff] }
  0xae   : > { %vm1120_vm14 = vmpackc.low %vm406_vm12, %vm405_vm13  ;;  %v1088_v24 = vsel %vm405_vm13, 1.0, %v1292_v61  ;;  %712 = vadd.xlane.f32.xlu0 %v1089_v23 }
  0xaf   : > { %1198 = vmatprep.mubr.msk.bf16.mxu0 %vm1120_vm14, %v1293_v2  ;;  %710 = vadd.xlane.f32.xlu1 %v1088_v24  ;;  %v1480_v25 = vpop.permute.xlu1 %377 }
  0xb0   : > { %v1482_v26 = vpop.permute.xlu0 %374  ;;  %vm422_vm2 = vcmp.eq.s32.totalorder %v1480_v25, %v1393_v58  ;;  %v840_v25 = vld [vmem:[%s1617_s26 + $0x90] sm:$0xff] }
  0xb1   : > { %vm421_vm4 = vcmp.eq.s32.totalorder %v1482_v26, %v1393_v58  ;;  %v1105_v53 = vsel %vm422_vm2, 1.0, %v1292_v61 }
  0xb2   : > { %vm1136_vm5 = vmpackc.low %vm422_vm2, %vm421_vm4  ;;  %v1104_v54 = vsel %vm421_vm4, 1.0, %v1292_v61 }
  0xb3   : > { %1214 = vmatprep.mubr.msk.bf16.mxu1 %vm1136_vm5, %v1293_v2  ;;  %v336_v27 = vpop.permute.xlu1 %335 }
  0xb4   : > { %v333_v28 = vpop.permute.xlu0 %332  ;;  %vm408_vm6 = vcmp.eq.s32.totalorder %v336_v27, %v1393_v58 }
  0xb5   : > { %vm407_vm11 = vcmp.eq.s32.totalorder %v333_v28, %v1393_v58  ;;  %v1091_v29 = vsel %vm408_vm6, 1.0, %v1292_v61 }
  0xb6   : > { %vm1122_vm12 = vmpackc.low %vm408_vm6, %vm407_vm11  ;;  %v1090_v30 = vsel %vm407_vm11, 1.0, %v1292_v61  ;;  %716 = vadd.xlane.f32.xlu0 %v1091_v29 }
  0xb7   : > { %1199 = vmatmul.mubr.msk.bf16.gmra.mxu0 %vm1122_vm12, %v1293_v2  ;;  %714 = vadd.xlane.f32.xlu1 %v1090_v30  ;;  %v384_v31 = vpop.permute.xlu1 %383 }
  0xb8   : > { %v381_v32 = vpop.permute.xlu0 %380  ;;  %vm1731_vm13 = vcmp.eq.s32.totalorder %v384_v31, %v1393_v58  ;;  %vm1734_vm1 = vcmp.eq.s32.totalorder %v384_v31, %v1393_v58 }
  0xb9   : > { %vm1730_vm14 = vcmp.eq.s32.totalorder %v381_v32, %v1393_v58  ;;  %v1107_v55 = vsel %vm1734_vm1, 1.0, %v1292_v61  ;;  %vm1735_vm3 = vcmp.eq.s32.totalorder %v381_v32, %v1393_v58 }
  0xba   : > { %vm1138_vm5 = vmpackc.low %vm1731_vm13, %vm1730_vm14  ;;  %v1106_v56 = vsel %vm1735_vm3, 1.0, %v1292_v61 }
  0xbb   : > { %1215 = vmatmul.mubr.msk.bf16.gmra.mxu1 %vm1138_vm5, %v1293_v2  ;;  %v342_v33 = vpop.permute.xlu1 %341 }
  0xbc   : > { %v339_v34 = vpop.permute.xlu0 %338  ;;  %vm410_vm6 = vcmp.eq.s32.totalorder %v342_v33, %v1393_v58  ;;  %v823_v33 = vld [vmem:[%s1617_s26 + $0x8] sm:$0xff] }
  0xbd   : > { %vm409_vm11 = vcmp.eq.s32.totalorder %v339_v34, %v1393_v58  ;;  %v1093_v35 = vsel %vm410_vm6, 1.0, %v1292_v61 }
  0xbe   : > { %vm1124_vm12 = vmpackc.low %vm410_vm6, %vm409_vm11  ;;  %v1092_v36 = vsel %vm409_vm11, 1.0, %v1292_v61  ;;  %720 = vadd.xlane.f32.xlu0 %v1093_v35 }
  0xbf   : > { %1202 = vmatprep.mubr.msk.bf16.mxu0 %vm1124_vm12, %v1293_v2  ;;  %718 = vadd.xlane.f32.xlu1 %v1092_v36  ;;  %v390_v37 = vpop.permute.xlu1 %389 }
  0xc0   : > { %v387_v38 = vpop.permute.xlu0 %386  ;;  %vm1733_vm14 = vcmp.eq.s32.totalorder %v390_v37, %v1393_v58  ;;  %vm1736_vm9 = vcmp.eq.s32.totalorder %v390_v37, %v1393_v58 }
  0xc1   : > { %vm1732_vm5 = vcmp.eq.s32.totalorder %v387_v38, %v1393_v58  ;;  %v1109_v57 = vsel %vm1736_vm9, 1.0, %v1292_v61  ;;  %vm1737_vm10 = vcmp.eq.s32.totalorder %v387_v38, %v1393_v58  ;;  %v838_v38 = vld [vmem:[%s1617_s26 + $0x80] sm:$0xff] }
  0xc2   : > { %vm1140_vm13 = vmpackc.low %vm1733_vm14, %vm1732_vm5  ;;  %v1108_v59 = vsel %vm1737_vm10, 1.0, %v1292_v61 }
  0xc3   : > { %1218 = vmatprep.mubr.msk.bf16.mxu1 %vm1140_vm13, %v1293_v2  ;;  %v348_v39 = vpop.permute.xlu1 %347 }
  0xc4   : > { %v345_v40 = vpop.permute.xlu0 %344  ;;  %vm412_vm6 = vcmp.eq.s32.totalorder %v348_v39, %v1393_v58 }
  0xc5   : > { %vm411_vm11 = vcmp.eq.s32.totalorder %v345_v40, %v1393_v58  ;;  %v1095_v41 = vsel %vm412_vm6, 1.0, %v1292_v61 }
  0xc6   : > { %vm1126_vm12 = vmpackc.low %vm412_vm6, %vm411_vm11  ;;  %v1094_v42 = vsel %vm411_vm11, 1.0, %v1292_v61  ;;  %724 = vadd.xlane.f32.xlu0 %v1095_v41 }
  0xc7   : > { %1203 = vmatmul.mubr.msk.bf16.gmra.mxu0 %vm1126_vm12, %v1293_v2  ;;  %722 = vadd.xlane.f32.xlu1 %v1094_v42  ;;  %v396_v43 = vpop.permute.xlu1 %395 }
  0xc8   : > { %v393_v44 = vpop.permute.xlu0 %392  ;;  %vm428_vm5 = vcmp.eq.s32.totalorder %v396_v43, %v1393_v58 }
  0xc9   : > { %vm427_vm13 = vcmp.eq.s32.totalorder %v393_v44, %v1393_v58  ;;  %v1111_v60 = vsel %vm428_vm5, 1.0, %v1292_v61 }
  0xca   : > { %vm1142_vm14 = vmpackc.low %vm428_vm5, %vm427_vm13  ;;  %728 = vadd.xlane.f32.xlu0 %v1097_v45  ;;  %v1110_v62 = vsel %vm427_vm13, 1.0, %v1292_v61 }
  0xcb   : > { %1219 = vmatmul.mubr.msk.bf16.gmra.mxu1 %vm1142_vm14, %v1293_v2  ;;  %726 = vadd.xlane.f32.xlu1 %v1096_v46  ;;  %v841_v46 = vld [vmem:[%s1617_s26 + $0x98] sm:$0xff] }
  0xce   : > { %732 = vadd.xlane.f32.xlu0 %v1099_v47 }
  0xcf   : > { %730 = vadd.xlane.f32.xlu1 %v1098_v48 }
  0xd2   : > { %736 = vadd.xlane.f32.xlu0 %v1101_v49 }
  0xd3   : > { %734 = vadd.xlane.f32.xlu1 %v1100_v50 }
  0xd6   : > { %740 = vadd.xlane.f32.xlu0 %v1103_v51 }
  0xd7   : > { %738 = vadd.xlane.f32.xlu1 %v1102_v52 }
  0xda   : > { %744 = vadd.xlane.f32.xlu0 %v1105_v53 }
  0xdb   : > { %742 = vadd.xlane.f32.xlu1 %v1104_v54 }
  0xde   : > { %748 = vadd.xlane.f32.xlu0 %v1107_v55  ;;  %v839_v55 = vld [vmem:[%s1617_s26 + $0x88] sm:$0xff] }
  0xdf   : > { %746 = vadd.xlane.f32.xlu1 %v1106_v56 }
  0xe2   : > { %752 = vadd.xlane.f32.xlu0 %v1109_v57 }
  0xe3   : > { %750 = vadd.xlane.f32.xlu1 %v1108_v59 }
  0xe6   : > { %756 = vadd.xlane.f32.xlu0 %v1111_v60 }
  0xe7   : > { %754 = vadd.xlane.f32.xlu1 %v1110_v62 }
 0x118   : > { %v695_v63 = vpop.xlane.xlu0 %694 }
 0x119   : > { %v790_v15 = vsub.f32 1.0, %v695_v63 }
 0x11b   : > { %v854_v24 = vmul.f32 %v822_v18, %v790_v15 }
 0x11c   : > { %v697_v2 = vpop.xlane.xlu1 %696 }
 0x11d   : > { %v791_v28 = vsub.f32 1.0, %v697_v2 }
 0x11f   : > { %v855_v45 = vmul.f32 %v823_v33, %v791_v28  ;;  %v827_v33 = vld [vmem:[%s1617_s26 + $0x28] sm:$0xff] }
 0x120   : > { %v699_v0 = vpop.xlane.xlu0 %698 }
 0x121   : > { %v792_v13 = vsub.f32 1.0, %v699_v0 }
 0x123   : > { %v856_v21 = vmul.f32 %v824_v16, %v792_v13  ;;  %v828_v16 = vld [vmem:[%s1617_s26 + $0x30] sm:$0xff] }
 0x124   : > { %v701_v1 = vpop.xlane.xlu0 %700 }
 0x125   : > { %v793_v19 = vsub.f32 1.0, %v701_v1 }
 0x127   : > { %v857_v34 = vmul.f32 %v825_v22, %v793_v19 }
 0x128   : > { %v1589_v3 = vpop.xlane.xlu0 %704 }
 0x129   : > { %v1591_v4 = vpop.xlane.xlu1 %702 }
 0x12a   : > { %v794_v19 = vsub.f32 1.0, %v1591_v4 }
 0x12f   : > { %v1593_v5 = vpop.xlane.xlu0 %708 }
 0x130   : > { %v1595_v6 = vpop.xlane.xlu1 %706 }
 0x131   : > { %v796_v13 = vsub.f32 1.0, %v1595_v6 }
 0x137   : > { %v1597_v7 = vpop.xlane.xlu0 %712 }
 0x138   : > { %v1599_v8 = vpop.xlane.xlu1 %710 }
 0x13f   : > { %v1601_v58 = vpop.xlane.xlu0 %716 }
 0x140   : > { %v1603_v61 = vpop.xlane.xlu1 %714 }
 0x147   : > { %v1605_v9 = vpop.xlane.xlu0 %720 }
 0x148   : > { %v1607_v10 = vpop.xlane.xlu1 %718 }
 0x14f   : > { %v1609_v11 = vpop.xlane.xlu0 %724 }
 0x150   : > { %v1611_v12 = vpop.xlane.xlu1 %722 }
 0x153   : > { %v729_v14 = vpop.xlane.xlu0 %728 }
 0x154   : > { %v727_v17 = vpop.xlane.xlu1 %726  ;;  %v807_v52 = vsub.f32 1.0, %v729_v14 }
 0x155   : > { %v806_v35 = vsub.f32 1.0, %v727_v17 }
 0x157   : > { %v1192_v20 = vpop.f32.mrf.mxu0  ;;  %v733_v31 = vpop.xlane.xlu0 %732  ;;  %v870_v51 = vmul.f32 %v838_v38, %v806_v35  ;;  %v842_v38 = vld [vmem:[%s1617_s26 + $0xa0] sm:$0xff] }
 0x158   : > { %v760_v23 = vmul.f32 %v1192_v20, %v699_v0  ;;  %v731_v26 = vpop.xlane.xlu1 %730  ;;  %v809_v43 = vsub.f32 1.0, %v733_v31  ;;  %v871_v0 = vmul.f32 %v839_v55, %v807_v52  ;;  %v826_v20 = vld [vmem:[%s1617_s26 + $0x20] sm:$0xff] }
 0x159   : > { %v567_v27 = vpop.f32.mrf.mxu0  ;;  %v808_v30 = vsub.f32 1.0, %v731_v26  ;;  %v858_v28 = vmul.f32 %v826_v20, %v794_v19 }
 0x15a   : > { %v888_v29 = vadd.f32 %v856_v21, %v760_v23  ;;  %v758_v32 = vmul.f32 %v695_v63, %v567_v27  ;;  %v873_v59 = vmul.f32 %v841_v46, %v809_v43  ;;  %v797_v21 = vsub.f32 1.0, %v1593_v5 }
 0x15b   : > { %v1193_v36 = vpop.f32.mrf.mxu0  ;;  %v1208_v37 = vpop.f32.mrf.mxu1  ;;  %v872_v39 = vmul.f32 %v840_v25, %v808_v30  ;;  %v860_v23 = vmul.f32 %v828_v16, %v796_v13  ;;  %v798_v16 = vsub.f32 1.0, %v1599_v8 }
 0x15c   : > { %920 = vst [vmem:[%s1626_s29 + $0x10] sm:$0xff] %v888_v29  ;;  %v886_v40 = vadd.f32 %v854_v24, %v758_v32  ;;  %v761_v41 = vmul.f32 %v1193_v36, %v701_v1  ;;  %v776_v42 = vmul.f32 %v1208_v37, %v731_v26  ;;  %v735_v53 = vpop.xlane.xlu1 %734  ;;  %v737_v15 = vpop.xlane.xlu0 %736  ;;  %v829_v24 = vld [vmem:[%s1617_s26 + $0x38] sm:$0xff]  ;;  %v844_v26 = vld [vmem:[%s1617_s26 + $0xb0] sm:$0xff]  ;;  %v795_v29 = vsub.f32 1.0, %v1589_v3 }
 0x15d   : > { %v570_v44 = vpop.f32.mrf.mxu0  ;;  %v631_v50 = vpop.f32.mrf.mxu1  ;;  %v810_v35 = vsub.f32 1.0, %v735_v53 }
 0x15e   : > { %918 = vst [vmem:[%s1626_s29] sm:$0xff] %v886_v40  ;;  %v889_v47 = vadd.f32 %v857_v34, %v761_v41  ;;  %v904_v48 = vadd.f32 %v872_v39, %v776_v42  ;;  %v759_v49 = vmul.f32 %v697_v2, %v570_v44  ;;  %v774_v54 = vmul.f32 %v727_v17, %v631_v50 }
 0x15f   : > { %v1209_v57 = vpop.f32.mrf.mxu1  ;;  %v861_v34 = vmul.f32 %v829_v24, %v797_v21  ;;  %v859_v44 = vmul.f32 %v827_v33, %v795_v29  ;;  %v811_v50 = vsub.f32 1.0, %v737_v15  ;;  %v833_v21 = vld [vmem:[%s1617_s26 + $0x58] sm:$0xff]  ;;  %v799_v24 = vsub.f32 1.0, %v1597_v7  ;;  %v846_v29 = vld [vmem:[%s1617_s26 + $0xc0] sm:$0xff] }
 0x160   : > { %921 = vst [vmem:[%s1626_s29 + $0x18] sm:$0xff] %v889_v47  ;;  %936 = vst [vmem:[%s1626_s29 + $0x90] sm:$0xff] %v904_v48  ;;  %v887_v56 = vadd.f32 %v855_v45, %v759_v49  ;;  %v902_v60 = vadd.f32 %v870_v51, %v774_v54  ;;  %v777_v62 = vmul.f32 %v1209_v57, %v733_v31  ;;  %v739_v17 = vpop.xlane.xlu1 %738  ;;  %v741_v30 = vpop.xlane.xlu0 %740 }
 0x161   : > { %v634_v63 = vpop.f32.mrf.mxu1  ;;  %v813_v42 = vsub.f32 1.0, %v741_v30  ;;  %v874_v49 = vmul.f32 %v842_v38, %v810_v35 }
 0x162   : > { %919 = vst [vmem:[%s1626_s29 + $0x8] sm:$0xff] %v887_v56  ;;  %934 = vst [vmem:[%s1626_s29 + $0x80] sm:$0xff] %v902_v60  ;;  %v905_v1 = vadd.f32 %v873_v59, %v777_v62  ;;  %v775_v2 = vmul.f32 %v729_v14, %v634_v63  ;;  %v812_v14 = vsub.f32 1.0, %v739_v17 }
 0x164   : > { %937 = vst [vmem:[%s1626_s29 + $0x98] sm:$0xff] %v905_v1  ;;  %v903_v18 = vadd.f32 %v871_v0, %v775_v2  ;;  %v876_v39 = vmul.f32 %v844_v26, %v812_v14  ;;  %v743_v51 = vpop.xlane.xlu1 %742  ;;  %v1661_v60 = vpop.xlane.xlu0 %744  ;;  %v800_v0 = vsub.f32 1.0, %v1603_v61  ;;  %v832_v1 = vld [vmem:[%s1617_s26 + $0x50] sm:$0xff] }
 0x165   : > { %v814_v14 = vsub.f32 1.0, %v743_v51 }
 0x166   : > { %935 = vst [vmem:[%s1626_s29 + $0x88] sm:$0xff] %v903_v18  ;;  %v801_v18 = vsub.f32 1.0, %v1601_v58  ;;  %v864_v20 = vmul.f32 %v832_v1, %v800_v0 }
 0x167   : > { %v1196_v22 = vpop.f32.mrf.mxu0 }
 0x168   : > { %v764_v25 = vmul.f32 %v1196_v22, %v1595_v6  ;;  %v747_v2 = vpop.xlane.xlu1 %746 }
 0x169   : > { %v583_v27 = vpop.f32.mrf.mxu0  ;;  %v816_v22 = vsub.f32 1.0, %v747_v2 }
 0x16a   : > { %v892_v31 = vadd.f32 %v860_v23, %v764_v25  ;;  %v762_v32 = vmul.f32 %v1591_v4, %v583_v27  ;;  %v845_v4 = vld [vmem:[%s1617_s26 + $0xb8] sm:$0xff]  ;;  %v848_v25 = vld [vmem:[%s1617_s26 + $0xd0] sm:$0xff] }
 0x16b   : > { %v1197_v36 = vpop.f32.mrf.mxu0  ;;  %v1212_v37 = vpop.f32.mrf.mxu1  ;;  %v877_v56 = vmul.f32 %v845_v4, %v813_v42 }
 0x16c   : > { %924 = vst [vmem:[%s1626_s29 + $0x30] sm:$0xff] %v892_v31  ;;  %v890_v6 = vadd.f32 %v858_v28, %v762_v32  ;;  %v765_v40 = vmul.f32 %v1197_v36, %v1593_v5  ;;  %v780_v41 = vmul.f32 %v1212_v37, %v739_v17  ;;  %v843_v5 = vld [vmem:[%s1617_s26 + $0xa8] sm:$0xff]  ;;  %v830_v17 = vld [vmem:[%s1617_s26 + $0x40] sm:$0xff]  ;;  %v865_v32 = vmul.f32 %v833_v21, %v801_v18 }
 0x16d   : > { %v586_v43 = vpop.f32.mrf.mxu0  ;;  %v647_v48 = vpop.f32.mrf.mxu1  ;;  %v875_v62 = vmul.f32 %v843_v5, %v811_v50  ;;  %v862_v27 = vmul.f32 %v830_v17, %v798_v16  ;;  %v831_v28 = vld [vmem:[%s1617_s26 + $0x48] sm:$0xff]  ;;  %v880_v36 = vmul.f32 %v848_v25, %v816_v22  ;;  %v803_v17 = vsub.f32 1.0, %v1605_v9 }
 0x16e   : > { %922 = vst [vmem:[%s1626_s29 + $0x20] sm:$0xff] %v890_v6  ;;  %v893_v45 = vadd.f32 %v861_v34, %v765_v40  ;;  %v908_v46 = vadd.f32 %v876_v39, %v780_v41  ;;  %v763_v47 = vmul.f32 %v1589_v3, %v586_v43  ;;  %v778_v52 = vmul.f32 %v735_v53, %v647_v48  ;;  %v849_v41 = vld [vmem:[%s1617_s26 + $0xd8] sm:$0xff]  ;;  %v835_v22 = vld [vmem:[%s1617_s26 + $0x68] sm:$0xff] }
 0x16f   : > { %v1213_v55 = vpop.f32.mrf.mxu1  ;;  %v863_v39 = vmul.f32 %v831_v28, %v799_v24  ;;  %v878_v6 = vmul.f32 %v846_v29, %v814_v14  ;;  %v815_v40 = vsub.f32 1.0, %v1661_v60 }
 0x170   : > { %925 = vst [vmem:[%s1626_s29 + $0x38] sm:$0xff] %v893_v45  ;;  %940 = vst [vmem:[%s1626_s29 + $0xb0] sm:$0xff] %v908_v46  ;;  %v891_v54 = vadd.f32 %v859_v44, %v763_v47  ;;  %v906_v57 = vadd.f32 %v874_v49, %v778_v52  ;;  %v781_v59 = vmul.f32 %v1213_v55, %v741_v30  ;;  %v847_v46 = vld [vmem:[%s1617_s26 + $0xc8] sm:$0xff] }
 0x171   : > { %v650_v3 = vpop.f32.mrf.mxu1 }
 0x172   : > { %923 = vst [vmem:[%s1626_s29 + $0x28] sm:$0xff] %v891_v54  ;;  %938 = vst [vmem:[%s1626_s29 + $0xa0] sm:$0xff] %v906_v57  ;;  %v909_v53 = vadd.f32 %v877_v56, %v781_v59  ;;  %v779_v63 = vmul.f32 %v737_v15, %v650_v3  ;;  %v749_v15 = vpop.xlane.xlu0 %748  ;;  %v879_v54 = vmul.f32 %v847_v46, %v815_v40  ;;  %v804_v56 = vsub.f32 1.0, %v1611_v12  ;;  %v836_v59 = vld [vmem:[%s1617_s26 + $0x70] sm:$0xff] }
 0x173   : > { %v817_v33 = vsub.f32 1.0, %v749_v15 }
 0x174   : > { %941 = vst [vmem:[%s1626_s29 + $0xb8] sm:$0xff] %v909_v53  ;;  %v907_v13 = vadd.f32 %v875_v62, %v779_v63  ;;  %v802_v62 = vsub.f32 1.0, %v1607_v10  ;;  %v834_v53 = vld [vmem:[%s1617_s26 + $0x60] sm:$0xff]  ;;  %v805_v63 = vsub.f32 1.0, %v1609_v11  ;;  %v868_v1 = vmul.f32 %v836_v59, %v804_v56 }
 0x175   : > { %v881_v48 = vmul.f32 %v849_v41, %v817_v33 }
 0x176   : > { %939 = vst [vmem:[%s1626_s29 + $0xa8] sm:$0xff] %v907_v13  ;;  %v753_v55 = vpop.xlane.xlu0 %752  ;;  %v866_v21 = vmul.f32 %v834_v53, %v802_v62 }
 0x177   : > { %v1200_v19 = vpop.f32.mrf.mxu0  ;;  %v819_v33 = vsub.f32 1.0, %v753_v55 }
 0x178   : > { %v768_v23 = vmul.f32 %v1200_v19, %v1603_v61  ;;  %v852_v19 = vld [vmem:[%s1617_s26 + $0xf0] sm:$0xff] }
 0x179   : > { %v599_v26 = vpop.f32.mrf.mxu0 }
 0x17a   : > { %v896_v30 = vadd.f32 %v864_v20, %v768_v23  ;;  %v766_v31 = vmul.f32 %v1599_v8, %v599_v26 }
 0x17b   : > { %v1201_v34 = vpop.f32.mrf.mxu0  ;;  %v1216_v35 = vpop.f32.mrf.mxu1 }
 0x17c   : > { %928 = vst [vmem:[%s1626_s29 + $0x50] sm:$0xff] %v896_v30  ;;  %v894_v61 = vadd.f32 %v862_v27, %v766_v31  ;;  %v769_v37 = vmul.f32 %v1201_v34, %v1601_v58  ;;  %v784_v38 = vmul.f32 %v1216_v35, %v747_v2  ;;  %v751_v58 = vpop.xlane.xlu1 %750  ;;  %v837_v2 = vld [vmem:[%s1617_s26 + $0x78] sm:$0xff]  ;;  %v867_v31 = vmul.f32 %v835_v22, %v803_v17 }
 0x17d   : > { %v602_v8 = vpop.f32.mrf.mxu0  ;;  %v663_v42 = vpop.f32.mrf.mxu1  ;;  %v818_v18 = vsub.f32 1.0, %v751_v58  ;;  %v869_v14 = vmul.f32 %v837_v2, %v805_v63  ;;  %v853_v34 = vld [vmem:[%s1617_s26 + $0xf8] sm:$0xff] }
 0x17e   : > { %926 = vst [vmem:[%s1626_s29 + $0x40] sm:$0xff] %v894_v61  ;;  %v897_v43 = vadd.f32 %v865_v32, %v769_v37  ;;  %v912_v44 = vadd.f32 %v880_v36, %v784_v38  ;;  %v767_v4 = vmul.f32 %v1597_v7, %v602_v8  ;;  %v782_v45 = vmul.f32 %v743_v51, %v663_v42 }
 0x17f   : > { %v1217_v47 = vpop.f32.mrf.mxu1 }
 0x180   : > { %929 = vst [vmem:[%s1626_s29 + $0x58] sm:$0xff] %v897_v43  ;;  %944 = vst [vmem:[%s1626_s29 + $0xd0] sm:$0xff] %v912_v44  ;;  %v895_v49 = vadd.f32 %v863_v39, %v767_v4  ;;  %v910_v50 = vadd.f32 %v878_v6, %v782_v45  ;;  %v785_v52 = vmul.f32 %v1217_v47, %v749_v15  ;;  %v755_v3 = vpop.xlane.xlu1 %754  ;;  %v850_v15 = vld [vmem:[%s1617_s26 + $0xe0] sm:$0xff]  ;;  %v851_v39 = vld [vmem:[%s1617_s26 + $0xe8] sm:$0xff] }
 0x181   : > { %v666_v5 = vpop.f32.mrf.mxu1  ;;  %v820_v13 = vsub.f32 1.0, %v755_v3  ;;  %v882_v32 = vmul.f32 %v850_v15, %v818_v18  ;;  %v883_v43 = vmul.f32 %v851_v39, %v819_v33 }
 0x182   : > { %927 = vst [vmem:[%s1626_s29 + $0x48] sm:$0xff] %v895_v49  ;;  %942 = vst [vmem:[%s1626_s29 + $0xc0] sm:$0xff] %v910_v50  ;;  %v913_v7 = vadd.f32 %v881_v48, %v785_v52  ;;  %v783_v51 = vmul.f32 %v1661_v60, %v666_v5  ;;  %v757_v60 = vpop.xlane.xlu0 %756 }
 0x183   : > { %v821_v25 = vsub.f32 1.0, %v757_v60  ;;  %v884_v28 = vmul.f32 %v852_v19, %v820_v13 }
 0x184   : > { %945 = vst [vmem:[%s1626_s29 + $0xd8] sm:$0xff] %v913_v7  ;;  %v911_v57 = vadd.f32 %v879_v54, %v783_v51 }
 0x185   : > { %v885_v6 = vmul.f32 %v853_v34, %v821_v25 }
 0x186   : > { %943 = vst [vmem:[%s1626_s29 + $0xc8] sm:$0xff] %v911_v57 }
 0x187   : > { %v1204_v0 = vpop.f32.mrf.mxu0 }
 0x188   : > { %v772_v16 = vmul.f32 %v1204_v0, %v1611_v12 }
 0x189   : > { %v615_v20 = vpop.f32.mrf.mxu0 }
 0x18a   : > { %v900_v23 = vadd.f32 %v868_v1, %v772_v16  ;;  %v770_v24 = vmul.f32 %v1607_v10, %v615_v20 }
 0x18b   : > { %v1205_v26 = vpop.f32.mrf.mxu0  ;;  %v1220_v27 = vpop.f32.mrf.mxu1 }
 0x18c   : > { %932 = vst [vmem:[%s1626_s29 + $0x70] sm:$0xff] %v900_v23  ;;  %v898_v12 = vadd.f32 %v866_v21, %v770_v24  ;;  %v773_v29 = vmul.f32 %v1205_v26, %v1609_v11  ;;  %v788_v30 = vmul.f32 %v1220_v27, %v755_v3 }
 0x18d   : > { %v618_v35 = vpop.f32.mrf.mxu0  ;;  %v679_v10 = vpop.f32.mrf.mxu1 }
 0x18e   : > { %930 = vst [vmem:[%s1626_s29 + $0x60] sm:$0xff] %v898_v12  ;;  %v901_v36 = vadd.f32 %v869_v14, %v773_v29  ;;  %v916_v61 = vadd.f32 %v884_v28, %v788_v30  ;;  %v771_v37 = vmul.f32 %v1605_v9, %v618_v35  ;;  %v786_v38 = vmul.f32 %v751_v58, %v679_v10 }
 0x18f   : > { %v1221_v11 = vpop.f32.mrf.mxu1 }
 0x190   : > { %933 = vst [vmem:[%s1626_s29 + $0x78] sm:$0xff] %v901_v36  ;;  %948 = vst [vmem:[%s1626_s29 + $0xf0] sm:$0xff] %v916_v61  ;;  %v899_v40 = vadd.f32 %v867_v31, %v771_v37  ;;  %v914_v41 = vadd.f32 %v882_v32, %v786_v38  ;;  %v789_v8 = vmul.f32 %v1221_v11, %v757_v60 }
 0x191   : > { %v682_v42 = vpop.f32.mrf.mxu1 }
 0x192   : > { %931 = vst [vmem:[%s1626_s29 + $0x68] sm:$0xff] %v899_v40  ;;  %946 = vst [vmem:[%s1626_s29 + $0xe0] sm:$0xff] %v914_v41  ;;  %v917_v44 = vadd.f32 %v885_v6, %v789_v8  ;;  %v787_v4 = vmul.f32 %v753_v55, %v682_v42 }
 0x194   : > { %949 = vst [vmem:[%s1626_s29 + $0xf8] sm:$0xff] %v917_v44  ;;  %v915_v45 = vadd.f32 %v883_v43, %v787_v4 }
 0x196   : > { %947 = vst [vmem:[%s1626_s29 + $0xe8] sm:$0xff] %v915_v45 }
 0x197 PF: > { %s13_s14 = sadd.s32 1, %s1289_s14   ;;  %s1738_s12 = smov %s1285_s13 }
 0x198   : > { %p10_p5 = scmp.ge.s32.totalorder %s13_s14, 4   ;;  %s1739_s13 = smov %s1741_s15 }
 0x19a   :  { %12 = sbr.rel (!%p10_p5) target bundleno = 2 (0x2), region = 68 }

</bundles_post_ra>
